<compile_context>
chip_gen: v6e
topology: v6e:2x2x1
jax: 0.10.0
libtpu: 0.0.40
codegen_flags: <defaults>
</compile_context>

<pallas_src>
import functools

import jax
import jax.numpy as jnp
from jax.experimental import pallas as pl
from jax.experimental.pallas import tpu as pltpu

EPS = 1e-6          # resnet_eps / GroupNorm eps
RESCALE = 1.0       # Attention.rescale_output_factor
OUT_SCALE = 1.0     # ResnetBlock2D.output_scale_factor


# ----------------------------------------------------------------------------
# In-kernel helpers
# ----------------------------------------------------------------------------
def _group_norm(x, mcg, mgc, gamma, beta, inv_n):
    """GroupNorm of x:(HW, C); statistics over the (Cg * HW) elements per group.

    mcg:(C, G) one-hot channel->group membership, mgc:(G, C) = mcg.T broadcast.
    Two-pass (mean, then centered sum-of-squares) for numerical robustness.
    inv_n = 1/(Cg*HW) is a compile-time constant (NOT baked into the matrices),
    so the same matrices stay valid if HW tiling is introduced later.
    """
    s1 = jnp.sum(x, axis=0, keepdims=True)                                  # (1, C)
    gmean = jnp.dot(s1, mcg, preferred_element_type=jnp.float32) * inv_n    # (1, G)
    mean = jnp.dot(gmean, mgc, preferred_element_type=jnp.float32)          # (1, C)
    xc = x - mean
    s2 = jnp.sum(xc * xc, axis=0, keepdims=True)                            # (1, C)
    gvar = jnp.dot(s2, mcg, preferred_element_type=jnp.float32) * inv_n     # (1, G)
    var = jnp.dot(gvar, mgc, preferred_element_type=jnp.float32)            # (1, C)
    return xc * jax.lax.rsqrt(var + EPS) * gamma + beta


def _conv3x3(h, w_ref, b_ref, pad_ref, mask_l, mask_r, *, H, W, pad_lo):
    """3x3 / stride 1 / pad 1 conv on h:(H*W, C), channels-last, row-major spatial.

    h is staged into a zero-padded VMEM scratch and the conv is accumulated as
    9 shifted (HW, C) x (C, C) MXU matmuls.  mask_l / mask_r zero the taps that
    would wrap across image rows in the flattened layout; the top/bottom halo is
    handled by the zero rows of the scratch.  w_ref:(9, Cin, Cout) indexed by
    ky*3+kx, b_ref:(1, Cout).
    """
    HW = H * W
    pad_ref[pad_lo:pad_lo + HW, :] = h
    acc = None
    for ky in range(3):
        for kx in range(3):
            start = pad_lo + (ky - 1) * W + (kx - 1)
            src = pad_ref[start:start + HW, :]
            if kx == 0:                    # reads column x-1: invalid at x == 0
                src = src * mask_l
            elif kx == 2:                  # reads column x+1: invalid at x == W-1
                src = src * mask_r
            t = jnp.dot(src, w_ref[ky * 3 + kx],
                        preferred_element_type=jnp.float32)
            acc = t if acc is None else acc + t
    return acc + b_ref[...]


# ----------------------------------------------------------------------------
# Fused kernel (grid = (B,), one batch element per grid step)
# ----------------------------------------------------------------------------
def _mid_block_kernel(x_ref, mask_l_ref, mask_r_ref, mcg_ref, mgc_ref,
                      agn_g_ref, agn_b_ref, wqkv_ref, bqkv_ref, wo_ref, bo_ref,
                      n1_g_ref, n1_b_ref, c1_w_ref, c1_b_ref,
                      n2_g_ref, n2_b_ref, c2_w_ref, c2_b_ref,
                      o_ref, pad_ref, *, H, W, C, G, pad_lo):
    HW = H * W
    inv_n = 1.0 / float((C // G) * HW)

    pad_ref[...] = jnp.zeros_like(pad_ref)        # zero the conv halo rows
    mask_l = mask_l_ref[...]
    mask_r = mask_r_ref[...]
    mcg = mcg_ref[...]
    mgc = mgc_ref[...]

    x = x_ref[0]                                  # (HW, C)

    # --- Attention (heads=1, dim_head=C, residual_connection=True) ----------
    xn = _group_norm(x, mcg, mgc, agn_g_ref[...], agn_b_ref[...], inv_n)
    # q/k/v weights live in one packed (3, C, C) tensor (single DMA); the
    # softmax scale C**-0.5 is folded into the q weights/bias at prep time so
    # there is no O(HW^2) multiply on the score matrix.
    # TODO(synk): at C >= 128 fuse these into one (C, 3C) matmul with
    #   lane-tile-aligned result slices; at C = 64 a slice would sit at a
    #   non-tile lane offset, so three narrow matmuls are kept.
    q = jnp.dot(xn, wqkv_ref[0], preferred_element_type=jnp.float32) + bqkv_ref[0]
    k = jnp.dot(xn, wqkv_ref[1], preferred_element_type=jnp.float32) + bqkv_ref[1]
    v = jnp.dot(xn, wqkv_ref[2], preferred_element_type=jnp.float32) + bqkv_ref[2]

    scores = jax.lax.dot_general(q, k, (((1,), (1,)), ((), ())),
                                 preferred_element_type=jnp.float32)
    m = jnp.max(scores, axis=-1, keepdims=True)
    p = jnp.exp(scores - m)
    denom = jnp.sum(p, axis=-1, keepdims=True)
    p = p * pl.reciprocal(denom, approx=False)    # approx=True would use the EUP
    attn = jnp.dot(p, v, preferred_element_type=jnp.float32)
    attn = jnp.dot(attn, wo_ref[...], preferred_element_type=jnp.float32) + bo_ref[...]
    attn = attn + x                               # residual add
    if RESCALE != 1.0:                            # elided: factor is 1.0
        attn = attn * (1.0 / RESCALE)

    # --- ResnetBlock2D: norm1 -> conv1 -> norm2 -> dropout(p=0) -> conv2 ----
    # --- -> SiLU -> (input + h) / output_scale_factor  (matches the spec) ---
    h = _group_norm(attn, mcg, mgc, n1_g_ref[...], n1_b_ref[...], inv_n)
    h = _conv3x3(h, c1_w_ref, c1_b_ref, pad_ref, mask_l, mask_r,
                 H=H, W=W, pad_lo=pad_lo)
    h = _group_norm(h, mcg, mgc, n2_g_ref[...], n2_b_ref[...], inv_n)
    h = _conv3x3(h, c2_w_ref, c2_b_ref, pad_ref, mask_l, mask_r,
                 H=H, W=W, pad_lo=pad_lo)
    h = h * jax.nn.sigmoid(h)                     # SiLU
    out = attn + h
    if OUT_SCALE != 1.0:                          # elided: factor is 1.0
        out = out * (1.0 / OUT_SCALE)
    o_ref[0] = out


# ----------------------------------------------------------------------------
# Wrapper
# ----------------------------------------------------------------------------
def unet_mid_block2d(x_nchw, p):
    B, C, H, W = x_nchw.shape
    HW = H * W
    G = p["mcg"].shape[1]
    pad_lo = ((W + 1 + 7) // 8) * 8               # 8-aligned top halo >= W+1 rows
    pad_rows = 2 * pad_lo + HW                    # symmetric halo (bottom >= W+1)

    xs = jnp.transpose(x_nchw, (0, 2, 3, 1)).reshape(B, HW, C)

    # Column masks for the flattened 3x3 conv taps (depend only on H, W).
    col = jnp.arange(HW, dtype=jnp.int32) % W
    mask_l = (col != 0).astype(jnp.float32).reshape(HW, 1)
    mask_r = (col != W - 1).astype(jnp.float32).reshape(HW, 1)

    def full(shape):
        nd = len(shape)
        return pl.BlockSpec(shape, lambda b, _nd=nd: (0,) * _nd)

    batch = pl.BlockSpec((1, HW, C), lambda b: (b, 0, 0))

    kern = functools.partial(_mid_block_kernel, H=H, W=W, C=C, G=G, pad_lo=pad_lo)

    out = pl.pallas_call(
        kern,
        out_shape=jax.ShapeDtypeStruct((B, HW, C), jnp.float32),
        grid=(B,),
        in_specs=[
            batch,                                    # x
            full((HW, 1)), full((HW, 1)),             # conv column masks
            full((C, G)), full((G, C)),               # GroupNorm membership mats
            full((1, C)), full((1, C)),               # attn GroupNorm gamma/beta
            full((3, C, C)), full((3, 1, C)),         # packed q/k/v weights+bias
            full((C, C)), full((1, C)),               # to_out[0]
            full((1, C)), full((1, C)),               # norm1 gamma/beta
            full((9, C, C)), full((1, C)),            # conv1
            full((1, C)), full((1, C)),               # norm2 gamma/beta
            full((9, C, C)), full((1, C)),            # conv2
        ],
        out_specs=batch,
        scratch_shapes=[pltpu.VMEM((pad_rows, C), jnp.float32)],
        compiler_params=pltpu.CompilerParams(
            dimension_semantics=("parallel",),        # batch axis -> both TCs (v7x)
            vmem_limit_bytes=48 * 1024 * 1024,
        ),
    )(xs, mask_l, mask_r, p["mcg"], p["mgc"],
      p["attn_gn_g"], p["attn_gn_b"], p["wqkv"], p["bqkv"], p["wo"], p["bo"],
      p["norm1_g"], p["norm1_b"], p["conv1_w"], p["conv1_b"],
      p["norm2_g"], p["norm2_b"], p["conv2_w"], p["conv2_b"])

    return jnp.transpose(out.reshape(B, H, W, C), (0, 3, 1, 2))


# ----------------------------------------------------------------------------
# Deterministic parameter init (synthetic weights, matching module shapes)
# ----------------------------------------------------------------------------
def init_params(key, C, groups):
    G = groups
    assert C % G == 0
    gidx = jnp.arange(C) // (C // G)
    mcg = (gidx[:, None] == jnp.arange(G)[None, :]).astype(jnp.float32)   # (C, G)

    ks = jax.random.split(key, 18)
    lin = lambda k: jax.random.normal(k, (C, C), jnp.float32) * (C ** -0.5)  # (in,out)
    vec = lambda k, s=0.02: jax.random.normal(k, (1, C), jnp.float32) * s
    conv = lambda k: (jax.random.normal(k, (3, 3, C, C), jnp.float32) * 0.05
                      ).reshape(9, C, C)                                 # (ky*3+kx,in,out)

    scale = float(C) ** -0.5       # Attention softmax scale (dim_head = C), folded into q
    wqkv = jnp.stack([lin(ks[2]) * scale, lin(ks[4]), lin(ks[6])])       # (3, C, C)
    bqkv = jnp.stack([vec(ks[3]) * scale, vec(ks[5]), vec(ks[7])])       # (3, 1, C)

    return {
        "mcg": mcg, "mgc": mcg.T,
        # Attention: GroupNorm(affine) + packed to_q/to_k/to_v + to_out (all with bias)
        "attn_gn_g": jnp.ones((1, C), jnp.float32) + vec(ks[0], 0.1),
        "attn_gn_b": vec(ks[1], 0.1),
        "wqkv": wqkv, "bqkv": bqkv,
        "wo": lin(ks[8]), "bo": vec(ks[9]),
        # ResnetBlock2D: norm1, conv1(3x3), norm2, conv2(3x3)  (no shortcut: in==out)
        "norm1_g": jnp.ones((1, C), jnp.float32) + vec(ks[10], 0.1),
        "norm1_b": vec(ks[11], 0.1),
        "conv1_w": conv(ks[12]), "conv1_b": vec(ks[13], 0.01),
        "norm2_g": jnp.ones((1, C), jnp.float32) + vec(ks[14], 0.1),
        "norm2_b": vec(ks[15], 0.1),
        "conv2_w": conv(ks[16]), "conv2_b": vec(ks[17], 0.01),
    }


if __name__ == "__main__":
    # UNetMidBlock2D(in_channels=64) with default resnet_groups=32 -> C must be a
    # multiple of 32.  Small shapes: batch=2, channels=64, spatial=8x8.
    B, C, H, W = 2, 64, 8, 8
    GROUPS = 32

    key = jax.random.PRNGKey(0)
    k_x, k_p = jax.random.split(key)
    x = jax.random.normal(k_x, (B, C, H, W), dtype=jnp.float32)   # NCHW like PyTorch
    params = init_params(k_p, C, GROUPS)

    out = jax.jit(unet_mid_block2d)(x, params)
    jax.block_until_ready(out)
    assert out.shape == (B, C, H, W) and out.dtype == jnp.float32
    print("KERNEL_OK")
</pallas_src>

<mosaic_0001>
module attributes {stable_mosaic.version = 11 : i64} {
  func.func @_mid_block_kernel(%arg0: i32, %arg1: memref<1x64x64xf32, #tpu.memory_space<vmem>>, %arg2: memref<64x1xf32, #tpu.memory_space<vmem>>, %arg3: memref<64x1xf32, #tpu.memory_space<vmem>>, %arg4: memref<64x32xf32, #tpu.memory_space<vmem>>, %arg5: memref<32x64xf32, #tpu.memory_space<vmem>>, %arg6: memref<1x64xf32, #tpu.memory_space<vmem>>, %arg7: memref<1x64xf32, #tpu.memory_space<vmem>>, %arg8: memref<3x64x64xf32, #tpu.memory_space<vmem>>, %arg9: memref<3x1x64xf32, #tpu.memory_space<vmem>>, %arg10: memref<64x64xf32, #tpu.memory_space<vmem>>, %arg11: memref<1x64xf32, #tpu.memory_space<vmem>>, %arg12: memref<1x64xf32, #tpu.memory_space<vmem>>, %arg13: memref<1x64xf32, #tpu.memory_space<vmem>>, %arg14: memref<9x64x64xf32, #tpu.memory_space<vmem>>, %arg15: memref<1x64xf32, #tpu.memory_space<vmem>>, %arg16: memref<1x64xf32, #tpu.memory_space<vmem>>, %arg17: memref<1x64xf32, #tpu.memory_space<vmem>>, %arg18: memref<9x64x64xf32, #tpu.memory_space<vmem>>, %arg19: memref<1x64xf32, #tpu.memory_space<vmem>>, %arg20: memref<1x64x64xf32, #tpu.memory_space<vmem>>, %arg21: memref<96x64xf32, #tpu.memory_space<vmem>>) attributes {dimension_semantics = [#tpu.dimension_semantics<parallel>], iteration_bounds = array<i64: 2>, scalar_prefetch = 0 : i64, scratch_operands = 1 : i64, tpu.core_type = #tpu.core_type<tc>, window_params = [{transform_indices = @transform_0, window_bounds = array<i64: 1, 64, 64>}, {pipeline_mode = #tpu.pipeline_mode<synchronous>, transform_indices = @transform_1, window_bounds = array<i64: 64, 1>}, {pipeline_mode = #tpu.pipeline_mode<synchronous>, transform_indices = @transform_2, window_bounds = array<i64: 64, 1>}, {pipeline_mode = #tpu.pipeline_mode<synchronous>, transform_indices = @transform_3, window_bounds = array<i64: 64, 32>}, {pipeline_mode = #tpu.pipeline_mode<synchronous>, transform_indices = @transform_4, window_bounds = array<i64: 32, 64>}, {pipeline_mode = #tpu.pipeline_mode<synchronous>, transform_indices = @transform_5, window_bounds = array<i64: 1, 64>}, {pipeline_mode = #tpu.pipeline_mode<synchronous>, transform_indices = @transform_6, window_bounds = array<i64: 1, 64>}, {pipeline_mode = #tpu.pipeline_mode<synchronous>, transform_indices = @transform_7, window_bounds = array<i64: 3, 64, 64>}, {pipeline_mode = #tpu.pipeline_mode<synchronous>, transform_indices = @transform_8, window_bounds = array<i64: 3, 1, 64>}, {pipeline_mode = #tpu.pipeline_mode<synchronous>, transform_indices = @transform_9, window_bounds = array<i64: 64, 64>}, {pipeline_mode = #tpu.pipeline_mode<synchronous>, transform_indices = @transform_10, window_bounds = array<i64: 1, 64>}, {pipeline_mode = #tpu.pipeline_mode<synchronous>, transform_indices = @transform_11, window_bounds = array<i64: 1, 64>}, {pipeline_mode = #tpu.pipeline_mode<synchronous>, transform_indices = @transform_12, window_bounds = array<i64: 1, 64>}, {pipeline_mode = #tpu.pipeline_mode<synchronous>, transform_indices = @transform_13, window_bounds = array<i64: 9, 64, 64>}, {pipeline_mode = #tpu.pipeline_mode<synchronous>, transform_indices = @transform_14, window_bounds = array<i64: 1, 64>}, {pipeline_mode = #tpu.pipeline_mode<synchronous>, transform_indices = @transform_15, window_bounds = array<i64: 1, 64>}, {pipeline_mode = #tpu.pipeline_mode<synchronous>, transform_indices = @transform_16, window_bounds = array<i64: 1, 64>}, {pipeline_mode = #tpu.pipeline_mode<synchronous>, transform_indices = @transform_17, window_bounds = array<i64: 9, 64, 64>}, {pipeline_mode = #tpu.pipeline_mode<synchronous>, transform_indices = @transform_18, window_bounds = array<i64: 1, 64>}, {transform_indices = @transform_19, window_bounds = array<i64: 1, 64, 64>}]} {
    %cst = arith.constant 0.000000e+00 : f32
    %0 = vector.broadcast %cst : f32 to vector<96x64xf32>
    %c0 = arith.constant 0 : index
    %c0_0 = arith.constant 0 : index
    %1 = vector.load %arg21[%c0, %c0_0] : memref<96x64xf32, #tpu.memory_space<vmem>>, vector<96x64xf32>
    tpu.vector_store %arg21[%c0, %c0_0], %0 {strides = array<i32>} : memref<96x64xf32, #tpu.memory_space<vmem>>, vector<96x64xf32>,
    %c0_1 = arith.constant 0 : index
    %c0_2 = arith.constant 0 : index
    %2 = vector.load %arg2[%c0_1, %c0_2] : memref<64x1xf32, #tpu.memory_space<vmem>>, vector<64x1xf32>
    %c0_3 = arith.constant 0 : index
    %c0_4 = arith.constant 0 : index
    %3 = vector.load %arg3[%c0_3, %c0_4] : memref<64x1xf32, #tpu.memory_space<vmem>>, vector<64x1xf32>
    %c0_5 = arith.constant 0 : index
    %c0_6 = arith.constant 0 : index
    %4 = vector.load %arg4[%c0_5, %c0_6] : memref<64x32xf32, #tpu.memory_space<vmem>>, vector<64x32xf32>
    %c0_7 = arith.constant 0 : index
    %c0_8 = arith.constant 0 : index
    %5 = vector.load %arg5[%c0_7, %c0_8] : memref<32x64xf32, #tpu.memory_space<vmem>>, vector<32x64xf32>
    %c0_9 = arith.constant 0 : index
    %c0_10 = arith.constant 0 : index
    %c0_11 = arith.constant 0 : index
    %6 = vector.load %arg1[%c0_9, %c0_10, %c0_11] : memref<1x64x64xf32, #tpu.memory_space<vmem>>, vector<1x64x64xf32>
    %7 = vector.shape_cast %6 : vector<1x64x64xf32> to vector<64x64xf32>
    %c0_12 = arith.constant 0 : index
    %c0_13 = arith.constant 0 : index
    %8 = vector.load %arg6[%c0_12, %c0_13] : memref<1x64xf32, #tpu.memory_space<vmem>>, vector<1x64xf32>
    %c0_14 = arith.constant 0 : index
    %c0_15 = arith.constant 0 : index
    %9 = vector.load %arg7[%c0_14, %c0_15] : memref<1x64xf32, #tpu.memory_space<vmem>>, vector<1x64xf32>
    %cst_16 = arith.constant dense<0.000000e+00> : vector<64xf32>
    %10 = vector.multi_reduction <add>, %7, %cst_16 [0] : vector<64x64xf32> to vector<64xf32>
    %11 = vector.shape_cast %10 : vector<64xf32> to vector<1x64xf32>
    %cst_17 = arith.constant dense<0.000000e+00> : vector<1x32xf32>
    %12 = tpu.matmul %11, %4, %cst_17 {dimension_numbers = #tpu.dot_dimension_numbers<[1], [0], [0], [1], [0, 0, 1, 1], [], []>} : vector<1x64xf32>, vector<64x32xf32>, vector<1x32xf32> -> vector<1x32xf32>
    %cst_18 = arith.constant 7.812500e-03 : f32
    %13 = vector.broadcast %cst_18 : f32 to vector<1x32xf32>
    %14 = arith.mulf %12, %13 : vector<1x32xf32>
    %cst_19 = arith.constant dense<0.000000e+00> : vector<1x64xf32>
    %15 = tpu.matmul %14, %5, %cst_19 {dimension_numbers = #tpu.dot_dimension_numbers<[1], [0], [0], [1], [0, 0, 1, 1], [], []>} : vector<1x32xf32>, vector<32x64xf32>, vector<1x64xf32> -> vector<1x64xf32>
    %16 = vector.broadcast %15 : vector<1x64xf32> to vector<64x64xf32>
    %17 = arith.subf %7, %16 : vector<64x64xf32>
    %18 = arith.mulf %17, %17 : vector<64x64xf32>
    %cst_20 = arith.constant dense<0.000000e+00> : vector<64xf32>
    %19 = vector.multi_reduction <add>, %18, %cst_20 [0] : vector<64x64xf32> to vector<64xf32>
    %20 = vector.shape_cast %19 : vector<64xf32> to vector<1x64xf32>
    %cst_21 = arith.constant dense<0.000000e+00> : vector<1x32xf32>
    %21 = tpu.matmul %20, %4, %cst_21 {dimension_numbers = #tpu.dot_dimension_numbers<[1], [0], [0], [1], [0, 0, 1, 1], [], []>} : vector<1x64xf32>, vector<64x32xf32>, vector<1x32xf32> -> vector<1x32xf32>
    %cst_22 = arith.constant 7.812500e-03 : f32
    %22 = vector.broadcast %cst_22 : f32 to vector<1x32xf32>
    %23 = arith.mulf %21, %22 : vector<1x32xf32>
    %cst_23 = arith.constant dense<0.000000e+00> : vector<1x64xf32>
    %24 = tpu.matmul %23, %5, %cst_23 {dimension_numbers = #tpu.dot_dimension_numbers<[1], [0], [0], [1], [0, 0, 1, 1], [], []>} : vector<1x32xf32>, vector<32x64xf32>, vector<1x64xf32> -> vector<1x64xf32>
    %cst_24 = arith.constant 9.99999997E-7 : f32
    %25 = vector.broadcast %cst_24 : f32 to vector<1x64xf32>
    %26 = arith.addf %24, %25 : vector<1x64xf32>
    %27 = math.rsqrt %26 : vector<1x64xf32>
    %28 = vector.broadcast %27 : vector<1x64xf32> to vector<64x64xf32>
    %29 = arith.mulf %17, %28 : vector<64x64xf32>
    %30 = vector.broadcast %8 : vector<1x64xf32> to vector<64x64xf32>
    %31 = arith.mulf %29, %30 : vector<64x64xf32>
    %32 = vector.broadcast %9 : vector<1x64xf32> to vector<64x64xf32>
    %33 = arith.addf %31, %32 : vector<64x64xf32>
    %c0_25 = arith.constant 0 : index
    %c0_26 = arith.constant 0 : index
    %c0_27 = arith.constant 0 : index
    %34 = vector.load %arg8[%c0_25, %c0_26, %c0_27] : memref<3x64x64xf32, #tpu.memory_space<vmem>>, vector<1x64x64xf32>
    %35 = vector.shape_cast %34 : vector<1x64x64xf32> to vector<64x64xf32>
    %cst_28 = arith.constant dense<0.000000e+00> : vector<64x64xf32>
    %36 = tpu.matmul %33, %35, %cst_28 {dimension_numbers = #tpu.dot_dimension_numbers<[1], [0], [0], [1], [0, 0, 1, 1], [], []>} : vector<64x64xf32>, vector<64x64xf32>, vector<64x64xf32> -> vector<64x64xf32>
    %c0_29 = arith.constant 0 : index
    %c0_30 = arith.constant 0 : index
    %c0_31 = arith.constant 0 : index
    %37 = vector.load %arg9[%c0_29, %c0_30, %c0_31] : memref<3x1x64xf32, #tpu.memory_space<vmem>>, vector<1x1x64xf32>
    %38 = vector.shape_cast %37 : vector<1x1x64xf32> to vector<1x64xf32>
    %39 = vector.broadcast %38 : vector<1x64xf32> to vector<64x64xf32>
    %40 = arith.addf %36, %39 : vector<64x64xf32>
    %c1 = arith.constant 1 : index
    %c0_32 = arith.constant 0 : index
    %c0_33 = arith.constant 0 : index
    %41 = vector.load %arg8[%c1, %c0_32, %c0_33] : memref<3x64x64xf32, #tpu.memory_space<vmem>>, vector<1x64x64xf32>
    %42 = vector.shape_cast %41 : vector<1x64x64xf32> to vector<64x64xf32>
    %cst_34 = arith.constant dense<0.000000e+00> : vector<64x64xf32>
    %43 = tpu.matmul %33, %42, %cst_34 {dimension_numbers = #tpu.dot_dimension_numbers<[1], [0], [0], [1], [0, 0, 1, 1], [], []>} : vector<64x64xf32>, vector<64x64xf32>, vector<64x64xf32> -> vector<64x64xf32>
    %c1_35 = arith.constant 1 : index
    %c0_36 = arith.constant 0 : index
    %c0_37 = arith.constant 0 : index
    %44 = vector.load %arg9[%c1_35, %c0_36, %c0_37] : memref<3x1x64xf32, #tpu.memory_space<vmem>>, vector<1x1x64xf32>
    %45 = vector.shape_cast %44 : vector<1x1x64xf32> to vector<1x64xf32>
    %46 = vector.broadcast %45 : vector<1x64xf32> to vector<64x64xf32>
    %47 = arith.addf %43, %46 : vector<64x64xf32>
    %c2 = arith.constant 2 : index
    %c0_38 = arith.constant 0 : index
    %c0_39 = arith.constant 0 : index
    %48 = vector.load %arg8[%c2, %c0_38, %c0_39] : memref<3x64x64xf32, #tpu.memory_space<vmem>>, vector<1x64x64xf32>
    %49 = vector.shape_cast %48 : vector<1x64x64xf32> to vector<64x64xf32>
    %cst_40 = arith.constant dense<0.000000e+00> : vector<64x64xf32>
    %50 = tpu.matmul %33, %49, %cst_40 {dimension_numbers = #tpu.dot_dimension_numbers<[1], [0], [0], [1], [0, 0, 1, 1], [], []>} : vector<64x64xf32>, vector<64x64xf32>, vector<64x64xf32> -> vector<64x64xf32>
    %c2_41 = arith.constant 2 : index
    %c0_42 = arith.constant 0 : index
    %c0_43 = arith.constant 0 : index
    %51 = vector.load %arg9[%c2_41, %c0_42, %c0_43] : memref<3x1x64xf32, #tpu.memory_space<vmem>>, vector<1x1x64xf32>
    %52 = vector.shape_cast %51 : vector<1x1x64xf32> to vector<1x64xf32>
    %53 = vector.broadcast %52 : vector<1x64xf32> to vector<64x64xf32>
    %54 = arith.addf %50, %53 : vector<64x64xf32>
    %cst_44 = arith.constant dense<0.000000e+00> : vector<64x64xf32>
    %55 = tpu.matmul %40, %47, %cst_44 {dimension_numbers = #tpu.dot_dimension_numbers<[1], [1], [0], [0], [0, 0, 1, 0], [], []>} : vector<64x64xf32>, vector<64x64xf32>, vector<64x64xf32> -> vector<64x64xf32>
    %cst_45 = arith.constant dense<0xFF800000> : vector<64xf32>
    %56 = vector.multi_reduction <maximumf>, %55, %cst_45 [1] : vector<64x64xf32> to vector<64xf32>
    %57 = vector.shape_cast %56 : vector<64xf32> to vector<64x1xf32>
    %58 = vector.broadcast %57 : vector<64x1xf32> to vector<64x64xf32>
    %59 = arith.subf %55, %58 : vector<64x64xf32>
    %60 = math.exp %59 : vector<64x64xf32>
    %cst_46 = arith.constant dense<0.000000e+00> : vector<64xf32>
    %61 = vector.multi_reduction <add>, %60, %cst_46 [1] : vector<64x64xf32> to vector<64xf32>
    %62 = vector.shape_cast %61 : vector<64xf32> to vector<64x1xf32>
    %63 = tpu.reciprocal %62 : vector<64x1xf32> -> vector<64x1xf32>
    %64 = vector.broadcast %63 : vector<64x1xf32> to vector<64x64xf32>
    %65 = arith.mulf %60, %64 : vector<64x64xf32>
    %cst_47 = arith.constant dense<0.000000e+00> : vector<64x64xf32>
    %66 = tpu.matmul %65, %54, %cst_47 {dimension_numbers = #tpu.dot_dimension_numbers<[1], [0], [0], [1], [0, 0, 1, 1], [], []>} : vector<64x64xf32>, vector<64x64xf32>, vector<64x64xf32> -> vector<64x64xf32>
    %c0_48 = arith.constant 0 : index
    %c0_49 = arith.constant 0 : index
    %67 = vector.load %arg10[%c0_48, %c0_49] : memref<64x64xf32, #tpu.memory_space<vmem>>, vector<64x64xf32>
    %cst_50 = arith.constant dense<0.000000e+00> : vector<64x64xf32>
    %68 = tpu.matmul %66, %67, %cst_50 {dimension_numbers = #tpu.dot_dimension_numbers<[1], [0], [0], [1], [0, 0, 1, 1], [], []>} : vector<64x64xf32>, vector<64x64xf32>, vector<64x64xf32> -> vector<64x64xf32>
    %c0_51 = arith.constant 0 : index
    %c0_52 = arith.constant 0 : index
    %69 = vector.load %arg11[%c0_51, %c0_52] : memref<1x64xf32, #tpu.memory_space<vmem>>, vector<1x64xf32>
    %70 = vector.broadcast %69 : vector<1x64xf32> to vector<64x64xf32>
    %71 = arith.addf %68, %70 : vector<64x64xf32>
    %72 = arith.addf %71, %7 : vector<64x64xf32>
    %c0_53 = arith.constant 0 : index
    %c0_54 = arith.constant 0 : index
    %73 = vector.load %arg12[%c0_53, %c0_54] : memref<1x64xf32, #tpu.memory_space<vmem>>, vector<1x64xf32>
    %c0_55 = arith.constant 0 : index
    %c0_56 = arith.constant 0 : index
    %74 = vector.load %arg13[%c0_55, %c0_56] : memref<1x64xf32, #tpu.memory_space<vmem>>, vector<1x64xf32>
    %cst_57 = arith.constant dense<0.000000e+00> : vector<64xf32>
    %75 = vector.multi_reduction <add>, %72, %cst_57 [0] : vector<64x64xf32> to vector<64xf32>
    %76 = vector.shape_cast %75 : vector<64xf32> to vector<1x64xf32>
    %cst_58 = arith.constant dense<0.000000e+00> : vector<1x32xf32>
    %77 = tpu.matmul %76, %4, %cst_58 {dimension_numbers = #tpu.dot_dimension_numbers<[1], [0], [0], [1], [0, 0, 1, 1], [], []>} : vector<1x64xf32>, vector<64x32xf32>, vector<1x32xf32> -> vector<1x32xf32>
    %cst_59 = arith.constant 7.812500e-03 : f32
    %78 = vector.broadcast %cst_59 : f32 to vector<1x32xf32>
    %79 = arith.mulf %77, %78 : vector<1x32xf32>
    %cst_60 = arith.constant dense<0.000000e+00> : vector<1x64xf32>
    %80 = tpu.matmul %79, %5, %cst_60 {dimension_numbers = #tpu.dot_dimension_numbers<[1], [0], [0], [1], [0, 0, 1, 1], [], []>} : vector<1x32xf32>, vector<32x64xf32>, vector<1x64xf32> -> vector<1x64xf32>
    %81 = vector.broadcast %80 : vector<1x64xf32> to vector<64x64xf32>
    %82 = arith.subf %72, %81 : vector<64x64xf32>
    %83 = arith.mulf %82, %82 : vector<64x64xf32>
    %cst_61 = arith.constant dense<0.000000e+00> : vector<64xf32>
    %84 = vector.multi_reduction <add>, %83, %cst_61 [0] : vector<64x64xf32> to vector<64xf32>
    %85 = vector.shape_cast %84 : vector<64xf32> to vector<1x64xf32>
    %cst_62 = arith.constant dense<0.000000e+00> : vector<1x32xf32>
    %86 = tpu.matmul %85, %4, %cst_62 {dimension_numbers = #tpu.dot_dimension_numbers<[1], [0], [0], [1], [0, 0, 1, 1], [], []>} : vector<1x64xf32>, vector<64x32xf32>, vector<1x32xf32> -> vector<1x32xf32>
    %cst_63 = arith.constant 7.812500e-03 : f32
    %87 = vector.broadcast %cst_63 : f32 to vector<1x32xf32>
    %88 = arith.mulf %86, %87 : vector<1x32xf32>
    %cst_64 = arith.constant dense<0.000000e+00> : vector<1x64xf32>
    %89 = tpu.matmul %88, %5, %cst_64 {dimension_numbers = #tpu.dot_dimension_numbers<[1], [0], [0], [1], [0, 0, 1, 1], [], []>} : vector<1x32xf32>, vector<32x64xf32>, vector<1x64xf32> -> vector<1x64xf32>
    %cst_65 = arith.constant 9.99999997E-7 : f32
    %90 = vector.broadcast %cst_65 : f32 to vector<1x64xf32>
    %91 = arith.addf %89, %90 : vector<1x64xf32>
    %92 = math.rsqrt %91 : vector<1x64xf32>
    %93 = vector.broadcast %92 : vector<1x64xf32> to vector<64x64xf32>
    %94 = arith.mulf %82, %93 : vector<64x64xf32>
    %95 = vector.broadcast %73 : vector<1x64xf32> to vector<64x64xf32>
    %96 = arith.mulf %94, %95 : vector<64x64xf32>
    %97 = vector.broadcast %74 : vector<1x64xf32> to vector<64x64xf32>
    %98 = arith.addf %96, %97 : vector<64x64xf32>
    %c16 = arith.constant 16 : index
    %c0_66 = arith.constant 0 : index
    %99 = vector.load %arg21[%c16, %c0_66] : memref<96x64xf32, #tpu.memory_space<vmem>>, vector<64x64xf32>
    tpu.vector_store %arg21[%c16, %c0_66], %98 {strides = array<i32>} : memref<96x64xf32, #tpu.memory_space<vmem>>, vector<64x64xf32>,
    %c7 = arith.constant 7 : index
    %c0_67 = arith.constant 0 : index
    %100 = vector.load %arg21[%c7, %c0_67] : memref<96x64xf32, #tpu.memory_space<vmem>>, vector<64x64xf32>
    %101 = vector.broadcast %2 : vector<64x1xf32> to vector<64x64xf32>
    %102 = arith.mulf %100, %101 : vector<64x64xf32>
    %c0_68 = arith.constant 0 : index
    %c0_69 = arith.constant 0 : index
    %c0_70 = arith.constant 0 : index
    %103 = vector.load %arg14[%c0_68, %c0_69, %c0_70] : memref<9x64x64xf32, #tpu.memory_space<vmem>>, vector<1x64x64xf32>
    %104 = vector.shape_cast %103 : vector<1x64x64xf32> to vector<64x64xf32>
    %cst_71 = arith.constant dense<0.000000e+00> : vector<64x64xf32>
    %105 = tpu.matmul %102, %104, %cst_71 {dimension_numbers = #tpu.dot_dimension_numbers<[1], [0], [0], [1], [0, 0, 1, 1], [], []>} : vector<64x64xf32>, vector<64x64xf32>, vector<64x64xf32> -> vector<64x64xf32>
    %c8 = arith.constant 8 : index
    %c0_72 = arith.constant 0 : index
    %106 = vector.load %arg21[%c8, %c0_72] : memref<96x64xf32, #tpu.memory_space<vmem>>, vector<64x64xf32>
    %c1_73 = arith.constant 1 : index
    %c0_74 = arith.constant 0 : index
    %c0_75 = arith.constant 0 : index
    %107 = vector.load %arg14[%c1_73, %c0_74, %c0_75] : memref<9x64x64xf32, #tpu.memory_space<vmem>>, vector<1x64x64xf32>
    %108 = vector.shape_cast %107 : vector<1x64x64xf32> to vector<64x64xf32>
    %cst_76 = arith.constant dense<0.000000e+00> : vector<64x64xf32>
    %109 = tpu.matmul %106, %108, %cst_76 {dimension_numbers = #tpu.dot_dimension_numbers<[1], [0], [0], [1], [0, 0, 1, 1], [], []>} : vector<64x64xf32>, vector<64x64xf32>, vector<64x64xf32> -> vector<64x64xf32>
    %110 = arith.addf %105, %109 : vector<64x64xf32>
    %c9 = arith.constant 9 : index
    %c0_77 = arith.constant 0 : index
    %111 = vector.load %arg21[%c9, %c0_77] : memref<96x64xf32, #tpu.memory_space<vmem>>, vector<64x64xf32>
    %112 = vector.broadcast %3 : vector<64x1xf32> to vector<64x64xf32>
    %113 = arith.mulf %111, %112 : vector<64x64xf32>
    %c2_78 = arith.constant 2 : index
    %c0_79 = arith.constant 0 : index
    %c0_80 = arith.constant 0 : index
    %114 = vector.load %arg14[%c2_78, %c0_79, %c0_80] : memref<9x64x64xf32, #tpu.memory_space<vmem>>, vector<1x64x64xf32>
    %115 = vector.shape_cast %114 : vector<1x64x64xf32> to vector<64x64xf32>
    %cst_81 = arith.constant dense<0.000000e+00> : vector<64x64xf32>
    %116 = tpu.matmul %113, %115, %cst_81 {dimension_numbers = #tpu.dot_dimension_numbers<[1], [0], [0], [1], [0, 0, 1, 1], [], []>} : vector<64x64xf32>, vector<64x64xf32>, vector<64x64xf32> -> vector<64x64xf32>
    %117 = arith.addf %110, %116 : vector<64x64xf32>
    %c15 = arith.constant 15 : index
    %c0_82 = arith.constant 0 : index
    %118 = vector.load %arg21[%c15, %c0_82] : memref<96x64xf32, #tpu.memory_space<vmem>>, vector<64x64xf32>
    %119 = vector.broadcast %2 : vector<64x1xf32> to vector<64x64xf32>
    %120 = arith.mulf %118, %119 : vector<64x64xf32>
    %c3 = arith.constant 3 : index
    %c0_83 = arith.constant 0 : index
    %c0_84 = arith.constant 0 : index
    %121 = vector.load %arg14[%c3, %c0_83, %c0_84] : memref<9x64x64xf32, #tpu.memory_space<vmem>>, vector<1x64x64xf32>
    %122 = vector.shape_cast %121 : vector<1x64x64xf32> to vector<64x64xf32>
    %cst_85 = arith.constant dense<0.000000e+00> : vector<64x64xf32>
    %123 = tpu.matmul %120, %122, %cst_85 {dimension_numbers = #tpu.dot_dimension_numbers<[1], [0], [0], [1], [0, 0, 1, 1], [], []>} : vector<64x64xf32>, vector<64x64xf32>, vector<64x64xf32> -> vector<64x64xf32>
    %124 = arith.addf %117, %123 : vector<64x64xf32>
    %c16_86 = arith.constant 16 : index
    %c0_87 = arith.constant 0 : index
    %125 = vector.load %arg21[%c16_86, %c0_87] : memref<96x64xf32, #tpu.memory_space<vmem>>, vector<64x64xf32>
    %c4 = arith.constant 4 : index
    %c0_88 = arith.constant 0 : index
    %c0_89 = arith.constant 0 : index
    %126 = vector.load %arg14[%c4, %c0_88, %c0_89] : memref<9x64x64xf32, #tpu.memory_space<vmem>>, vector<1x64x64xf32>
    %127 = vector.shape_cast %126 : vector<1x64x64xf32> to vector<64x64xf32>
    %cst_90 = arith.constant dense<0.000000e+00> : vector<64x64xf32>
    %128 = tpu.matmul %125, %127, %cst_90 {dimension_numbers = #tpu.dot_dimension_numbers<[1], [0], [0], [1], [0, 0, 1, 1], [], []>} : vector<64x64xf32>, vector<64x64xf32>, vector<64x64xf32> -> vector<64x64xf32>
    %129 = arith.addf %124, %128 : vector<64x64xf32>
    %c17 = arith.constant 17 : index
    %c0_91 = arith.constant 0 : index
    %130 = vector.load %arg21[%c17, %c0_91] : memref<96x64xf32, #tpu.memory_space<vmem>>, vector<64x64xf32>
    %131 = vector.broadcast %3 : vector<64x1xf32> to vector<64x64xf32>
    %132 = arith.mulf %130, %131 : vector<64x64xf32>
    %c5 = arith.constant 5 : index
    %c0_92 = arith.constant 0 : index
    %c0_93 = arith.constant 0 : index
    %133 = vector.load %arg14[%c5, %c0_92, %c0_93] : memref<9x64x64xf32, #tpu.memory_space<vmem>>, vector<1x64x64xf32>
    %134 = vector.shape_cast %133 : vector<1x64x64xf32> to vector<64x64xf32>
    %cst_94 = arith.constant dense<0.000000e+00> : vector<64x64xf32>
    %135 = tpu.matmul %132, %134, %cst_94 {dimension_numbers = #tpu.dot_dimension_numbers<[1], [0], [0], [1], [0, 0, 1, 1], [], []>} : vector<64x64xf32>, vector<64x64xf32>, vector<64x64xf32> -> vector<64x64xf32>
    %136 = arith.addf %129, %135 : vector<64x64xf32>
    %c23 = arith.constant 23 : index
    %c0_95 = arith.constant 0 : index
    %137 = vector.load %arg21[%c23, %c0_95] : memref<96x64xf32, #tpu.memory_space<vmem>>, vector<64x64xf32>
    %138 = vector.broadcast %2 : vector<64x1xf32> to vector<64x64xf32>
    %139 = arith.mulf %137, %138 : vector<64x64xf32>
    %c6 = arith.constant 6 : index
    %c0_96 = arith.constant 0 : index
    %c0_97 = arith.constant 0 : index
    %140 = vector.load %arg14[%c6, %c0_96, %c0_97] : memref<9x64x64xf32, #tpu.memory_space<vmem>>, vector<1x64x64xf32>
    %141 = vector.shape_cast %140 : vector<1x64x64xf32> to vector<64x64xf32>
    %cst_98 = arith.constant dense<0.000000e+00> : vector<64x64xf32>
    %142 = tpu.matmul %139, %141, %cst_98 {dimension_numbers = #tpu.dot_dimension_numbers<[1], [0], [0], [1], [0, 0, 1, 1], [], []>} : vector<64x64xf32>, vector<64x64xf32>, vector<64x64xf32> -> vector<64x64xf32>
    %143 = arith.addf %136, %142 : vector<64x64xf32>
    %c24 = arith.constant 24 : index
    %c0_99 = arith.constant 0 : index
    %144 = vector.load %arg21[%c24, %c0_99] : memref<96x64xf32, #tpu.memory_space<vmem>>, vector<64x64xf32>
    %c7_100 = arith.constant 7 : index
    %c0_101 = arith.constant 0 : index
    %c0_102 = arith.constant 0 : index
    %145 = vector.load %arg14[%c7_100, %c0_101, %c0_102] : memref<9x64x64xf32, #tpu.memory_space<vmem>>, vector<1x64x64xf32>
    %146 = vector.shape_cast %145 : vector<1x64x64xf32> to vector<64x64xf32>
    %cst_103 = arith.constant dense<0.000000e+00> : vector<64x64xf32>
    %147 = tpu.matmul %144, %146, %cst_103 {dimension_numbers = #tpu.dot_dimension_numbers<[1], [0], [0], [1], [0, 0, 1, 1], [], []>} : vector<64x64xf32>, vector<64x64xf32>, vector<64x64xf32> -> vector<64x64xf32>
    %148 = arith.addf %143, %147 : vector<64x64xf32>
    %c25 = arith.constant 25 : index
    %c0_104 = arith.constant 0 : index
    %149 = vector.load %arg21[%c25, %c0_104] : memref<96x64xf32, #tpu.memory_space<vmem>>, vector<64x64xf32>
    %150 = vector.broadcast %3 : vector<64x1xf32> to vector<64x64xf32>
    %151 = arith.mulf %149, %150 : vector<64x64xf32>
    %c8_105 = arith.constant 8 : index
    %c0_106 = arith.constant 0 : index
    %c0_107 = arith.constant 0 : index
    %152 = vector.load %arg14[%c8_105, %c0_106, %c0_107] : memref<9x64x64xf32, #tpu.memory_space<vmem>>, vector<1x64x64xf32>
    %153 = vector.shape_cast %152 : vector<1x64x64xf32> to vector<64x64xf32>
    %cst_108 = arith.constant dense<0.000000e+00> : vector<64x64xf32>
    %154 = tpu.matmul %151, %153, %cst_108 {dimension_numbers = #tpu.dot_dimension_numbers<[1], [0], [0], [1], [0, 0, 1, 1], [], []>} : vector<64x64xf32>, vector<64x64xf32>, vector<64x64xf32> -> vector<64x64xf32>
    %155 = arith.addf %148, %154 : vector<64x64xf32>
    %c0_109 = arith.constant 0 : index
    %c0_110 = arith.constant 0 : index
    %156 = vector.load %arg15[%c0_109, %c0_110] : memref<1x64xf32, #tpu.memory_space<vmem>>, vector<1x64xf32>
    %157 = vector.broadcast %156 : vector<1x64xf32> to vector<64x64xf32>
    %158 = arith.addf %155, %157 : vector<64x64xf32>
    %c0_111 = arith.constant 0 : index
    %c0_112 = arith.constant 0 : index
    %159 = vector.load %arg16[%c0_111, %c0_112] : memref<1x64xf32, #tpu.memory_space<vmem>>, vector<1x64xf32>
    %c0_113 = arith.constant 0 : index
    %c0_114 = arith.constant 0 : index
    %160 = vector.load %arg17[%c0_113, %c0_114] : memref<1x64xf32, #tpu.memory_space<vmem>>, vector<1x64xf32>
    %cst_115 = arith.constant dense<0.000000e+00> : vector<64xf32>
    %161 = vector.multi_reduction <add>, %158, %cst_115 [0] : vector<64x64xf32> to vector<64xf32>
    %162 = vector.shape_cast %161 : vector<64xf32> to vector<1x64xf32>
    %cst_116 = arith.constant dense<0.000000e+00> : vector<1x32xf32>
    %163 = tpu.matmul %162, %4, %cst_116 {dimension_numbers = #tpu.dot_dimension_numbers<[1], [0], [0], [1], [0, 0, 1, 1], [], []>} : vector<1x64xf32>, vector<64x32xf32>, vector<1x32xf32> -> vector<1x32xf32>
    %cst_117 = arith.constant 7.812500e-03 : f32
    %164 = vector.broadcast %cst_117 : f32 to vector<1x32xf32>
    %165 = arith.mulf %163, %164 : vector<1x32xf32>
    %cst_118 = arith.constant dense<0.000000e+00> : vector<1x64xf32>
    %166 = tpu.matmul %165, %5, %cst_118 {dimension_numbers = #tpu.dot_dimension_numbers<[1], [0], [0], [1], [0, 0, 1, 1], [], []>} : vector<1x32xf32>, vector<32x64xf32>, vector<1x64xf32> -> vector<1x64xf32>
    %167 = vector.broadcast %166 : vector<1x64xf32> to vector<64x64xf32>
    %168 = arith.subf %158, %167 : vector<64x64xf32>
    %169 = arith.mulf %168, %168 : vector<64x64xf32>
    %cst_119 = arith.constant dense<0.000000e+00> : vector<64xf32>
    %170 = vector.multi_reduction <add>, %169, %cst_119 [0] : vector<64x64xf32> to vector<64xf32>
    %171 = vector.shape_cast %170 : vector<64xf32> to vector<1x64xf32>
    %cst_120 = arith.constant dense<0.000000e+00> : vector<1x32xf32>
    %172 = tpu.matmul %171, %4, %cst_120 {dimension_numbers = #tpu.dot_dimension_numbers<[1], [0], [0], [1], [0, 0, 1, 1], [], []>} : vector<1x64xf32>, vector<64x32xf32>, vector<1x32xf32> -> vector<1x32xf32>
    %cst_121 = arith.constant 7.812500e-03 : f32
    %173 = vector.broadcast %cst_121 : f32 to vector<1x32xf32>
    %174 = arith.mulf %172, %173 : vector<1x32xf32>
    %cst_122 = arith.constant dense<0.000000e+00> : vector<1x64xf32>
    %175 = tpu.matmul %174, %5, %cst_122 {dimension_numbers = #tpu.dot_dimension_numbers<[1], [0], [0], [1], [0, 0, 1, 1], [], []>} : vector<1x32xf32>, vector<32x64xf32>, vector<1x64xf32> -> vector<1x64xf32>
    %cst_123 = arith.constant 9.99999997E-7 : f32
    %176 = vector.broadcast %cst_123 : f32 to vector<1x64xf32>
    %177 = arith.addf %175, %176 : vector<1x64xf32>
    %178 = math.rsqrt %177 : vector<1x64xf32>
    %179 = vector.broadcast %178 : vector<1x64xf32> to vector<64x64xf32>
    %180 = arith.mulf %168, %179 : vector<64x64xf32>
    %181 = vector.broadcast %159 : vector<1x64xf32> to vector<64x64xf32>
    %182 = arith.mulf %180, %181 : vector<64x64xf32>
    %183 = vector.broadcast %160 : vector<1x64xf32> to vector<64x64xf32>
    %184 = arith.addf %182, %183 : vector<64x64xf32>
    %c16_124 = arith.constant 16 : index
    %c0_125 = arith.constant 0 : index
    %185 = vector.load %arg21[%c16_124, %c0_125] : memref<96x64xf32, #tpu.memory_space<vmem>>, vector<64x64xf32>
    tpu.vector_store %arg21[%c16_124, %c0_125], %184 {strides = array<i32>} : memref<96x64xf32, #tpu.memory_space<vmem>>, vector<64x64xf32>,
    %c7_126 = arith.constant 7 : index
    %c0_127 = arith.constant 0 : index
    %186 = vector.load %arg21[%c7_126, %c0_127] : memref<96x64xf32, #tpu.memory_space<vmem>>, vector<64x64xf32>
    %187 = vector.broadcast %2 : vector<64x1xf32> to vector<64x64xf32>
    %188 = arith.mulf %186, %187 : vector<64x64xf32>
    %c0_128 = arith.constant 0 : index
    %c0_129 = arith.constant 0 : index
    %c0_130 = arith.constant 0 : index
    %189 = vector.load %arg18[%c0_128, %c0_129, %c0_130] : memref<9x64x64xf32, #tpu.memory_space<vmem>>, vector<1x64x64xf32>
    %190 = vector.shape_cast %189 : vector<1x64x64xf32> to vector<64x64xf32>
    %cst_131 = arith.constant dense<0.000000e+00> : vector<64x64xf32>
    %191 = tpu.matmul %188, %190, %cst_131 {dimension_numbers = #tpu.dot_dimension_numbers<[1], [0], [0], [1], [0, 0, 1, 1], [], []>} : vector<64x64xf32>, vector<64x64xf32>, vector<64x64xf32> -> vector<64x64xf32>
    %c8_132 = arith.constant 8 : index
    %c0_133 = arith.constant 0 : index
    %192 = vector.load %arg21[%c8_132, %c0_133] : memref<96x64xf32, #tpu.memory_space<vmem>>, vector<64x64xf32>
    %c1_134 = arith.constant 1 : index
    %c0_135 = arith.constant 0 : index
    %c0_136 = arith.constant 0 : index
    %193 = vector.load %arg18[%c1_134, %c0_135, %c0_136] : memref<9x64x64xf32, #tpu.memory_space<vmem>>, vector<1x64x64xf32>
    %194 = vector.shape_cast %193 : vector<1x64x64xf32> to vector<64x64xf32>
    %cst_137 = arith.constant dense<0.000000e+00> : vector<64x64xf32>
    %195 = tpu.matmul %192, %194, %cst_137 {dimension_numbers = #tpu.dot_dimension_numbers<[1], [0], [0], [1], [0, 0, 1, 1], [], []>} : vector<64x64xf32>, vector<64x64xf32>, vector<64x64xf32> -> vector<64x64xf32>
    %196 = arith.addf %191, %195 : vector<64x64xf32>
    %c9_138 = arith.constant 9 : index
    %c0_139 = arith.constant 0 : index
    %197 = vector.load %arg21[%c9_138, %c0_139] : memref<96x64xf32, #tpu.memory_space<vmem>>, vector<64x64xf32>
    %198 = vector.broadcast %3 : vector<64x1xf32> to vector<64x64xf32>
    %199 = arith.mulf %197, %198 : vector<64x64xf32>
    %c2_140 = arith.constant 2 : index
    %c0_141 = arith.constant 0 : index
    %c0_142 = arith.constant 0 : index
    %200 = vector.load %arg18[%c2_140, %c0_141, %c0_142] : memref<9x64x64xf32, #tpu.memory_space<vmem>>, vector<1x64x64xf32>
    %201 = vector.shape_cast %200 : vector<1x64x64xf32> to vector<64x64xf32>
    %cst_143 = arith.constant dense<0.000000e+00> : vector<64x64xf32>
    %202 = tpu.matmul %199, %201, %cst_143 {dimension_numbers = #tpu.dot_dimension_numbers<[1], [0], [0], [1], [0, 0, 1, 1], [], []>} : vector<64x64xf32>, vector<64x64xf32>, vector<64x64xf32> -> vector<64x64xf32>
    %203 = arith.addf %196, %202 : vector<64x64xf32>
    %c15_144 = arith.constant 15 : index
    %c0_145 = arith.constant 0 : index
    %204 = vector.load %arg21[%c15_144, %c0_145] : memref<96x64xf32, #tpu.memory_space<vmem>>, vector<64x64xf32>
    %205 = vector.broadcast %2 : vector<64x1xf32> to vector<64x64xf32>
    %206 = arith.mulf %204, %205 : vector<64x64xf32>
    %c3_146 = arith.constant 3 : index
    %c0_147 = arith.constant 0 : index
    %c0_148 = arith.constant 0 : index
    %207 = vector.load %arg18[%c3_146, %c0_147, %c0_148] : memref<9x64x64xf32, #tpu.memory_space<vmem>>, vector<1x64x64xf32>
    %208 = vector.shape_cast %207 : vector<1x64x64xf32> to vector<64x64xf32>
    %cst_149 = arith.constant dense<0.000000e+00> : vector<64x64xf32>
    %209 = tpu.matmul %206, %208, %cst_149 {dimension_numbers = #tpu.dot_dimension_numbers<[1], [0], [0], [1], [0, 0, 1, 1], [], []>} : vector<64x64xf32>, vector<64x64xf32>, vector<64x64xf32> -> vector<64x64xf32>
    %210 = arith.addf %203, %209 : vector<64x64xf32>
    %c16_150 = arith.constant 16 : index
    %c0_151 = arith.constant 0 : index
    %211 = vector.load %arg21[%c16_150, %c0_151] : memref<96x64xf32, #tpu.memory_space<vmem>>, vector<64x64xf32>
    %c4_152 = arith.constant 4 : index
    %c0_153 = arith.constant 0 : index
    %c0_154 = arith.constant 0 : index
    %212 = vector.load %arg18[%c4_152, %c0_153, %c0_154] : memref<9x64x64xf32, #tpu.memory_space<vmem>>, vector<1x64x64xf32>
    %213 = vector.shape_cast %212 : vector<1x64x64xf32> to vector<64x64xf32>
    %cst_155 = arith.constant dense<0.000000e+00> : vector<64x64xf32>
    %214 = tpu.matmul %211, %213, %cst_155 {dimension_numbers = #tpu.dot_dimension_numbers<[1], [0], [0], [1], [0, 0, 1, 1], [], []>} : vector<64x64xf32>, vector<64x64xf32>, vector<64x64xf32> -> vector<64x64xf32>
    %215 = arith.addf %210, %214 : vector<64x64xf32>
    %c17_156 = arith.constant 17 : index
    %c0_157 = arith.constant 0 : index
    %216 = vector.load %arg21[%c17_156, %c0_157] : memref<96x64xf32, #tpu.memory_space<vmem>>, vector<64x64xf32>
    %217 = vector.broadcast %3 : vector<64x1xf32> to vector<64x64xf32>
    %218 = arith.mulf %216, %217 : vector<64x64xf32>
    %c5_158 = arith.constant 5 : index
    %c0_159 = arith.constant 0 : index
    %c0_160 = arith.constant 0 : index
    %219 = vector.load %arg18[%c5_158, %c0_159, %c0_160] : memref<9x64x64xf32, #tpu.memory_space<vmem>>, vector<1x64x64xf32>
    %220 = vector.shape_cast %219 : vector<1x64x64xf32> to vector<64x64xf32>
    %cst_161 = arith.constant dense<0.000000e+00> : vector<64x64xf32>
    %221 = tpu.matmul %218, %220, %cst_161 {dimension_numbers = #tpu.dot_dimension_numbers<[1], [0], [0], [1], [0, 0, 1, 1], [], []>} : vector<64x64xf32>, vector<64x64xf32>, vector<64x64xf32> -> vector<64x64xf32>
    %222 = arith.addf %215, %221 : vector<64x64xf32>
    %c23_162 = arith.constant 23 : index
    %c0_163 = arith.constant 0 : index
    %223 = vector.load %arg21[%c23_162, %c0_163] : memref<96x64xf32, #tpu.memory_space<vmem>>, vector<64x64xf32>
    %224 = vector.broadcast %2 : vector<64x1xf32> to vector<64x64xf32>
    %225 = arith.mulf %223, %224 : vector<64x64xf32>
    %c6_164 = arith.constant 6 : index
    %c0_165 = arith.constant 0 : index
    %c0_166 = arith.constant 0 : index
    %226 = vector.load %arg18[%c6_164, %c0_165, %c0_166] : memref<9x64x64xf32, #tpu.memory_space<vmem>>, vector<1x64x64xf32>
    %227 = vector.shape_cast %226 : vector<1x64x64xf32> to vector<64x64xf32>
    %cst_167 = arith.constant dense<0.000000e+00> : vector<64x64xf32>
    %228 = tpu.matmul %225, %227, %cst_167 {dimension_numbers = #tpu.dot_dimension_numbers<[1], [0], [0], [1], [0, 0, 1, 1], [], []>} : vector<64x64xf32>, vector<64x64xf32>, vector<64x64xf32> -> vector<64x64xf32>
    %229 = arith.addf %222, %228 : vector<64x64xf32>
    %c24_168 = arith.constant 24 : index
    %c0_169 = arith.constant 0 : index
    %230 = vector.load %arg21[%c24_168, %c0_169] : memref<96x64xf32, #tpu.memory_space<vmem>>, vector<64x64xf32>
    %c7_170 = arith.constant 7 : index
    %c0_171 = arith.constant 0 : index
    %c0_172 = arith.constant 0 : index
    %231 = vector.load %arg18[%c7_170, %c0_171, %c0_172] : memref<9x64x64xf32, #tpu.memory_space<vmem>>, vector<1x64x64xf32>
    %232 = vector.shape_cast %231 : vector<1x64x64xf32> to vector<64x64xf32>
    %cst_173 = arith.constant dense<0.000000e+00> : vector<64x64xf32>
    %233 = tpu.matmul %230, %232, %cst_173 {dimension_numbers = #tpu.dot_dimension_numbers<[1], [0], [0], [1], [0, 0, 1, 1], [], []>} : vector<64x64xf32>, vector<64x64xf32>, vector<64x64xf32> -> vector<64x64xf32>
    %234 = arith.addf %229, %233 : vector<64x64xf32>
    %c25_174 = arith.constant 25 : index
    %c0_175 = arith.constant 0 : index
    %235 = vector.load %arg21[%c25_174, %c0_175] : memref<96x64xf32, #tpu.memory_space<vmem>>, vector<64x64xf32>
    %236 = vector.broadcast %3 : vector<64x1xf32> to vector<64x64xf32>
    %237 = arith.mulf %235, %236 : vector<64x64xf32>
    %c8_176 = arith.constant 8 : index
    %c0_177 = arith.constant 0 : index
    %c0_178 = arith.constant 0 : index
    %238 = vector.load %arg18[%c8_176, %c0_177, %c0_178] : memref<9x64x64xf32, #tpu.memory_space<vmem>>, vector<1x64x64xf32>
    %239 = vector.shape_cast %238 : vector<1x64x64xf32> to vector<64x64xf32>
    %cst_179 = arith.constant dense<0.000000e+00> : vector<64x64xf32>
    %240 = tpu.matmul %237, %239, %cst_179 {dimension_numbers = #tpu.dot_dimension_numbers<[1], [0], [0], [1], [0, 0, 1, 1], [], []>} : vector<64x64xf32>, vector<64x64xf32>, vector<64x64xf32> -> vector<64x64xf32>
    %241 = arith.addf %234, %240 : vector<64x64xf32>
    %c0_180 = arith.constant 0 : index
    %c0_181 = arith.constant 0 : index
    %242 = vector.load %arg19[%c0_180, %c0_181] : memref<1x64xf32, #tpu.memory_space<vmem>>, vector<1x64xf32>
    %243 = vector.broadcast %242 : vector<1x64xf32> to vector<64x64xf32>
    %244 = arith.addf %241, %243 : vector<64x64xf32>
    %245 = arith.negf %244 : vector<64x64xf32>
    %246 = math.exp %245 : vector<64x64xf32>
    %cst_182 = arith.constant 1.000000e+00 : f32
    %247 = vector.broadcast %cst_182 : f32 to vector<64x64xf32>
    %248 = arith.addf %247, %246 : vector<64x64xf32>
    %249 = arith.divf %247, %248 : vector<64x64xf32>
    %250 = arith.mulf %244, %249 : vector<64x64xf32>
    %251 = arith.addf %72, %250 : vector<64x64xf32>
    %c0_183 = arith.constant 0 : index
    %c0_184 = arith.constant 0 : index
    %c0_185 = arith.constant 0 : index
    %252 = vector.load %arg20[%c0_183, %c0_184, %c0_185] : memref<1x64x64xf32, #tpu.memory_space<vmem>>, vector<1x64x64xf32>
    %253 = vector.shape_cast %252 : vector<1x64x64xf32> to vector<64x64xf32>
    %254 = vector.shape_cast %251 : vector<64x64xf32> to vector<1x64x64xf32>
    tpu.vector_store %arg20[%c0_183, %c0_184, %c0_185], %254 {strides = array<i32>} : memref<1x64x64xf32, #tpu.memory_space<vmem>>, vector<1x64x64xf32>,
    return
  }
  func.func @transform_0(%arg0: i32) -> (i32, i32, i32) {
    %c0_i32 = arith.constant 0 : i32
    %c0_i32_0 = arith.constant 0 : i32
    %c0_i32_1 = arith.constant 0 : i32
    return %arg0, %c0_i32, %c0_i32_0 : i32, i32, i32
  }
  func.func @transform_1(%arg0: i32) -> (i32, i32) {
    %c0_i32 = arith.constant 0 : i32
    %c0_i32_0 = arith.constant 0 : i32
    %c0_i32_1 = arith.constant 0 : i32
    return %c0_i32, %c0_i32_0 : i32, i32
  }
  func.func @transform_2(%arg0: i32) -> (i32, i32) {
    %c0_i32 = arith.constant 0 : i32
    %c0_i32_0 = arith.constant 0 : i32
    %c0_i32_1 = arith.constant 0 : i32
    return %c0_i32, %c0_i32_0 : i32, i32
  }
  func.func @transform_3(%arg0: i32) -> (i32, i32) {
    %c0_i32 = arith.constant 0 : i32
    %c0_i32_0 = arith.constant 0 : i32
    %c0_i32_1 = arith.constant 0 : i32
    return %c0_i32, %c0_i32_0 : i32, i32
  }
  func.func @transform_4(%arg0: i32) -> (i32, i32) {
    %c0_i32 = arith.constant 0 : i32
    %c0_i32_0 = arith.constant 0 : i32
    %c0_i32_1 = arith.constant 0 : i32
    return %c0_i32, %c0_i32_0 : i32, i32
  }
  func.func @transform_5(%arg0: i32) -> (i32, i32) {
    %c0_i32 = arith.constant 0 : i32
    %c0_i32_0 = arith.constant 0 : i32
    %c0_i32_1 = arith.constant 0 : i32
    return %c0_i32, %c0_i32_0 : i32, i32
  }
  func.func @transform_6(%arg0: i32) -> (i32, i32) {
    %c0_i32 = arith.constant 0 : i32
    %c0_i32_0 = arith.constant 0 : i32
    %c0_i32_1 = arith.constant 0 : i32
    return %c0_i32, %c0_i32_0 : i32, i32
  }
  func.func @transform_7(%arg0: i32) -> (i32, i32, i32) {
    %c0_i32 = arith.constant 0 : i32
    %c0_i32_0 = arith.constant 0 : i32
    %c0_i32_1 = arith.constant 0 : i32
    %c0_i32_2 = arith.constant 0 : i32
    return %c0_i32, %c0_i32_0, %c0_i32_1 : i32, i32, i32
  }
  func.func @transform_8(%arg0: i32) -> (i32, i32, i32) {
    %c0_i32 = arith.constant 0 : i32
    %c0_i32_0 = arith.constant 0 : i32
    %c0_i32_1 = arith.constant 0 : i32
    %c0_i32_2 = arith.constant 0 : i32
    return %c0_i32, %c0_i32_0, %c0_i32_1 : i32, i32, i32
  }
  func.func @transform_9(%arg0: i32) -> (i32, i32) {
    %c0_i32 = arith.constant 0 : i32
    %c0_i32_0 = arith.constant 0 : i32
    %c0_i32_1 = arith.constant 0 : i32
    return %c0_i32, %c0_i32_0 : i32, i32
  }
  func.func @transform_10(%arg0: i32) -> (i32, i32) {
    %c0_i32 = arith.constant 0 : i32
    %c0_i32_0 = arith.constant 0 : i32
    %c0_i32_1 = arith.constant 0 : i32
    return %c0_i32, %c0_i32_0 : i32, i32
  }
  func.func @transform_11(%arg0: i32) -> (i32, i32) {
    %c0_i32 = arith.constant 0 : i32
    %c0_i32_0 = arith.constant 0 : i32
    %c0_i32_1 = arith.constant 0 : i32
    return %c0_i32, %c0_i32_0 : i32, i32
  }
  func.func @transform_12(%arg0: i32) -> (i32, i32) {
    %c0_i32 = arith.constant 0 : i32
    %c0_i32_0 = arith.constant 0 : i32
    %c0_i32_1 = arith.constant 0 : i32
    return %c0_i32, %c0_i32_0 : i32, i32
  }
  func.func @transform_13(%arg0: i32) -> (i32, i32, i32) {
    %c0_i32 = arith.constant 0 : i32
    %c0_i32_0 = arith.constant 0 : i32
    %c0_i32_1 = arith.constant 0 : i32
    %c0_i32_2 = arith.constant 0 : i32
    return %c0_i32, %c0_i32_0, %c0_i32_1 : i32, i32, i32
  }
  func.func @transform_14(%arg0: i32) -> (i32, i32) {
    %c0_i32 = arith.constant 0 : i32
    %c0_i32_0 = arith.constant 0 : i32
    %c0_i32_1 = arith.constant 0 : i32
    return %c0_i32, %c0_i32_0 : i32, i32
  }
  func.func @transform_15(%arg0: i32) -> (i32, i32) {
    %c0_i32 = arith.constant 0 : i32
    %c0_i32_0 = arith.constant 0 : i32
    %c0_i32_1 = arith.constant 0 : i32
    return %c0_i32, %c0_i32_0 : i32, i32
  }
  func.func @transform_16(%arg0: i32) -> (i32, i32) {
    %c0_i32 = arith.constant 0 : i32
    %c0_i32_0 = arith.constant 0 : i32
    %c0_i32_1 = arith.constant 0 : i32
    return %c0_i32, %c0_i32_0 : i32, i32
  }
  func.func @transform_17(%arg0: i32) -> (i32, i32, i32) {
    %c0_i32 = arith.constant 0 : i32
    %c0_i32_0 = arith.constant 0 : i32
    %c0_i32_1 = arith.constant 0 : i32
    %c0_i32_2 = arith.constant 0 : i32
    return %c0_i32, %c0_i32_0, %c0_i32_1 : i32, i32, i32
  }
  func.func @transform_18(%arg0: i32) -> (i32, i32) {
    %c0_i32 = arith.constant 0 : i32
    %c0_i32_0 = arith.constant 0 : i32
    %c0_i32_1 = arith.constant 0 : i32
    return %c0_i32, %c0_i32_0 : i32, i32
  }
  func.func @transform_19(%arg0: i32) -> (i32, i32, i32) {
    %c0_i32 = arith.constant 0 : i32
    %c0_i32_0 = arith.constant 0 : i32
    %c0_i32_1 = arith.constant 0 : i32
    return %arg0, %c0_i32, %c0_i32_0 : i32, i32, i32
  }
}

</mosaic_0001>

<bundles_post_ra>
// kernel: unet_mid_block2d.1
= control target key start
LH: loop header
LB: loop body
LE: loop exit
PB: predicated region body
PF: predicated region fallthrough
CT: control target
= control target key end

     0   :  { %s10226_s0 = inlined_call_operand.hbm [shape: f32[2,64,64], index: 0, kind: input, shape index: {}]   ;;  %s10227_s1 = inlined_call_operand.vmem [shape: f32[64,1], index: 1, kind: input, shape index: {}]   ;;  %s10228_s2 = inlined_call_operand.vmem [shape: f32[64,1], index: 2, kind: input, shape index: {}]   ;;  %s10229_s3 = inlined_call_operand.vmem [shape: f32[64,32], index: 3, kind: input, shape index: {}]   ;;  %s10230_s4 = inlined_call_operand.hbm [shape: f32[32,64], index: 4, kind: input, shape index: {}]   ;;  %s10231_s5 = inlined_call_operand.vmem [shape: f32[1,64], index: 5, kind: input, shape index: {}]   ;;  %s10232_s6 = inlined_call_operand.vmem [shape: f32[1,64], index: 6, kind: input, shape index: {}]   ;;  %s10233_s7 = inlined_call_operand.vmem [shape: f32[3,64,64], index: 7, kind: input, shape index: {}]   ;;  %s10234_s8 = inlined_call_operand.hbm [shape: f32[3,1,64], index: 8, kind: input, shape index: {}]   ;;  %s10235_s9 = inlined_call_operand.vmem [shape: f32[64,64], index: 9, kind: input, shape index: {}]   ;;  %s10236_s10 = inlined_call_operand.hbm [shape: f32[1,64], index: 10, kind: input, shape index: {}]   ;;  %s10237_s11 = inlined_call_operand.hbm [shape: f32[1,64], index: 11, kind: input, shape index: {}]   ;;  %s10238_s12 = inlined_call_operand.hbm [shape: f32[1,64], index: 12, kind: input, shape index: {}]   ;;  %s10239_s13 = inlined_call_operand.hbm [shape: f32[9,64,64], index: 13, kind: input, shape index: {}]   ;;  %s10240_s14 = inlined_call_operand.hbm [shape: f32[1,64], index: 14, kind: input, shape index: {}]   ;;  %s10241_s15 = inlined_call_operand.hbm [shape: f32[1,64], index: 15, kind: input, shape index: {}]   ;;  %s10242_s16 = inlined_call_operand.hbm [shape: f32[1,64], index: 16, kind: input, shape index: {}]   ;;  %s10243_s17 = inlined_call_operand.hbm [shape: f32[9,64,64], index: 17, kind: input, shape index: {}]   ;;  %s10244_s18 = inlined_call_operand.hbm [shape: f32[1,64], index: 18, kind: input, shape index: {}]   ;;  %s10245_s19 = inlined_call_operand.hbm [shape: f32[2,64,64], index: 19, kind: output, shape index: {}]  }
   0x1   :  { %10305 = sst [smem:[#allocation61_spill]] %s10226_s0 }
   0x2   :  { %10306 = sst [smem:[#allocation62_spill]] %s10227_s1 }
   0x3   :  { %10307 = sst [smem:[#allocation63_spill]] %s10228_s2 }
   0x4   :  { %10308 = sst [smem:[#allocation64_spill]] %s10229_s3 }
   0x5   :  { %10309 = sst [smem:[#allocation65_spill]] %s10230_s4 }
   0x6   :  { %10310 = sst [smem:[#allocation66_spill]] %s10231_s5 }
   0x7   :  { %10311 = sst [smem:[#allocation67_spill]] %s10232_s6 }
   0x8   :  { %10312 = sst [smem:[#allocation68_spill]] %s10234_s8 }
   0x9   :  { %10313 = sst [smem:[#allocation69_spill]] %s10235_s9 }
   0xa   :  { %10314 = sst [smem:[#allocation70_spill]] %s10236_s10 }
   0xb   :  { %10315 = sst [smem:[#allocation71_spill]] %s10237_s11 }
   0xc   :  { %10316 = sst [smem:[#allocation72_spill]] %s10238_s12 }
   0xd   :  { %10317 = sst [smem:[#allocation73_spill]] %s10239_s13 }
   0xe   :  { %10318 = sst [smem:[#allocation74_spill]] %s10240_s14 }
   0xf   :  { %10319 = sst [smem:[#allocation75_spill]] %s10241_s15 }
  0x10   :  { %10320 = sst [smem:[#allocation76_spill]] %s10245_s19 }
  0x11   :  { %24 = vsyncpa [#allocation4], 0 }
  0x12   :  { %26 = vsyncpa [#allocation4 + $0x1], 0 }
  0x13   :  { %27 = vsyncpa [#allocation7], 0 }
  0x14   :  { %28 = vsyncpa [#allocation10], 0 }
  0x15   :  { %29 = vsyncpa [#allocation13], 0 }
  0x16   :  { %30 = vsyncpa [#allocation16], 0 }
  0x17   :  { %31 = vsyncpa [#allocation19], 0 }
  0x18   :  { %32 = vsyncpa [#allocation22], 0 }
  0x19   :  { %33 = vsyncpa [#allocation5], 0 }
  0x1a   :  { %35 = vsyncpa [#allocation5 + $0x1], 0  ;;  %s8550_s0 = smov 0   ;;  %s8552_s30 = smov 0  }
  0x1b   :  { %s8554_s20 = smov 0   ;;  %s8556_s21 = smov 0  }
  0x1c LB: > { %s8428_s1 = smov [#allocation6]   ;;  %s8571_s2 = sadd.s32 4294967295, %s8426_s21   ;;  %s8426_s21 = sphi %s8556_s21, %s10432_s21   ;;  %s8422_s20 = sphi %s8554_s20, %s10431_s20   ;;  %s8418_s30 = sphi %s8552_s30, %s10430_s30   ;;  %s8414_s0 = sphi %s8550_s0, %s10429_s0  }
  0x1d   : > { %s497_s22 = sshll.u32 %s8428_s1, 4  ;;  %p6149_p0 = scmp.ge.s32.totalorder %s8426_s21, 1  ;;  %s498_s22 = int_to_ptr.vmem [resolvable:$true] %s497_s22 }
  0x1e   : > { %p10254_p1 = scmp.eq.s32.totalorder %s8571_s2, 0  ;;  %p476_p2 = scmp.lt.s32.totalorder %s8426_s21, 3 }
  0x1f   : > { %s8429_s24 = smov [#allocation9]   ;;  %s8430_s26 = smov [#allocation12]  }
  0x20   : > { %p8576_p3 = pnand %p6149_p0, %p476_p2  ;;  %s536_s25 = sshll.u32 %s8429_s24, 4  ;;  %s537_s25 = int_to_ptr.vmem [resolvable:$true] %s536_s25 }
  0x21   : > { %s558_s27 = sshll.u32 %s8430_s26, 4  ;;  %s8035_s29 = scalar_lea.vmem %s498_s22, 512  ;;  %s8589_s27 = int_to_ptr.vmem [resolvable:$true] %s558_s27 }
  0x22   : > { %s10321_s23 = scalar_select %p8576_p3, 1, 0 }
  0x23   : > { %p7802_p5 = pneg %p8576_p3  ;;  %p8036_p8 = scmp.ne.s32.totalorder %s498_s22, %s8035_s29 }
  0x24   : > { %p8043_p11 = scmp.lt.s32.totalorder %s498_s22, %s498_s22  ;;  %p8044_p12 = scmp.lt.s32.totalorder %s8035_s29, %s8035_s29 }
  0x25   : > { %p8585_p6 = pnand %p7802_p5, %p10254_p1 }
  0x26   : > { %p8045_p13 = por %p8044_p12, %p8043_p11 }
  0x27   : > { %p8593_p7 = pneg %p8585_p6 }
  0x29   : > { %p8038_p9 = pnand %p8036_p8, %p8593_p7 }
  0x2b   : > { %p8039_p10 = pneg %p8038_p9 }
  0x2d   : > { %p8046_p0 = pnand %p8045_p13, %p8039_p10 }
  0x2f   : > { %8049 = shalt.err (!%p8046_p0)
}
  0x30   : > { %s10252_s1 = smov 128   ;;  %s10255_s24 = smov 8  }
  0x31   : > { %s10324_s4 = sld [smem:[#allocation65_spill]]  ;;  %s8061_s9 = scalar_lea.vmem %s537_s25, 16 }
  0x32   : > { %p8062_p2 = scmp.ne.s32.totalorder %s537_s25, %s8061_s9  ;;  %s8068_s29 = scalar_lea.vmem %s537_s25, 32 }
  0x33   : > { %p8069_p9 = scmp.lt.s32.totalorder %s537_s25, %s537_s25  ;;  %p8070_p10 = scmp.lt.s32.totalorder %s8068_s29, %s8061_s9 }
  0x34   : > { %p8064_p5 = pnand %p8062_p2, %p8593_p7 }
  0x35   : > { %p8071_p11 = por %p8070_p10, %p8069_p9 }
  0x36   : > { %p8065_p8 = pneg %p8064_p5 }
  0x37   : > { %7805 = dma.hbm_to_vmem [thread:$0]  (!%p8585_p6), %s10324_s4, 512, %s498_s22, [#allocation7], %s10252_s1, %s10252_s1, %s10255_s24  }
  0x38   : > { %p8072_p12 = pnand %p8071_p11, %p8065_p8 }
  0x3a   : > { %8075 = shalt.err (!%p8072_p12)
}
  0x3b   : > { %s10325_s10 = sld [smem:[#allocation70_spill]]  ;;  %s8087_s19 = scalar_lea.vmem %s8589_s27, 16 }
  0x3c   : > { %p8088_p13 = scmp.ne.s32.totalorder %s8589_s27, %s8087_s19  ;;  %s8094_s9 = scalar_lea.vmem %s8589_s27, 32 }
  0x3d   : > { %p8095_p5 = scmp.lt.s32.totalorder %s8589_s27, %s8589_s27  ;;  %p8096_p8 = scmp.lt.s32.totalorder %s8094_s9, %s8087_s19 }
  0x3e   : > { %p8090_p0 = pnand %p8088_p13, %p8593_p7 }
  0x3f   : > { %p8097_p9 = por %p8096_p8, %p8095_p5 }
  0x40   : > { %p8091_p2 = pneg %p8090_p0 }
  0x41   : > { %7811 = dma.hbm_to_vmem [thread:$0]  (!%p8585_p6), %s10325_s10, 16, %s537_s25, [#allocation10]  }
  0x42   : > { %p8098_p10 = pnand %p8097_p9, %p8091_p2 }
  0x44   : > { %8101 = shalt.err (!%p8098_p10)
}
  0x45   : > { %s10326_s12 = sld [smem:[#allocation72_spill]]  ;;  %s8433_s22 = smov [#allocation15]  }
  0x46   : > { %s582_s25 = sshll.u32 %s8433_s22, 4  ;;  %s8434_s26 = smov [#allocation18]   ;;  %s583_s25 = int_to_ptr.vmem [resolvable:$true] %s582_s25 }
  0x47   : > { %s604_s29 = sshll.u32 %s8434_s26, 4  ;;  %s8113_s1 = scalar_lea.vmem %s583_s25, 16  ;;  %s605_s29 = int_to_ptr.vmem [resolvable:$true] %s604_s29 }
  0x48   : > { %p8114_p11 = scmp.ne.s32.totalorder %s583_s25, %s8113_s1  ;;  %s8120_s19 = scalar_lea.vmem %s583_s25, 32 }
  0x49   : > { %p8121_p0 = scmp.lt.s32.totalorder %s583_s25, %s583_s25  ;;  %p8122_p2 = scmp.lt.s32.totalorder %s8120_s19, %s8113_s1 }
  0x4a   : > { %p8116_p12 = pnand %p8114_p11, %p8593_p7 }
  0x4b   : > { %7817 = dma.hbm_to_vmem [thread:$0]  (!%p8585_p6), %s10326_s12, 16, %s8589_s27, [#allocation13]  }
  0x4c   : > { %p8117_p13 = pneg %p8116_p12  ;;  %p8123_p5 = por %p8122_p2, %p8121_p0 }
  0x4e   : > { %p8124_p8 = pnand %p8123_p5, %p8117_p13 }
  0x50   : > { %8127 = shalt.err (!%p8124_p8)
}
  0x51   : > { %s10327_s14 = sld [smem:[#allocation74_spill]]  ;;  %s8139_s5 = scalar_lea.vmem %s605_s29, 16 }
  0x52   : > { %p8140_p9 = scmp.ne.s32.totalorder %s605_s29, %s8139_s5  ;;  %s8146_s6 = scalar_lea.vmem %s605_s29, 32 }
  0x53   : > { %p8147_p12 = scmp.lt.s32.totalorder %s605_s29, %s605_s29  ;;  %p8148_p4 = scmp.lt.s32.totalorder %s8146_s6, %s8139_s5 }
  0x54   : > { %p8142_p10 = pnand %p8140_p9, %p8593_p7 }
  0x55   : > { %p8149_p1 = por %p8148_p4, %p8147_p12 }
  0x56   : > { %p8143_p11 = pneg %p8142_p10 }
  0x57   : > { %7823 = dma.hbm_to_vmem [thread:$0]  (!%p8585_p6), %s10327_s14, 16, %s583_s25, [#allocation16]  }
  0x58   : > { %p8150_p0 = pnand %p8149_p1, %p8143_p11 }
  0x5a   : > { %8153 = shalt.err (!%p8150_p0)
}
  0x5b   : > { %7829 = dma.hbm_to_vmem [thread:$0]  (!%p8585_p6), %s10242_s16, 16, %s605_s29, [#allocation19]  }
  0x5c   : > { %s8435_s25 = smov [#allocation8]  }
  0x5d   : > { %s519_s26 = sshll.u32 %s8435_s25, 4  ;;  %s520_s26 = int_to_ptr.vmem [resolvable:$true] %s519_s26 }
  0x5e   : > { %s8165_s19 = scalar_lea.vmem %s520_s26, 48  ;;  %s8172_s9 = scalar_lea.vmem %s520_s26, 64 }
  0x5f   : > { %p8166_p13 = scmp.ne.s32.totalorder %s520_s26, %s8165_s19  ;;  %p8173_p8 = scmp.lt.s32.totalorder %s520_s26, %s520_s26 }
  0x60   : > { %p8174_p4 = scmp.lt.s32.totalorder %s8172_s9, %s8165_s19 }
  0x61   : > { %p8168_p2 = pnand %p8166_p13, %p8593_p7 }
  0x62   : > { %p8175_p1 = por %p8174_p4, %p8173_p8 }
  0x63   : > { %p8169_p5 = pneg %p8168_p2 }
  0x65   : > { %p8176_p9 = pnand %p8175_p1, %p8169_p5 }
  0x67   : > { %8179 = shalt.err (!%p8176_p9)
}
  0x68   : > { %s8436_s27 = smov 16   ;;  %s8437_s5 = smov 1  }
  0x69   : > { %s10328_s8 = sld [smem:[#allocation68_spill]]  ;;  %s8438_s1 = smov [#allocation11]  }
  0x6a   : > { %s547_s22 = sshll.u32 %s8438_s1, 4  ;;  %s8439_s25 = smov [#allocation14]   ;;  %s548_s22 = int_to_ptr.vmem [resolvable:$true] %s547_s22 }
  0x6b   : > { %s568_s24 = sshll.u32 %s8439_s25, 4  ;;  %s8191_s4 = scalar_lea.vmem %s548_s22, 16  ;;  %s569_s24 = int_to_ptr.vmem [resolvable:$true] %s568_s24 }
  0x6c   : > { %p8192_p10 = scmp.ne.s32.totalorder %s548_s22, %s8191_s4  ;;  %s8198_s19 = scalar_lea.vmem %s548_s22, 32 }
  0x6d   : > { %p8199_p0 = scmp.lt.s32.totalorder %s548_s22, %s548_s22  ;;  %p8200_p13 = scmp.lt.s32.totalorder %s8198_s19, %s8191_s4 }
  0x6e   : > { %p8194_p11 = pnand %p8192_p10, %p8593_p7 }
  0x6f   : > { %7808 = dma.hbm_to_vmem [thread:$0]  (!%p8585_p6), %s10328_s8, 48, %s520_s26, [#allocation7], %s8436_s27, %s8436_s27, %s8437_s5  }
  0x70   : > { %p8195_p12 = pneg %p8194_p11  ;;  %p8201_p2 = por %p8200_p13, %p8199_p0 }
  0x72   : > { %p8202_p5 = pnand %p8201_p2, %p8195_p12 }
  0x74   : > { %8205 = shalt.err (!%p8202_p5)
}
  0x75   : > { %s10329_s11 = sld [smem:[#allocation71_spill]]  ;;  %s8217_s27 = scalar_lea.vmem %s569_s24, 9216 }
  0x76   : > { %p8218_p8 = scmp.ne.s32.totalorder %s569_s24, %s8217_s27  ;;  %p8225_p9 = scmp.lt.s32.totalorder %s569_s24, %s569_s24 }
  0x77   : > { %p8226_p10 = scmp.lt.s32.totalorder %s8217_s27, %s8217_s27 }
  0x78   : > { %p8220_p4 = pnand %p8218_p8, %p8593_p7 }
  0x79   : > { %p8227_p11 = por %p8226_p10, %p8225_p9 }
  0x7a   : > { %p8221_p1 = pneg %p8220_p4 }
  0x7b   : > { %7814 = dma.hbm_to_vmem [thread:$0]  (!%p8585_p6), %s10329_s11, 16, %s548_s22, [#allocation10]  }
  0x7c   : > { %p8228_p3 = pnand %p8227_p11, %p8221_p1 }
  0x7e   : > { %8231 = shalt.err (!%p8228_p3)
}
  0x7f   : > { %s10330_s4 = smov 8   ;;  %s10331_s5 = smov 128  }
  0x80   : > { %s10332_s13 = sld [smem:[#allocation73_spill]]  ;;  %s8440_s1 = smov [#allocation17]  }
  0x81   : > { %s593_s22 = sshll.u32 %s8440_s1, 4  ;;  %s8441_s25 = smov [#allocation20]   ;;  %s594_s22 = int_to_ptr.vmem [resolvable:$true] %s593_s22 }
  0x82   : > { %s614_s19 = sshll.u32 %s8441_s25, 4  ;;  %s8243_s26 = scalar_lea.vmem %s594_s22, 16  ;;  %s615_s19 = int_to_ptr.vmem [resolvable:$true] %s614_s19 }
  0x83   : > { %p8244_p12 = scmp.ne.s32.totalorder %s594_s22, %s8243_s26  ;;  %s8250_s9 = scalar_lea.vmem %s594_s22, 32 }
  0x84   : > { %p8251_p13 = scmp.lt.s32.totalorder %s594_s22, %s594_s22  ;;  %p8252_p2 = scmp.lt.s32.totalorder %s8250_s9, %s8243_s26 }
  0x85   : > { %p8246_p3 = pnand %p8244_p12, %p8593_p7 }
  0x86   : > { %7820 = dma.hbm_to_vmem [thread:$0]  (!%p8585_p6), %s10332_s13, 9216, %s569_s24, [#allocation13], %s10331_s5, %s10331_s5, %s10330_s4  }
  0x87   : > { %p8247_p0 = pneg %p8246_p3  ;;  %p8253_p5 = por %p8252_p2, %p8251_p13 }
  0x89   : > { %p8254_p8 = pnand %p8253_p5, %p8247_p0 }
  0x8b   : > { %8257 = shalt.err (!%p8254_p8)
}
  0x8c   : > { %s10333_s15 = sld [smem:[#allocation75_spill]]  ;;  %s8269_s29 = scalar_lea.vmem %s615_s19, 9216 }
  0x8d   : > { %p8270_p4 = scmp.ne.s32.totalorder %s615_s19, %s8269_s29  ;;  %p8277_p10 = scmp.lt.s32.totalorder %s615_s19, %s615_s19 }
  0x8e   : > { %p8278_p11 = scmp.lt.s32.totalorder %s8269_s29, %s8269_s29 }
  0x8f   : > { %p8272_p1 = pnand %p8270_p4, %p8593_p7 }
  0x90   : > { %p8279_p12 = por %p8278_p11, %p8277_p10 }
  0x91   : > { %p8273_p9 = pneg %p8272_p1 }
  0x92   : > { %7826 = dma.hbm_to_vmem [thread:$0]  (!%p8585_p6), %s10333_s15, 16, %s594_s22, [#allocation16]  }
  0x93   : > { %p8280_p3 = pnand %p8279_p12, %p8273_p9 }
  0x95   : > { %8283 = shalt.err (!%p8280_p3)
}
  0x96   : > { %7832 = dma.hbm_to_vmem [thread:$0]  (!%p8585_p6), %s10243_s17, 9216, %s615_s19, [#allocation19], %s10331_s5, %s10331_s5, %s10330_s4  }
  0x97   : > { %s8442_s22 = smov [#allocation21]  }
  0x98   : > { %s628_s25 = sshll.u32 %s8442_s22, 4  ;;  %s629_s25 = int_to_ptr.vmem [resolvable:$true] %s628_s25 }
  0x99   : > { %s8295_s26 = scalar_lea.vmem %s629_s25, 16  ;;  %s8302_s9 = scalar_lea.vmem %s629_s25, 32 }
  0x9a   : > { %p8296_p0 = scmp.ne.s32.totalorder %s629_s25, %s8295_s26  ;;  %p8303_p5 = scmp.lt.s32.totalorder %s629_s25, %s629_s25 }
  0x9b   : > { %p8304_p8 = scmp.lt.s32.totalorder %s8302_s9, %s8295_s26 }
  0x9c   : > { %p8298_p13 = pnand %p8296_p0, %p8593_p7 }
  0x9d   : > { %p8305_p4 = por %p8304_p8, %p8303_p5 }
  0x9e   : > { %p8299_p2 = pneg %p8298_p13 }
  0xa0   : > { %p8306_p1 = pnand %p8305_p4, %p8299_p2 }
  0xa2   : > { %8309 = shalt.err (!%p8306_p1)
}
  0xa3   : > { %7835 = dma.hbm_to_vmem [thread:$0]  (!%p8585_p6), %s10244_s18, 16, %s629_s25, [#allocation22]  }
  0xa4   : > { %s6148_s28 = sadd.s32 4294967294, %s8426_s21   ;;  %s8691_s3 = sadd.s32 1, %s8426_s21  }
  0xa5   : > { %s48_s19 = sadd.s32 1, %s8422_s20  ;;  %s45_s29 = ssub.s32 %s8426_s21, %s8691_s3 }
  0xa6   : > { %p55_p7 = scmp.ne.s32.totalorder %s8422_s20, %s8418_s30  ;;  %p46_p9 = scmp.eq.s32.totalorder %s45_s29, 0 }
  0xa7   : > { %p56_p10 = scmp.eq.s32.totalorder %s8426_s21, 0  ;;  %p61_p11 = scmp.ne.s32.totalorder %s8418_s30, %s8414_s0 }
  0xa8   : > { %p463_p12 = scmp.eq.s32.totalorder %s8571_s2, 1  ;;  %p10334_p0 = scmp.eq.s32.totalorder %s8571_s2, 0 }
  0xa9   : > { %s8703_s6 = scalar_select %p46_p9, %s8422_s20, %s48_s19  }
  0xaa   : > { %p57_p3 = por %p56_p10, %p55_p7  ;;  %p8707_p13 = por %p10334_p0, %p61_p11 }
  0xab   : > { %p8711_p6 = por %p463_p12, %p55_p7  ;;  %p469_p2 = scmp.eq.s32.totalorder %s6148_s28, 1 }
  0xac   : > { %s10335_s1 = scalar_select %p8707_p13, 1, 0 }
  0xad   : > { %s10336_s22 = scalar_select %p8711_p6, 1, 0 }
  0xae   : > { %p7855_p5 = scmp.lt.s32.totalorder %s8426_s21, 2  ;;  %s639_s25 = sand.u32 1, %s8422_s20  }
  0xaf   : > { %p8717_p8 = por %p469_p2, %p61_p11  ;;  %s6162_s9 = sshll.u32 %s639_s25, 6 }
  0xb0   : > { %s6432_s24 = sshll.u32 %s8426_s21, 10  ;;  %s10338_s29 = sld [smem:[#allocation61_spill]] }
  0xb1   : > { %s10337_s26 = scalar_select %p8717_p8, 1, 0 }
  0xb2   : > { %s643_s10 = scalar_lea.vmem [#allocation3], %s6162_s9  ;;  %p8727_p4 = pnand %p7855_p5, %p57_p3 }
  0xb3   : > { %s650_s11 = sshll.u32 %s643_s10, 4  ;;  %s8733_s12 = scalar_lea.sflag [#allocation4], %s639_s25  ;;  %s8731_s11 = int_to_ptr.vmem [resolvable:$true] %s650_s11 }
  0xb4   : > { %p8312_p7 = pneg %p8727_p4 }
  0xb6   : > { %s8725_s8 = scalar_lea.hbm %s10338_s29, %s6432_s24  ;;  %s8315_s9 = scalar_lea.hbm %s10338_s29, 2048 }
  0xb7   : > { %s8310_s13 = scalar_lea.hbm %s8725_s8, 1024  ;;  %p8316_p11 = scmp.lt.s32.totalorder %s8725_s8, %s10338_s29 }
  0xb8   : > { %p8311_p1 = scmp.ne.s32.totalorder %s8725_s8, %s8310_s13  ;;  %p8317_p12 = scmp.lt.s32.totalorder %s8315_s9, %s8310_s13 }
  0xba   : > { %p8313_p9 = pnand %p8312_p7, %p8311_p1  ;;  %p8318_p3 = por %p8317_p12, %p8316_p11 }
  0xbc   : > { %p8314_p10 = pneg %p8313_p9 }
  0xbe   : > { %p8319_p0 = pnand %p8318_p3, %p8314_p10 }
  0xc0   : > { %8322 = shalt.err (!%p8319_p0)
}
  0xc1   : > { %s8323_s25 = scalar_lea.vmem %s8731_s11, 1024  ;;  %s8443_s14 = smov [#allocation3]  }
  0xc2   : > { %p8324_p2 = scmp.ne.s32.totalorder %s8731_s11, %s8323_s25  ;;  %s8328_s15 = sshll.u32 %s8443_s14, 4  ;;  %s8329_s15 = int_to_ptr.vmem [resolvable:$false] %s8328_s15 }
  0xc3   : > { %s8330_s24 = scalar_lea.vmem %s8329_s15, 2048  ;;  %p8331_p9 = scmp.lt.s32.totalorder %s8731_s11, %s8329_s15 }
  0xc4   : > { %p8326_p5 = pnand %p8324_p2, %p8312_p7  ;;  %p8332_p8 = scmp.lt.s32.totalorder %s8330_s24, %s8323_s25 }
  0xc6   : > { %p8327_p1 = pneg %p8326_p5  ;;  %p8333_p6 = por %p8332_p8, %p8331_p9 }
  0xc8   : > { %p8334_p13 = pnand %p8333_p6, %p8327_p1 }
  0xca   : > { %8337 = shalt.err (!%p8334_p13)
}
  0xcb   : > { %7839 = dma.hbm_to_vmem [thread:$0]  (!%p8727_p4), %s8725_s8, 1024, %s8731_s11, %s8733_s12, %s10331_s5, %s10331_s5, %s10330_s4  }
  0xcc   : > { %p10340_p7 = scmp.ne.s32.totalorder %s10321_s23, 0 }
  0xce   : > { %662 = sbr.rel (%p10340_p7) target bundleno = 4619 (0x120b), region = 96 }
  0xd3   : > { %s8760_s13 = sand.u32 1, %s8418_s30   ;;  %p10341_p13 = scmp.ne.s32.totalorder %s10335_s1, 0 }
  0xd4   : > { %s6166_s14 = sshll.u32 %s8760_s13, 6  ;;  %s665_s15 = scalar_lea.sflag [#allocation4], %s8760_s13 }
  0xd5   : > { %s8766_s28 = scalar_lea.vmem [#allocation3], %s6166_s14 }
  0xd6   : > { %8381 = dma.done.wait (%p10341_p13), %s665_s15, 1024  }
  0xd7   : > { %8383 = vsyncadd (%p10341_p13), %s665_s15, 4294966272  ;;  %p10342_p6 = scmp.eq.s32.totalorder %s8571_s2, 0 }
  0xd9   : > { %8385 = dma.done.wait (%p10342_p6), [#allocation7], 560   ;;  %p10343_p8 = pmov %p10342_p6 }
  0xda   : > { %p10344_p4 = pmov %p10342_p6 }
  0xdb   : > { %8387 = vsyncadd (%p10343_p8), [#allocation7], 4294966736 }
  0xdc   : > { %8389 = dma.done.wait (%p10344_p4), [#allocation10], 32   ;;  %p10345_p10 = pmov %p10344_p4 }
  0xdd   : > { %p10346_p11 = pmov %p10344_p4 }
  0xde   : > { %8391 = vsyncadd (%p10345_p10), [#allocation10], 4294967264 }
  0xdf   : > { %8393 = dma.done.wait (%p10346_p11), [#allocation13], 9232   ;;  %p10347_p12 = pmov %p10344_p4 }
  0xe0   : > { %p10348_p3 = pmov %p10344_p4 }
  0xe1   : > { %8395 = vsyncadd (%p10347_p12), [#allocation13], 4294958064 }
  0xe2   : > { %8397 = dma.done.wait (%p10348_p3), [#allocation16], 32   ;;  %p10349_p0 = pmov %p10348_p3 }
  0xe4   : > { %8399 = vsyncadd (%p10349_p0), [#allocation16], 4294967264  ;;  %p10350_p2 = pmov %p10349_p0 }
  0xe5   : > { %p10351_p5 = pmov %p10349_p0 }
  0xe6   : > { %8401 = dma.done.wait (%p10350_p2), [#allocation19], 9232  }
  0xe7   : > { %8403 = vsyncadd (%p10351_p5), [#allocation19], 4294958064  ;;  %p10352_p1 = pmov %p10349_p0 }
  0xe8   : > { %p10353_p9 = pmov %p10349_p0 }
  0xe9   : > { %8405 = dma.done.wait (%p10352_p1), [#allocation22], 16  }
  0xea   : > { %8407 = vsyncadd (%p10353_p9), [#allocation22], 4294967280  ;;  %vm767_vm0 = vcmask 523264   ;;  %v10260_v0 = vmov 0.0   ;;  %vm8445_vm1 = vmmov 0   ;;  %s10354_s12 = sld [smem:[#allocation64_spill]]  ;;  %v987_v45 = vlaneseq }
  0xeb   : > { %6902 = vmatprep.subr.mxu0 %v10260_v0  ;;  %6918 = vmatprep.mubr.msk.f32.mxu0 %vm8445_vm1, %v10260_v0  ;;  %768 = vst.msk [vmem:[#allocation2] sm:$0xff] %vm767_vm0, %v10260_v0  ;;  %769 = vst.msk [vmem:[#allocation2 + $0x8] sm:$0xff] %vm767_vm0, %v10260_v0  ;;  %v8844_v4 = vld [vmem:[%s8766_s28] sm:$0xff]  ;;  %v8848_v5 = vld [vmem:[%s8766_s28 + $0x8] sm:$0xff]  ;;  %vm913_vm2 = vcmask 261120   ;;  %s10356_s8 = sld [smem:[#allocation66_spill]] }
  0xec   : > { %770 = vst.msk [vmem:[#allocation2 + $0x10] sm:$0xff] %vm767_vm0, %v10260_v0  ;;  %771 = vst.msk [vmem:[#allocation2 + $0x18] sm:$0xff] %vm767_vm0, %v10260_v0  ;;  %6921 = vmatprep.subr.mxu1 %v10260_v0  ;;  %6929 = vmatprep.mubr.msk.f32.mxu1 %vm8445_vm1, %v10260_v0  ;;  %v8851_v6 = vld [vmem:[%s8766_s28 + $0x10] sm:$0xff]  ;;  %v8854_v7 = vld [vmem:[%s8766_s28 + $0x18] sm:$0xff]  ;;  %v818_v8 = vsel %vm767_vm0, %v8844_v4, 0.0  ;;  %v819_v10 = vsel %vm767_vm0, %v8848_v5, 0.0 }
  0xed   : > { %772 = vst.msk [vmem:[#allocation2 + $0x20] sm:$0xff] %vm767_vm0, %v10260_v0  ;;  %773 = vst.msk [vmem:[#allocation2 + $0x28] sm:$0xff] %vm767_vm0, %v10260_v0  ;;  %v821_v11 = vsel %vm767_vm0, %v8851_v6, 0.0  ;;  %v8870_v12 = vld [vmem:[%s8766_s28 + $0x20] sm:$0xff]  ;;  %v820_v13 = vadd.f32 %v819_v10, %v818_v8  ;;  %v8872_v14 = vld [vmem:[#allocation6 + $0x18] sm:$0xff]  ;;  %v823_v17 = vsel %vm767_vm0, %v8854_v7, 0.0 }
  0xee   : > { %774 = vst.msk [vmem:[#allocation2 + $0x30] sm:$0xff] %vm767_vm0, %v10260_v0  ;;  %775 = vst.msk [vmem:[#allocation2 + $0x38] sm:$0xff] %vm767_vm0, %v10260_v0  ;;  %v8874_v15 = vld [vmem:[#allocation6 + $0x10] sm:$0xff]  ;;  %6922 = vmatpush3.msra.mxu1 %v8872_v14  ;;  %v8887_v18 = vld [vmem:[%s8766_s28 + $0x28] sm:$0xff]  ;;  %v825_v21 = vsel %vm767_vm0, %v8870_v12, 0.0  ;;  %v988_v46 = vshrl.u32 %v987_v45, 7 }
  0xef   : > { %776 = vst.msk [vmem:[#allocation2 + $0x40] sm:$0xff] %vm767_vm0, %v10260_v0  ;;  %777 = vst.msk [vmem:[#allocation2 + $0x48] sm:$0xff] %vm767_vm0, %v10260_v0  ;;  %v822_v19 = vadd.f32 %v821_v11, %v820_v13  ;;  %6923 = vmatprep.subr.mxu1 %v10260_v0  ;;  %v8901_v22 = vld [vmem:[%s8766_s28 + $0x30] sm:$0xff]  ;;  %v827_v25 = vsel %vm767_vm0, %v8887_v18, 0.0  ;;  %v8914_v26 = vld [vmem:[%s8766_s28 + $0x38] sm:$0xff]  ;;  %s10357_s4 = sld [smem:[#allocation67_spill]] }
  0xf0   : > { %778 = vst.msk [vmem:[#allocation2 + $0x50] sm:$0xff] %vm767_vm0, %v10260_v0  ;;  %779 = vst.msk [vmem:[#allocation2 + $0x58] sm:$0xff] %vm767_vm0, %v10260_v0  ;;  %v8829_v1 = vld [vmem:[%s10354_s12 + $0x38] sm:$0xff]  ;;  %v8834_v2 = vld [vmem:[%s10354_s12 + $0x30] sm:$0xff]  ;;  %6924 = vmatpush3.msra.mxu1 %v8874_v15  ;;  %v829_v29 = vsel %vm767_vm0, %v8901_v22, 0.0  ;;  %v831_v31 = vsel %vm767_vm0, %v8914_v26, 0.0 }
  0xf1   : > { %6903 = vmatpush3.msra.mxu0 %v8829_v1  ;;  %v8841_v3 = vld [vmem:[%s10354_s12 + $0x28] sm:$0xff]  ;;  %v8862_v9 = vld [vmem:[%s10354_s12 + $0x20] sm:$0xff]  ;;  %v8880_v16 = vld [vmem:[%s10354_s12 + $0x18] sm:$0xff]  ;;  %v824_v23 = vadd.f32 %v823_v17, %v822_v19  ;;  %6925 = vmatprep.subr.mxu1 %v10260_v0  ;;  %v8957_v47 = vsub.s32 0, %v988_v46  ;;  %s10358_s9 = sld [smem:[#allocation69_spill]]  ;;  %s766_s27 = scalar_lea.vmem [#allocation23], %s6166_s14 }
  0xf2   : > { %6904 = vmatprep.subr.mxu0 %v10260_v0  ;;  %v8894_v20 = vld [vmem:[%s10354_s12 + $0x10] sm:$0xff]  ;;  %v8908_v24 = vld [vmem:[%s10354_s12 + $0x8] sm:$0xff]  ;;  %v8920_v28 = vld [vmem:[%s10354_s12] sm:$0xff]  ;;  %s10367_s23 = sld [smem:[#allocation62_spill]]  ;;  %s6433_s14 = sshll.u32 %s8571_s2, 10 }
  0xf3   : > { %6905 = vmatpush3.msra.mxu0 %v8834_v2  ;;  %v826_v27 = vadd.f32 %v825_v21, %v824_v23  ;;  %v8930_v40 = vld [vmem:[#allocation6 + $0x8] sm:$0xff]  ;;  %v8934_v41 = vld [vmem:[#allocation6] sm:$0xff]  ;;  %10355 = vst [vmem:[#allocation32_spill] sm:$0xff] %v8957_v47  ;;  %v6197_v45 = vld [vmem:[%s10233_s7 + $0x58] sm:$0xff]  ;;  %s10368_s1 = sld [smem:[#allocation63_spill]]  ;;  %s5970_s10 = sshll.u32 %s766_s27, 4  ;;  %s10180_s10 = int_to_ptr.vmem [resolvable:$true] %s5970_s10 }
  0xf4   : > { %6906 = vmatprep.subr.mxu0 %v10260_v0  ;;  %6926 = vmatpush3.msra.mxu1 %v8930_v40  ;;  %v1218_v46 = vld [vmem:[%s10233_s7 + $0x10] sm:$0xff]  ;;  %s10424_s24 = sld [smem:[#allocation76_spill]]  ;;  %s5957_s2 = scalar_lea.sflag [#allocation5], %s8760_s13 }
  0xf5   : > { %6907 = vmatpush3.msra.mxu0 %v8841_v3  ;;  %v828_v30 = vadd.f32 %v827_v25, %v826_v27  ;;  %6927 = vmatprep.subr.mxu1 %v10260_v0  ;;  %p10426_p13 = scmp.ne.s32.totalorder %s10336_s22, 0 }
  0xf6   : > { %6908 = vmatprep.subr.mxu0 %v10260_v0  ;;  %6928 = vmatpush3.msra.mxu1 %v8934_v41 }
  0xf7   : > { %6909 = vmatpush3.msra.mxu0 %v8862_v9  ;;  %v830_v32 = vadd.f32 %v829_v29, %v828_v30  ;;  %6932 = vmatprep.subr.mxu1 %v10260_v0 }
  0xf8   : > { %6910 = vmatprep.subr.mxu0 %v10260_v0 }
  0xf9   : > { %6911 = vmatpush3.msra.mxu0 %v8880_v16  ;;  %v832_v33 = vadd.f32 %v831_v31, %v830_v32 }
  0xfa   : > { %6912 = vmatprep.subr.mxu0 %v10260_v0  ;;  %s10178_s15 = scalar_lea.hbm %s10424_s24, %s6433_s14 }
  0xfb   : > { %6913 = vmatpush3.msra.mxu0 %v8894_v20  ;;  %v833_v34 = vrot.slane %v832_v33, 4 }
  0xfc   : > { %6914 = vmatprep.subr.mxu0 %v10260_v0 }
  0xfd   : > { %6915 = vmatpush3.msra.mxu0 %v8908_v24  ;;  %v834_v35 = vadd.f32 %v833_v34, %v832_v33 }
  0xfe   : > { %6916 = vmatprep.subr.mxu0 %v10260_v0 }
  0xff   : > { %6917 = vmatpush3.msra.mxu0 %v8920_v28  ;;  %v835_v36 = vrot.slane %v834_v35, 2 }
 0x101   : > { %v836_v37 = vadd.f32 %v835_v36, %v834_v35 }
 0x103   : > { %v837_v38 = vrot.slane %v836_v37, 1 }
 0x105   : > { %v838_v39 = vadd.f32 %v837_v38, %v836_v37  ;;  %v1222_v38 = vld [vmem:[%s10233_s7 + $0x30] sm:$0xff] }
 0x107   : > { %6919 = vmatmul.mubr.msk.f32.vlgmr.msra.gmra.mxu0 %vm767_vm0, %v838_v39  ;;  %v6200_v39 = vld [vmem:[%s10233_s7 + $0x70] sm:$0xff] }
 0x1c7   : > { %v908_v42 = vpop.f32.mrf.mxu0 }
 0x1c8   : > { %v912_v43 = vmul.f32 0.0078125, %v908_v42  ;;  %v1220_v42 = vld [vmem:[%s10233_s7 + $0x20] sm:$0xff] }
 0x1c9   : > { %v6920_v44 = vpop.f32.mrf.mxu0 }
 0x1ca   : > { %6930 = vmatmul.mubr.msk.f32.vlgmr.msra.gmra.mxu1 %vm913_vm2, %v912_v43  ;;  %v6198_v43 = vld [vmem:[%s10233_s7 + $0x60] sm:$0xff]  ;;  %v1219_v44 = vld [vmem:[%s10233_s7 + $0x18] sm:$0xff] }
 0x1cb   : > { %6933 = vmatpush3.msra.mxu1 %v8829_v1  ;;  %6948 = vmatprep.mubr.msk.f32.mxu1 %vm8445_vm1, %v10260_v0 }
 0x1cc   : > { %6934 = vmatprep.subr.mxu1 %v10260_v0 }
 0x1cd   : > { %6935 = vmatpush3.msra.mxu1 %v8834_v2 }
 0x1ce   : > { %6936 = vmatprep.subr.mxu1 %v10260_v0 }
 0x1cf   : > { %6937 = vmatpush3.msra.mxu1 %v8841_v3 }
 0x1d0   : > { %6938 = vmatprep.subr.mxu1 %v10260_v0 }
 0x1d1   : > { %6939 = vmatpush3.msra.mxu1 %v8862_v9 }
 0x1d2   : > { %6940 = vmatprep.subr.mxu1 %v10260_v0 }
 0x1d3   : > { %6941 = vmatpush3.msra.mxu1 %v8880_v16 }
 0x1d4   : > { %6942 = vmatprep.subr.mxu1 %v10260_v0 }
 0x1d5   : > { %6943 = vmatpush3.msra.mxu1 %v8894_v20 }
 0x1d6   : > { %6944 = vmatprep.subr.mxu1 %v10260_v0 }
 0x1d7   : > { %6945 = vmatpush3.msra.mxu1 %v8908_v24 }
 0x1d8   : > { %6946 = vmatprep.subr.mxu1 %v10260_v0 }
 0x1d9   : > { %6947 = vmatpush3.msra.mxu1 %v8920_v28 }
 0x1da   : > { %6951 = vmatprep.subr.mxu1 %v10260_v0 }
 0x28a   : > { %v983_v48 = vpop.f32.mrf.mxu1 }
 0x28b   : > { %v990_v49 = vrot.slane %v983_v48, %v8957_v47  ;;  %v6196_v48 = vld [vmem:[%s10233_s7 + $0x50] sm:$0xff] }
 0x28c   : > { %v6931_v50 = vpop.f32.mrf.mxu1 }
 0x28d   : > { %v8961_v51 = vsub.f32 %v8844_v4, %v990_v49  ;;  %v8964_v52 = vsub.f32 %v8848_v5, %v990_v49  ;;  %v8967_v53 = vsub.f32 %v8851_v6, %v990_v49  ;;  %v8970_v54 = vsub.f32 %v8854_v7, %v990_v49  ;;  %v6195_v50 = vld [vmem:[%s10233_s7 + $0x48] sm:$0xff] }
 0x28e   : > { %v8973_v55 = vsub.f32 %v8870_v12, %v990_v49  ;;  %v8982_v59 = vsub.f32 %v8887_v18, %v990_v49  ;;  %v8989_v4 = vsub.f32 %v8901_v22, %v990_v49  ;;  %v8995_v8 = vsub.f32 %v8914_v26, %v990_v49  ;;  %v1217_v49 = vld [vmem:[%s10233_s7 + $0x8] sm:$0xff] }
 0x28f   : > { %v999_v56 = vmul.f32 %v8961_v51, %v8961_v51  ;;  %v1000_v57 = vmul.f32 %v8964_v52, %v8964_v52  ;;  %v1001_v58 = vmul.f32 %v8967_v53, %v8967_v53  ;;  %v1002_v60 = vmul.f32 %v8970_v54, %v8970_v54 }
 0x290   : > { %v1003_v5 = vmul.f32 %v8973_v55, %v8973_v55  ;;  %v1004_v10 = vmul.f32 %v8982_v59, %v8982_v59  ;;  %v1005_v13 = vmul.f32 %v8989_v4, %v8989_v4  ;;  %v1006_v19 = vmul.f32 %v8995_v8, %v8995_v8 }
 0x291   : > { %v1007_v61 = vsel %vm767_vm0, %v999_v56, 0.0  ;;  %v1008_v62 = vsel %vm767_vm0, %v1000_v57, 0.0  ;;  %v1010_v6 = vsel %vm767_vm0, %v1001_v58, 0.0  ;;  %v1012_v11 = vsel %vm767_vm0, %v1002_v60, 0.0  ;;  %v1216_v56 = vld [vmem:[%s10233_s7] sm:$0xff]  ;;  %v6218_v58 = vld [vmem:[%s10233_s7 + $0xb8] sm:$0xff] }
 0x292   : > { %v1009_v63 = vadd.f32 %v1008_v62, %v1007_v61  ;;  %v1014_v17 = vsel %vm767_vm0, %v1003_v5, 0.0  ;;  %v1016_v21 = vsel %vm767_vm0, %v1004_v10, 0.0  ;;  %v1018_v23 = vsel %vm767_vm0, %v1005_v13, 0.0  ;;  %v6194_v57 = vld [vmem:[%s10233_s7 + $0x40] sm:$0xff] }
 0x293   : > { %v1020_v26 = vsel %vm767_vm0, %v1006_v19, 0.0 }
 0x294   : > { %v1011_v7 = vadd.f32 %v1010_v6, %v1009_v63  ;;  %v6183_v6 = vld [vmem:[%s10356_s8] ss:$0 sm:$0xff]  ;;  %s8338_s8 = scalar_lea.vmem %s10180_s10, 1024 }
 0x295   : > { %p8339_p7 = scmp.ne.s32.totalorder %s10180_s10, %s8338_s8 }
 0x296   : > { %v1013_v12 = vadd.f32 %v1012_v11, %v1011_v7 }
 0x297   : > { %p8340_p6 = pnand %p8339_p7, %p10426_p13 }
 0x298   : > { %v1015_v18 = vadd.f32 %v1014_v17, %v1013_v12  ;;  %v6184_v12 = vld [vmem:[%s10357_s4] ss:$0 sm:$0xff] }
 0x299   : > { %p8341_p8 = pneg %p8340_p6 }
 0x29a   : > { %v1017_v22 = vadd.f32 %v1016_v21, %v1015_v18 }
 0x29c   : > { %v1019_v25 = vadd.f32 %v1018_v23, %v1017_v22 }
 0x29e   : > { %v1021_v27 = vadd.f32 %v1020_v26, %v1019_v25  ;;  %v6216_v26 = vld [vmem:[%s10233_s7 + $0xa8] sm:$0xff] }
 0x2a0   : > { %v1022_v29 = vrot.slane %v1021_v27, 4 }
 0x2a2   : > { %v1023_v30 = vadd.f32 %v1022_v29, %v1021_v27 }
 0x2a4   : > { %v1024_v31 = vrot.slane %v1023_v30, 2 }
 0x2a6   : > { %v1025_v32 = vadd.f32 %v1024_v31, %v1023_v30  ;;  %v6215_v31 = vld [vmem:[%s10233_s7 + $0xa0] sm:$0xff] }
 0x2a8   : > { %v1026_v33 = vrot.slane %v1025_v32, 1 }
 0x2aa   : > { %v1027_v34 = vadd.f32 %v1026_v33, %v1025_v32 }
 0x2ac   : > { %6949 = vmatmul.mubr.msk.f32.vlgmr.msra.gmra.mxu1 %vm767_vm0, %v1027_v34 }
 0x2ad   : > { %6952 = vmatpush3.msra.mxu1 %v8872_v14  ;;  %6959 = vmatprep.mubr.msk.f32.mxu1 %vm8445_vm1, %v10260_v0  ;;  %v1223_v14 = vld [vmem:[%s10233_s7 + $0x38] sm:$0xff] }
 0x2ae   : > { %6953 = vmatprep.subr.mxu1 %v10260_v0  ;;  %6962 = vmatprep.subr.mxu0 %v1223_v14 }
 0x2af   : > { %6954 = vmatpush3.msra.mxu1 %v8874_v15  ;;  %v6201_v15 = vld [vmem:[%s10233_s7 + $0x78] sm:$0xff]  ;;  %6963 = vmatpush3.msra.mxu0 %v1223_v14  ;;  %v6211_v14 = vld [vmem:[%s10233_s7 + $0x80] sm:$0xff] }
 0x2b0   : > { %6955 = vmatprep.subr.mxu1 %v10260_v0  ;;  %6964 = vmatprep.subr.mxu0 %v1222_v38 }
 0x2b1   : > { %6956 = vmatpush3.msra.mxu1 %v8930_v40  ;;  %6965 = vmatpush3.msra.mxu0 %v1222_v38  ;;  %v1221_v40 = vld [vmem:[%s10233_s7 + $0x28] sm:$0xff] }
 0x2b2   : > { %6957 = vmatprep.subr.mxu1 %v10260_v0  ;;  %6966 = vmatprep.subr.mxu0 %v1221_v40 }
 0x2b3   : > { %6958 = vmatpush3.msra.mxu1 %v8934_v41  ;;  %v6199_v41 = vld [vmem:[%s10233_s7 + $0x68] sm:$0xff]  ;;  %6967 = vmatpush3.msra.mxu0 %v1221_v40 }
 0x2b4   : > { %6990 = vmatprep.subr.mxu1 %v6201_v15  ;;  %6968 = vmatprep.subr.mxu0 %v1220_v42 }
 0x2b5   : > { %6969 = vmatpush3.msra.mxu0 %v1220_v42 }
 0x2b6   : > { %6970 = vmatprep.subr.mxu0 %v1219_v44 }
 0x2b7   : > { %6971 = vmatpush3.msra.mxu0 %v1219_v44 }
 0x2b8   : > { %6972 = vmatprep.subr.mxu0 %v1218_v46 }
 0x2b9   : > { %6973 = vmatpush3.msra.mxu0 %v1218_v46 }
 0x2ba   : > { %6974 = vmatprep.subr.mxu0 %v1217_v49 }
 0x2bb   : > { %6975 = vmatpush3.msra.mxu0 %v1217_v49 }
 0x2bc   : > { %6976 = vmatprep.subr.mxu0 %v1216_v56 }
 0x2bd   : > { %6977 = vmatpush3.msra.mxu0 %v1216_v56  ;;  %v6202_v56 = vld [vmem:[#allocation8 + $0x1] ss:$0 sm:$0xff] }
 0x2be   : > { %7018 = vmatprep.subr.mxu0 %v6218_v58 }
 0x36c   : > { %v1097_v35 = vpop.f32.mrf.mxu1 }
 0x36d   : > { %v1101_v36 = vmul.f32 0.0078125, %v1097_v35  ;;  %v6213_v35 = vld [vmem:[%s10233_s7 + $0x90] sm:$0xff] }
 0x36e   : > { %v6950_v37 = vpop.f32.mrf.mxu1 }
 0x36f   : > { %6960 = vmatmul.mubr.msk.f32.vlgmr.msra.gmra.mxu1 %vm913_vm2, %v1101_v36  ;;  %v6212_v37 = vld [vmem:[%s10233_s7 + $0x88] sm:$0xff] }
 0x370   : > { %6991 = vmatpush3.msra.mxu1 %v6201_v15 }
 0x371   : > { %6992 = vmatprep.subr.mxu1 %v6200_v39 }
 0x372   : > { %6993 = vmatpush3.msra.mxu1 %v6200_v39  ;;  %v9132_v39 = vld [vmem:[#allocation8] ss:$0 sm:$0xff] }
 0x373   : > { %6994 = vmatprep.subr.mxu1 %v6199_v41 }
 0x374   : > { %6995 = vmatpush3.msra.mxu1 %v6199_v41 }
 0x375   : > { %6996 = vmatprep.subr.mxu1 %v6198_v43 }
 0x376   : > { %6997 = vmatpush3.msra.mxu1 %v6198_v43 }
 0x377   : > { %6998 = vmatprep.subr.mxu1 %v6197_v45 }
 0x378   : > { %6999 = vmatpush3.msra.mxu1 %v6197_v45 }
 0x379   : > { %7000 = vmatprep.subr.mxu1 %v6196_v48 }
 0x37a   : > { %7001 = vmatpush3.msra.mxu1 %v6196_v48 }
 0x37b   : > { %7002 = vmatprep.subr.mxu1 %v6195_v50 }
 0x37c   : > { %7003 = vmatpush3.msra.mxu1 %v6195_v50 }
 0x37d   : > { %7004 = vmatprep.subr.mxu1 %v6194_v57 }
 0x37e   : > { %7005 = vmatpush3.msra.mxu1 %v6194_v57 }
 0x42f   : > { %v1171_v60 = vpop.f32.mrf.mxu1 }
 0x430   : > { %v1172_v61 = vadd.f32 1e-06, %v1171_v60 }
 0x431   : > { %v6961_v62 = vpop.f32.mrf.mxu1 }
 0x432   : > { %7922 = vrsqrt.f32 %v1172_v61 }
 0x43f   : > { %v7923_v63 = vpop.eup %7922 }
 0x440   : > { %v1179_v5 = vrot.slane %v7923_v63, %v8957_v47 }
 0x442   : > { %v1180_v7 = vmul.f32 %v1179_v5, %v8961_v51  ;;  %v1181_v10 = vmul.f32 %v1179_v5, %v8964_v52  ;;  %v1182_v11 = vmul.f32 %v1179_v5, %v8967_v53  ;;  %v1183_v13 = vmul.f32 %v1179_v5, %v8970_v54  ;;  %v6217_v54 = vld [vmem:[%s10233_s7 + $0xb0] sm:$0xff] }
 0x443   : > { %v1184_v21 = vmul.f32 %v1179_v5, %v8973_v55  ;;  %v1185_v51 = vmul.f32 %v1179_v5, %v8982_v59  ;;  %v1186_v53 = vmul.f32 %v1179_v5, %v8989_v4  ;;  %v1187_v27 = vmul.f32 %v1179_v5, %v8995_v8  ;;  %v6214_v8 = vld [vmem:[%s10233_s7 + $0x98] sm:$0xff] }
 0x444   : > { %v1194_v17 = vmul.f32 %v6183_v6, %v1180_v7  ;;  %v1195_v18 = vmul.f32 %v6183_v6, %v1181_v10  ;;  %v1196_v19 = vmul.f32 %v6183_v6, %v1182_v11  ;;  %v1197_v25 = vmul.f32 %v6183_v6, %v1183_v13 }
 0x445   : > { %v1198_v55 = vmul.f32 %v6183_v6, %v1184_v21  ;;  %v1199_v4 = vmul.f32 %v6183_v6, %v1185_v51  ;;  %v1200_v29 = vmul.f32 %v6183_v6, %v1186_v53  ;;  %v1201_v33 = vmul.f32 %v6183_v6, %v1187_v27  ;;  %v6219_v21 = vld [vmem:[#allocation8 + $0x2] ss:$0 sm:$0xff] }
 0x446   : > { %v1208_v22 = vadd.f32 %v6184_v12, %v1194_v17  ;;  %v1209_v23 = vadd.f32 %v6184_v12, %v1195_v18  ;;  %v1210_v52 = vadd.f32 %v6184_v12, %v1196_v19  ;;  %v1211_v59 = vadd.f32 %v6184_v12, %v1197_v25 }
 0x447   : > { %v1212_v30 = vadd.f32 %v6184_v12, %v1198_v55  ;;  %v1213_v32 = vadd.f32 %v6184_v12, %v1199_v4  ;;  %v1214_v34 = vadd.f32 %v6184_v12, %v1200_v29  ;;  %v1215_v36 = vadd.f32 %v6184_v12, %v1201_v33 }
 0x448   : > { %6978 = vmatprep.mubr.msk.f32.mxu0 %vm767_vm0, %v1208_v22  ;;  %7006 = vmatprep.mubr.msk.f32.mxu1 %vm767_vm0, %v1208_v22 }
 0x449   : > { %6979 = vmatmul.mubr.msk.f32.vlgmr.msra.gmra.mxu0 %vm767_vm0, %v1209_v23  ;;  %7007 = vmatmul.mubr.msk.f32.vlgmr.msra.gmra.mxu1 %vm767_vm0, %v1209_v23 }
 0x44a   : > { %6981 = vmatprep.mubr.msk.f32.mxu0 %vm767_vm0, %v1210_v52  ;;  %7009 = vmatprep.mubr.msk.f32.mxu1 %vm767_vm0, %v1210_v52 }
 0x44b   : > { %7019 = vmatpush3.msra.mxu0 %v6218_v58 }
 0x44c   : > { %7020 = vmatprep.subr.mxu0 %v6217_v54 }
 0x44d   : > { %7021 = vmatpush3.msra.mxu0 %v6217_v54  ;;  %7010 = vmatmul.mubr.msk.f32.gmra.mxu1 %vm767_vm0, %v1211_v59 }
 0x44e   : > { %6982 = vmatmul.mubr.msk.f32.gmra.mxu0 %vm767_vm0, %v1211_v59  ;;  %7022 = vmatprep.subr.mxu0 %v6216_v26 }
 0x44f   : > { %6984 = vmatprep.mubr.msk.f32.mxu0 %vm767_vm0, %v1212_v30  ;;  %7012 = vmatprep.mubr.msk.f32.mxu1 %vm767_vm0, %v1212_v30 }
 0x450   : > { %7023 = vmatpush3.msra.mxu0 %v6216_v26 }
 0x451   : > { %7024 = vmatprep.subr.mxu0 %v6215_v31  ;;  %7013 = vmatmul.mubr.msk.f32.gmra.mxu1 %vm767_vm0, %v1213_v32 }
 0x452   : > { %7025 = vmatpush3.msra.mxu0 %v6215_v31  ;;  %7015 = vmatprep.mubr.msk.f32.mxu1 %vm767_vm0, %v1214_v34 }
 0x453   : > { %6985 = vmatmul.mubr.msk.f32.gmra.mxu0 %vm767_vm0, %v1213_v32  ;;  %7026 = vmatprep.subr.mxu0 %v6214_v8 }
 0x454   : > { %6987 = vmatprep.mubr.msk.f32.mxu0 %vm767_vm0, %v1214_v34  ;;  %7027 = vmatpush3.msra.mxu0 %v6214_v8 }
 0x455   : > { %7028 = vmatprep.subr.mxu0 %v6213_v35  ;;  %7016 = vmatmul.mubr.msk.f32.gmra.mxu1 %vm767_vm0, %v1215_v36 }
 0x456   : > { %7029 = vmatpush3.msra.mxu0 %v6213_v35 }
 0x457   : > { %6988 = vmatmul.mubr.msk.f32.gmra.mxu0 %vm767_vm0, %v1215_v36  ;;  %7030 = vmatprep.subr.mxu0 %v6212_v37 }
 0x458   : > { %7031 = vmatpush3.msra.mxu0 %v6212_v37  ;;  %7034 = vmatprep.mubr.msk.f32.mxu0 %vm767_vm0, %v1208_v22 }
 0x459   : > { %7032 = vmatprep.subr.mxu0 %v6211_v14 }
 0x45a   : > { %7033 = vmatpush3.msra.mxu0 %v6211_v14 }
 0x45b   : > { %7035 = vmatmul.mubr.msk.f32.vlgmr.msra.gmra.mxu0 %vm767_vm0, %v1209_v23 }
 0x45c   : > { %7037 = vmatprep.mubr.msk.f32.mxu0 %vm767_vm0, %v1210_v52 }
 0x45f   : > { %7038 = vmatmul.mubr.msk.f32.gmra.mxu0 %vm767_vm0, %v1211_v59 }
 0x460   : > { %7040 = vmatprep.mubr.msk.f32.mxu0 %vm767_vm0, %v1212_v30 }
 0x463   : > { %7041 = vmatmul.mubr.msk.f32.gmra.mxu0 %vm767_vm0, %v1213_v32 }
 0x464   : > { %7043 = vmatprep.mubr.msk.f32.mxu0 %vm767_vm0, %v1214_v34 }
 0x467   : > { %7044 = vmatmul.mubr.msk.f32.gmra.mxu0 %vm767_vm0, %v1215_v36 }
 0x509   : > { %v9130_v15 = vpop.f32.mrf.mxu0  ;;  %v7008_v38 = vpop.f32.mrf.mxu1 }
 0x50a   : > { %v1449_v53 = vadd.f32 %v7008_v38, %v6202_v56  ;;  %v1327_v29 = vadd.f32 %v9130_v15, %v9132_v39 }
 0x50b   : > { %v1321_v40 = vpop.f32.mrf.mxu0  ;;  %v1443_v41 = vpop.f32.mrf.mxu1 }
 0x50c   : > { %v1322_v42 = vadd.f32 %v9132_v39, %v1321_v40  ;;  %v1444_v59 = vadd.f32 %v6202_v56, %v1443_v41 }
 0x50d   : > { %v7011_v43 = vpop.f32.mrf.mxu1 }
 0x50e   : > { %v9135_v44 = vpop.f32.mrf.mxu0  ;;  %7062 = vmatprep.mubr.msk.f32.mxu1 %vm767_vm0, %v1322_v42  ;;  %v1459_v18 = vadd.f32 %v7011_v43, %v6202_v56 }
 0x50f   : > { %v1453_v45 = vpop.f32.mrf.mxu1  ;;  %v1337_v32 = vadd.f32 %v9135_v44, %v9132_v39 }
 0x510   : > { %v9138_v46 = vpop.f32.mrf.mxu0  ;;  %v1454_v23 = vadd.f32 %v6202_v56, %v1453_v45 }
 0x511   : > { %v7014_v48 = vpop.f32.mrf.mxu1  ;;  %v1332_v31 = vadd.f32 %v9132_v39, %v9138_v46 }
 0x512   : > { %v1469_v7 = vadd.f32 %v7014_v48, %v6202_v56 }
 0x513   : > { %v9140_v49 = vpop.f32.mrf.mxu0  ;;  %v1463_v50 = vpop.f32.mrf.mxu1 }
 0x514   : > { %v1464_v12 = vadd.f32 %v6202_v56, %v1463_v50  ;;  %v1347_v8 = vadd.f32 %v9140_v49, %v9132_v39 }
 0x515   : > { %v9142_v57 = vpop.f32.mrf.mxu0  ;;  %v7017_v58 = vpop.f32.mrf.mxu1 }
 0x516   : > { %v1479_v60 = vadd.f32 %v7017_v58, %v6202_v56  ;;  %v1342_v33 = vadd.f32 %v9132_v39, %v9142_v57 }
 0x517   : > { %v9144_v61 = vpop.f32.mrf.mxu0  ;;  %v1473_v62 = vpop.f32.mrf.mxu1 }
 0x518   : > { %v1474_v63 = vadd.f32 %v6202_v56, %v1473_v62  ;;  %7046 = vmatprep.subr.msk.mxu1 %vm767_vm0, %v1479_v60 }
 0x519   : > { %v9147_v5 = vpop.f32.mrf.mxu0  ;;  %7047 = vmatpush3.xpose.msk.msra.mxu1 %vm767_vm0, %v1479_v60 }
 0x51a   : > { %7048 = vmatprep.subr.msk.mxu1 %vm767_vm0, %v1474_v63  ;;  %v1352_v34 = vadd.f32 %v9132_v39, %v9147_v5 }
 0x51b   : > { %v7036_v6 = vpop.f32.mrf.mxu0 }
 0x51c   : > { %v1571_v27 = vadd.f32 %v7036_v6, %v6219_v21 }
 0x51d   : > { %v1565_v10 = vpop.f32.mrf.mxu0  ;;  %7049 = vmatpush3.xpose.msk.msra.mxu1 %vm767_vm0, %v1474_v63 }
 0x51e   : > { %7050 = vmatprep.subr.msk.mxu1 %vm767_vm0, %v1469_v7  ;;  %v1566_v30 = vadd.f32 %v6219_v21, %v1565_v10 }
 0x51f   : > { %v7039_v11 = vpop.f32.mrf.mxu0 }
 0x520   : > { %v1581_v26 = vadd.f32 %v7039_v11, %v6219_v21 }
 0x521   : > { %v1575_v13 = vpop.f32.mrf.mxu0  ;;  %7051 = vmatpush3.xpose.msk.msra.mxu1 %vm767_vm0, %v1469_v7 }
 0x522   : > { %7052 = vmatprep.subr.msk.mxu1 %vm767_vm0, %v1464_v12  ;;  %v1576_v4 = vadd.f32 %v6219_v21, %v1575_v13 }
 0x523   : > { %v7042_v17 = vpop.f32.mrf.mxu0 }
 0x524   : > { %v1591_v54 = vadd.f32 %v7042_v17, %v6219_v21 }
 0x525   : > { %v1585_v19 = vpop.f32.mrf.mxu0  ;;  %7053 = vmatpush3.xpose.msk.msra.mxu1 %vm767_vm0, %v1464_v12 }
 0x526   : > { %7054 = vmatprep.subr.msk.mxu1 %vm767_vm0, %v1459_v18  ;;  %v1586_v55 = vadd.f32 %v6219_v21, %v1585_v19 }
 0x527   : > { %v7045_v22 = vpop.f32.mrf.mxu0 }
 0x528   : > { %v1601_v25 = vadd.f32 %v7045_v22, %v6219_v21 }
 0x529   : > { %v1595_v51 = vpop.f32.mrf.mxu0  ;;  %7055 = vmatpush3.xpose.msk.msra.mxu1 %vm767_vm0, %v1459_v18 }
 0x52a   : > { %v1596_v52 = vadd.f32 %v6219_v21, %v1595_v51  ;;  %7074 = vmatprep.subr.mxu0 %v1601_v25  ;;  %7056 = vmatprep.subr.msk.mxu1 %vm767_vm0, %v1454_v23 }
 0x52b   : > { %7075 = vmatpush3.msra.mxu0 %v1601_v25 }
 0x52c   : > { %7076 = vmatprep.subr.mxu0 %v1596_v52 }
 0x52d   : > { %7077 = vmatpush3.msra.mxu0 %v1596_v52  ;;  %7057 = vmatpush3.xpose.msk.msra.mxu1 %vm767_vm0, %v1454_v23 }
 0x52e   : > { %7078 = vmatprep.subr.mxu0 %v1591_v54  ;;  %7058 = vmatprep.subr.msk.mxu1 %vm767_vm0, %v1449_v53 }
 0x52f   : > { %7079 = vmatpush3.msra.mxu0 %v1591_v54 }
 0x530   : > { %7080 = vmatprep.subr.mxu0 %v1586_v55 }
 0x531   : > { %7081 = vmatpush3.msra.mxu0 %v1586_v55  ;;  %7059 = vmatpush3.xpose.msk.msra.mxu1 %vm767_vm0, %v1449_v53 }
 0x532   : > { %7082 = vmatprep.subr.mxu0 %v1581_v26  ;;  %7060 = vmatprep.subr.msk.mxu1 %vm767_vm0, %v1444_v59 }
 0x533   : > { %7083 = vmatpush3.msra.mxu0 %v1581_v26 }
 0x534   : > { %7084 = vmatprep.subr.mxu0 %v1576_v4 }
 0x535   : > { %7085 = vmatpush3.msra.mxu0 %v1576_v4  ;;  %7061 = vmatpush3.xpose.msk.msra.mxu1 %vm767_vm0, %v1444_v59 }
 0x536   : > { %7086 = vmatprep.subr.mxu0 %v1571_v27  ;;  %7130 = vmatprep.subr.mxu1 %v10260_v0 }
 0x537   : > { %7087 = vmatpush3.msra.mxu0 %v1571_v27 }
 0x538   : > { %7088 = vmatprep.subr.mxu0 %v1566_v30  ;;  %7063 = vmatmul.mubr.msk.f32.vlgmr.msra.gmra.mxu1 %vm767_vm0, %v1327_v29 }
 0x539   : > { %7089 = vmatpush3.msra.mxu0 %v1566_v30  ;;  %7065 = vmatprep.mubr.msk.f32.mxu1 %vm767_vm0, %v1332_v31  ;;  %v1981_v31 = vld [vmem:[%s10358_s9 + $0x38] sm:$0xff] }
 0x53a   : > { %7131 = vmatpush3.msra.mxu1 %v8829_v1  ;;  %v1357_v1 = vadd.f32 %v9144_v61, %v9132_v39  ;;  %7102 = vmatprep.subr.mxu0 %v1981_v31 }
 0x53b   : > { %7132 = vmatprep.subr.mxu1 %v10260_v0 }
 0x53c   : > { %7066 = vmatmul.mubr.msk.f32.gmra.mxu1 %vm767_vm0, %v1337_v32 }
 0x53d   : > { %7068 = vmatprep.mubr.msk.f32.mxu1 %vm767_vm0, %v1342_v33  ;;  %7133 = vmatpush3.msra.mxu1 %v8834_v2 }
 0x53e   : > { %7134 = vmatprep.subr.mxu1 %v10260_v0 }
 0x53f   : > { %7135 = vmatpush3.msra.mxu1 %v8841_v3 }
 0x540   : > { %7069 = vmatmul.mubr.msk.f32.gmra.mxu1 %vm767_vm0, %v1347_v8  ;;  %7136 = vmatprep.subr.mxu1 %v10260_v0 }
 0x541   : > { %7071 = vmatprep.mubr.msk.f32.mxu1 %vm767_vm0, %v1352_v34  ;;  %7137 = vmatpush3.msra.mxu1 %v8862_v9 }
 0x542   : > { %7138 = vmatprep.subr.mxu1 %v10260_v0 }
 0x543   : > { %7139 = vmatpush3.msra.mxu1 %v8880_v16 }
 0x544   : > { %7072 = vmatmul.mubr.msk.f32.gmra.mxu1 %vm767_vm0, %v1357_v1  ;;  %7140 = vmatprep.subr.mxu1 %v10260_v0 }
 0x545   : > { %7141 = vmatpush3.msra.mxu1 %v8894_v20  ;;  %7146 = vmatprep.mubr.msk.f32.mxu1 %vm8445_vm1, %v10260_v0 }
 0x546   : > { %7142 = vmatprep.subr.mxu1 %v10260_v0 }
 0x547   : > { %7143 = vmatpush3.msra.mxu1 %v8908_v24 }
 0x548   : > { %7144 = vmatprep.subr.mxu1 %v10260_v0 }
 0x549   : > { %7145 = vmatpush3.msra.mxu1 %v8920_v28 }
 0x54a   : > { %7149 = vmatprep.subr.mxu1 %v10260_v0 }
 0x5f8   : > { %v7064_v2 = vpop.f32.mrf.mxu1 }
 0x5f9   : > { %v1760_v35 = vsel %vm767_vm0, %v7064_v2, -inf }
 0x5fa   : > { %v1718_v3 = vpop.f32.mrf.mxu1 }
 0x5fb   : > { %v1757_v9 = vsel %vm767_vm0, %v1718_v3, -inf }
 0x5fc   : > { %1758 = vmax.xlane.f32.xlu0 %v1757_v9  ;;  %v7067_v16 = vpop.f32.mrf.mxu1 }
 0x5fd   : > { %v1766_v14 = vsel %vm767_vm0, %v7067_v16, -inf }
 0x5fe   : > { %v1728_v20 = vpop.f32.mrf.mxu1 }
 0x5ff   : > { %v1763_v36 = vsel %vm767_vm0, %v1728_v20, -inf }
 0x600   : > { %1761 = vmax.xlane.f32.xlu0 %v1760_v35  ;;  %1764 = vmax.xlane.f32.xlu1 %v1763_v36  ;;  %v7070_v24 = vpop.f32.mrf.mxu1 }
 0x601   : > { %v1772_v39 = vsel %vm767_vm0, %v7070_v24, -inf }
 0x602   : > { %v1738_v37 = vpop.f32.mrf.mxu1 }
 0x603   : > { %v1769_v28 = vsel %vm767_vm0, %v1738_v37, -inf }
 0x604   : > { %1767 = vmax.xlane.f32.xlu1 %v1766_v14  ;;  %1770 = vmax.xlane.f32.xlu0 %v1769_v28  ;;  %v7073_v15 = vpop.f32.mrf.mxu1  ;;  %v1980_v14 = vld [vmem:[%s10358_s9 + $0x30] sm:$0xff] }
 0x605   : > { %v1778_v41 = vsel %vm767_vm0, %v7073_v15, -inf }
 0x606   : > { %v1748_v38 = vpop.f32.mrf.mxu1 }
 0x607   : > { %v1775_v40 = vsel %vm767_vm0, %v1748_v38, -inf }
 0x608   : > { %1773 = vmax.xlane.f32.xlu1 %v1772_v39  ;;  %1776 = vmax.xlane.f32.xlu0 %v1775_v40 }
 0x60c   : > { %1779 = vmax.xlane.f32.xlu1 %v1778_v41  ;;  %v1978_v41 = vld [vmem:[%s10358_s9 + $0x20] sm:$0xff] }
 0x685   : > { %v1759_v42 = vpop.xlane.xlu0 %1758 }
 0x686   : > { %v1781_v43 = vsub.f32 %v1718_v3, %v1759_v42 }
 0x688   : > { %v1789_v44 = vmul.f32 1.442695, %v1781_v43  ;;  %v1977_v43 = vld [vmem:[%s10358_s9 + $0x18] sm:$0xff] }
 0x689   : > { %v1762_v45 = vpop.xlane.xlu0 %1761  ;;  %v1765_v46 = vpop.xlane.xlu1 %1764 }
 0x68a   : > { %7924 = vpow2.f32 %v1789_v44  ;;  %v1782_v48 = vsub.f32 %v7064_v2, %v1762_v45  ;;  %v1783_v49 = vsub.f32 %v1728_v20, %v1765_v46 }
 0x68c   : > { %v1791_v50 = vmul.f32 1.442695, %v1782_v48  ;;  %v1793_v56 = vmul.f32 1.442695, %v1783_v49  ;;  %v1976_v48 = vld [vmem:[%s10358_s9 + $0x10] sm:$0xff] }
 0x68d   : > { %v1768_v57 = vpop.xlane.xlu1 %1767  ;;  %v1771_v58 = vpop.xlane.xlu0 %1770 }
 0x68e   : > { %7926 = vpow2.f32 %v1791_v50  ;;  %v1784_v60 = vsub.f32 %v7067_v16, %v1768_v57  ;;  %v1785_v61 = vsub.f32 %v1738_v37, %v1771_v58  ;;  %v1975_v50 = vld [vmem:[%s10358_s9 + $0x8] sm:$0xff]  ;;  %v1974_v57 = vld [vmem:[%s10358_s9] sm:$0xff] }
 0x68f   : > { %7928 = vpow2.f32 %v1793_v56 }
 0x690   : > { %v1795_v62 = vmul.f32 1.442695, %v1784_v60  ;;  %v1797_v63 = vmul.f32 1.442695, %v1785_v61 }
 0x691   : > { %v1774_v5 = vpop.xlane.xlu1 %1773  ;;  %v1777_v6 = vpop.xlane.xlu0 %1776 }
 0x692   : > { %7930 = vpow2.f32 %v1795_v62  ;;  %v1786_v7 = vsub.f32 %v7070_v24, %v1774_v5  ;;  %v1787_v10 = vsub.f32 %v1748_v38, %v1777_v6  ;;  %v7992_v62 = vld [vmem:[%s10354_s12 + $0x38] sm:$0xff]  ;;  %v7993_v5 = vld [vmem:[%s10354_s12 + $0x30] sm:$0xff] }
 0x693   : > { %7932 = vpow2.f32 %v1797_v63 }
 0x694   : > { %v1799_v11 = vmul.f32 1.442695, %v1786_v7  ;;  %v1801_v12 = vmul.f32 1.442695, %v1787_v10  ;;  %v7994_v7 = vld [vmem:[%s10354_s12 + $0x28] sm:$0xff] }
 0x695   : > { %v1780_v13 = vpop.xlane.xlu1 %1779 }
 0x696   : > { %7934 = vpow2.f32 %v1799_v11  ;;  %v1788_v17 = vsub.f32 %v7073_v15, %v1780_v13  ;;  %v1979_v15 = vld [vmem:[%s10358_s9 + $0x28] sm:$0xff]  ;;  %v7995_v11 = vld [vmem:[%s10354_s12 + $0x20] sm:$0xff]  ;;  %v7996_v13 = vld [vmem:[%s10354_s12 + $0x18] sm:$0xff] }
 0x697   : > { %v7925_v18 = vpop.eup %7924  ;;  %7936 = vpow2.f32 %v1801_v12 }
 0x698   : > { %v1803_v19 = vmul.f32 1.442695, %v1788_v17  ;;  %v1805_v21 = vsel %vm767_vm0, %v7925_v18, 0.0 }
 0x699   : > { %1806 = vadd.xlane.f32.xlu0 %v1805_v21  ;;  %v7999_v21 = vld [vmem:[%s10354_s12] sm:$0xff] }
 0x69a   : > { %7938 = vpow2.f32 %v1803_v19  ;;  %v7998_v19 = vld [vmem:[%s10354_s12 + $0x8] sm:$0xff] }
 0x69b   : > { %v7927_v22 = vpop.eup %7926 }
 0x69c   : > { %v7929_v23 = vpop.eup %7928  ;;  %v1808_v25 = vsel %vm767_vm0, %v7927_v22, 0.0 }
 0x69d   : > { %1809 = vadd.xlane.f32.xlu1 %v1808_v25  ;;  %v1811_v51 = vsel %vm767_vm0, %v7929_v23, 0.0 }
 0x69e   : > { %1812 = vadd.xlane.f32.xlu0 %v1811_v51 }
 0x69f   : > { %v7931_v52 = vpop.eup %7930 }
 0x6a0   : > { %v7933_v53 = vpop.eup %7932  ;;  %v1814_v54 = vsel %vm767_vm0, %v7931_v52, 0.0 }
 0x6a1   : > { %1815 = vadd.xlane.f32.xlu1 %v1814_v54  ;;  %v1817_v55 = vsel %vm767_vm0, %v7933_v53, 0.0  ;;  %v8000_v54 = vld [vmem:[%s8766_s28 + $0x8] sm:$0xff] }
 0x6a2   : > { %1818 = vadd.xlane.f32.xlu0 %v1817_v55 }
 0x6a3   : > { %v7935_v59 = vpop.eup %7934 }
 0x6a4   : > { %v7937_v26 = vpop.eup %7936  ;;  %v1820_v4 = vsel %vm767_vm0, %v7935_v59, 0.0 }
 0x6a5   : > { %1821 = vadd.xlane.f32.xlu1 %v1820_v4  ;;  %v1823_v27 = vsel %vm767_vm0, %v7937_v26, 0.0 }
 0x6a6   : > { %1824 = vadd.xlane.f32.xlu0 %v1823_v27 }
 0x6a7   : > { %v7939_v29 = vpop.eup %7938 }
 0x6a8   : > { %v1826_v30 = vsel %vm767_vm0, %v7939_v29, 0.0 }
 0x6a9   : > { %1827 = vadd.xlane.f32.xlu1 %v1826_v30 }
 0x722   : > { %v1807_v32 = vpop.xlane.xlu0 %1806 }
 0x723   : > { %7940 = vrcp.f32 %v1807_v32 }
 0x726   : > { %v1810_v33 = vpop.xlane.xlu1 %1809 }
 0x727   : > { %7942 = vrcp.f32 %v1810_v33  ;;  %v1813_v8 = vpop.xlane.xlu0 %1812  ;;  %v8002_v33 = vld [vmem:[%s8766_s28 + $0x18] sm:$0xff] }
 0x728   : > { %7944 = vrcp.f32 %v1813_v8 }
 0x72a   : > { %v1816_v34 = vpop.xlane.xlu1 %1815 }
 0x72b   : > { %7946 = vrcp.f32 %v1816_v34  ;;  %v1819_v1 = vpop.xlane.xlu0 %1818  ;;  %v8003_v34 = vld [vmem:[%s8766_s28 + $0x10] sm:$0xff] }
 0x72c   : > { %7948 = vrcp.f32 %v1819_v1 }
 0x72e   : > { %v1822_v2 = vpop.xlane.xlu1 %1821 }
 0x72f   : > { %7950 = vrcp.f32 %v1822_v2  ;;  %v1825_v3 = vpop.xlane.xlu0 %1824 }
 0x730   : > { %v7941_v9 = vpop.eup %7940  ;;  %7952 = vrcp.f32 %v1825_v3 }
 0x731   : > { %v1837_v16 = vmul.f32 %v7941_v9, %v7925_v18  ;;  %v7997_v18 = vld [vmem:[%s10354_s12 + $0x10] sm:$0xff] }
 0x732   : > { %v1828_v20 = vpop.xlane.xlu1 %1827 }
 0x733   : > { %7954 = vrcp.f32 %v1828_v20  ;;  %7090 = vmatprep.mubr.msk.f32.mxu0 %vm767_vm0, %v1837_v16 }
 0x734   : > { %v7943_v35 = vpop.eup %7942 }
 0x735   : > { %v7945_v36 = vpop.eup %7944  ;;  %v1838_v24 = vmul.f32 %v7943_v35, %v7927_v22  ;;  %v6252_v22 = vld [vmem:[#allocation9] ss:$0 sm:$0xff] }
 0x736   : > { %v1839_v37 = vmul.f32 %v7945_v36, %v7929_v23 }
 0x737   : > { %7091 = vmatmul.mubr.msk.f32.vlgmr.msra.gmra.mxu0 %vm767_vm0, %v1838_v24 }
 0x738   : > { %v7947_v28 = vpop.eup %7946  ;;  %7093 = vmatprep.mubr.msk.f32.mxu0 %vm767_vm0, %v1839_v37  ;;  %7103 = vmatpush3.msra.mxu0 %v1981_v31  ;;  %v8004_v37 = vld [vmem:[%s8766_s28 + $0x28] sm:$0xff] }
 0x739   : > { %v7949_v38 = vpop.eup %7948  ;;  %v1840_v39 = vmul.f32 %v7947_v28, %v7931_v52  ;;  %7104 = vmatprep.subr.mxu0 %v1980_v14  ;;  %v8005_v28 = vld [vmem:[%s8766_s28 + $0x20] sm:$0xff] }
 0x73a   : > { %v1841_v40 = vmul.f32 %v7949_v38, %v7933_v53  ;;  %7105 = vmatpush3.msra.mxu0 %v1980_v14 }
 0x73b   : > { %7094 = vmatmul.mubr.msk.f32.gmra.mxu0 %vm767_vm0, %v1840_v39  ;;  %7106 = vmatprep.subr.mxu0 %v1979_v15 }
 0x73c   : > { %v7951_v42 = vpop.eup %7950  ;;  %7096 = vmatprep.mubr.msk.f32.mxu0 %vm767_vm0, %v1841_v40  ;;  %7107 = vmatpush3.msra.mxu0 %v1979_v15 }
 0x73d   : > { %v7953_v44 = vpop.eup %7952  ;;  %v1842_v45 = vmul.f32 %v7951_v42, %v7935_v59  ;;  %7108 = vmatprep.subr.mxu0 %v1978_v41  ;;  %v8001_v59 = vld [vmem:[%s8766_s28] sm:$0xff] }
 0x73e   : > { %v1843_v46 = vmul.f32 %v7953_v44, %v7937_v26  ;;  %7109 = vmatpush3.msra.mxu0 %v1978_v41 }
 0x73f   : > { %7097 = vmatmul.mubr.msk.f32.gmra.mxu0 %vm767_vm0, %v1842_v45  ;;  %7110 = vmatprep.subr.mxu0 %v1977_v43  ;;  %v8006_v45 = vld [vmem:[%s8766_s28 + $0x38] sm:$0xff] }
 0x740   : > { %v7955_v49 = vpop.eup %7954  ;;  %7099 = vmatprep.mubr.msk.f32.mxu0 %vm767_vm0, %v1843_v46  ;;  %7111 = vmatpush3.msra.mxu0 %v1977_v43 }
 0x741   : > { %v1844_v56 = vmul.f32 %v7955_v49, %v7939_v29  ;;  %7112 = vmatprep.subr.mxu0 %v1976_v48 }
 0x742   : > { %7113 = vmatpush3.msra.mxu0 %v1976_v48  ;;  %v8007_v48 = vld [vmem:[%s8766_s28 + $0x30] sm:$0xff]  ;;  %s8447_s28 = smov [#allocation23]  }
 0x743   : > { %7100 = vmatmul.mubr.msk.f32.gmra.mxu0 %vm767_vm0, %v1844_v56  ;;  %7114 = vmatprep.subr.mxu0 %v1975_v50  ;;  %s8342_s11 = sshll.u32 %s8447_s28, 4  ;;  %s8343_s11 = int_to_ptr.vmem [resolvable:$false] %s8342_s11 }
 0x744   : > { %7115 = vmatpush3.msra.mxu0 %v1975_v50  ;;  %s8344_s4 = scalar_lea.vmem %s8343_s11, 2048  ;;  %p8345_p4 = scmp.lt.s32.totalorder %s10180_s10, %s8343_s11 }
 0x745   : > { %7116 = vmatprep.subr.mxu0 %v1974_v57  ;;  %p8346_p10 = scmp.lt.s32.totalorder %s8344_s4, %s8338_s8 }
 0x746   : > { %7117 = vmatpush3.msra.mxu0 %v1974_v57 }
 0x747   : > { %7160 = vmatprep.subr.mxu0 %v10260_v0  ;;  %p8347_p11 = por %p8346_p10, %p8345_p4 }
 0x749   : > { %p8348_p12 = pnand %p8347_p11, %p8341_p8 }
 0x7f7   : > { %v7092_v58 = vpop.f32.mrf.mxu0 }
 0x7f9   : > { %v1935_v60 = vpop.f32.mrf.mxu0 }
 0x7fa   : > { %7118 = vmatprep.mubr.msk.f32.mxu0 %vm767_vm0, %v1935_v60 }
 0x7fb   : > { %v7095_v61 = vpop.f32.mrf.mxu0  ;;  %7119 = vmatmul.mubr.msk.f32.vlgmr.msra.gmra.mxu0 %vm767_vm0, %v7092_v58 }
 0x7fc   : > { %7161 = vmatpush3.msra.mxu0 %v7992_v62 }
 0x7fd   : > { %v1945_v63 = vpop.f32.mrf.mxu0  ;;  %7162 = vmatprep.subr.mxu0 %v10260_v0 }
 0x7fe   : > { %7121 = vmatprep.mubr.msk.f32.mxu0 %vm767_vm0, %v1945_v63  ;;  %7163 = vmatpush3.msra.mxu0 %v7993_v5 }
 0x7ff   : > { %v7098_v6 = vpop.f32.mrf.mxu0  ;;  %7122 = vmatmul.mubr.msk.f32.gmra.mxu0 %vm767_vm0, %v7095_v61  ;;  %7164 = vmatprep.subr.mxu0 %v10260_v0 }
 0x800   : > { %7165 = vmatpush3.msra.mxu0 %v7994_v7 }
 0x801   : > { %v1955_v10 = vpop.f32.mrf.mxu0  ;;  %7166 = vmatprep.subr.mxu0 %v10260_v0 }
 0x802   : > { %7124 = vmatprep.mubr.msk.f32.mxu0 %vm767_vm0, %v1955_v10  ;;  %7167 = vmatpush3.msra.mxu0 %v7995_v11  ;;  %v8008_v10 = vld [vmem:[#allocation6 + $0x18] sm:$0xff]  ;;  %v8009_v11 = vld [vmem:[#allocation6 + $0x10] sm:$0xff] }
 0x803   : > { %v7101_v12 = vpop.f32.mrf.mxu0  ;;  %7125 = vmatmul.mubr.msk.f32.gmra.mxu0 %vm767_vm0, %v7098_v6  ;;  %7168 = vmatprep.subr.mxu0 %v10260_v0 }
 0x804   : > { %7169 = vmatpush3.msra.mxu0 %v7996_v13  ;;  %v8011_v13 = vld [vmem:[#allocation6] sm:$0xff] }
 0x805   : > { %v1965_v17 = vpop.f32.mrf.mxu0  ;;  %7170 = vmatprep.subr.mxu0 %v10260_v0 }
 0x806   : > { %7127 = vmatprep.mubr.msk.f32.mxu0 %vm767_vm0, %v1965_v17  ;;  %7171 = vmatpush3.msra.mxu0 %v7997_v18 }
 0x807   : > { %7128 = vmatmul.mubr.msk.f32.gmra.mxu0 %vm767_vm0, %v7101_v12  ;;  %7172 = vmatprep.subr.mxu0 %v10260_v0  ;;  %v8010_v12 = vld [vmem:[#allocation6 + $0x8] sm:$0xff] }
 0x808   : > { %7173 = vmatpush3.msra.mxu0 %v7998_v19  ;;  %7176 = vmatprep.mubr.msk.f32.mxu0 %vm8445_vm1, %v10260_v0 }
 0x809   : > { %7174 = vmatprep.subr.mxu0 %v10260_v0 }
 0x80a   : > { %7175 = vmatpush3.msra.mxu0 %v7999_v21 }
 0x8bb   : > { %v7120_v23 = vpop.f32.mrf.mxu0 }
 0x8bc   : > { %v2085_v25 = vadd.f32 %v7120_v23, %v6252_v22 }
 0x8bd   : > { %v2079_v51 = vpop.f32.mrf.mxu0 }
 0x8be   : > { %v2080_v52 = vadd.f32 %v6252_v22, %v2079_v51  ;;  %v9295_v55 = vadd.f32 %v8000_v54, %v2085_v25 }
 0x8bf   : > { %v7123_v53 = vpop.f32.mrf.mxu0 }
 0x8c0   : > { %10359 = vst [vmem:[#allocation33_spill] sm:$0xff] %v9295_v55  ;;  %v9298_v26 = vadd.f32 %v8001_v59, %v2080_v52  ;;  %v2095_v4 = vadd.f32 %v7123_v53, %v6252_v22  ;;  %v2129_v32 = vsel %vm767_vm0, %v9295_v55, 0.0 }
 0x8c1   : > { %v2089_v27 = vpop.f32.mrf.mxu0 }
 0x8c2   : > { %10360 = vst [vmem:[#allocation34_spill] sm:$0xff] %v9298_v26  ;;  %v2128_v29 = vsel %vm767_vm0, %v9298_v26, 0.0  ;;  %v2090_v30 = vadd.f32 %v6252_v22, %v2089_v27  ;;  %v9305_v8 = vadd.f32 %v8002_v33, %v2095_v4 }
 0x8c3   : > { %v7126_v31 = vpop.f32.mrf.mxu0  ;;  %v2130_v3 = vadd.f32 %v2129_v32, %v2128_v29 }
 0x8c4   : > { %10361 = vst [vmem:[#allocation35_spill] sm:$0xff] %v9305_v8  ;;  %v9308_v1 = vadd.f32 %v8003_v34, %v2090_v30  ;;  %v2105_v2 = vadd.f32 %v7126_v31, %v6252_v22  ;;  %v2133_v24 = vsel %vm767_vm0, %v9305_v8, 0.0 }
 0x8c5   : > { %v2099_v9 = vpop.f32.mrf.mxu0 }
 0x8c6   : > { %10362 = vst [vmem:[#allocation36_spill] sm:$0xff] %v9308_v1  ;;  %v2131_v16 = vsel %vm767_vm0, %v9308_v1, 0.0  ;;  %v2100_v20 = vadd.f32 %v6252_v22, %v2099_v9  ;;  %v9315_v14 = vadd.f32 %v8004_v37, %v2105_v2 }
 0x8c7   : > { %v2132_v35 = vadd.f32 %v2131_v16, %v2130_v3  ;;  %v7129_v36 = vpop.f32.mrf.mxu0 }
 0x8c8   : > { %10363 = vst [vmem:[#allocation37_spill] sm:$0xff] %v9315_v14  ;;  %v9318_v15 = vadd.f32 %v8005_v28, %v2100_v20  ;;  %v2115_v38 = vadd.f32 %v7129_v36, %v6252_v22  ;;  %v2137_v44 = vsel %vm767_vm0, %v9315_v14, 0.0 }
 0x8c9   : > { %v2134_v39 = vadd.f32 %v2133_v24, %v2132_v35  ;;  %v2109_v40 = vpop.f32.mrf.mxu0 }
 0x8ca   : > { %10364 = vst [vmem:[#allocation38_spill] sm:$0xff] %v9318_v15  ;;  %v2135_v41 = vsel %vm767_vm0, %v9318_v15, 0.0  ;;  %v2110_v42 = vadd.f32 %v6252_v22, %v2109_v40  ;;  %v9325_v46 = vadd.f32 %v8006_v45, %v2115_v38 }
 0x8cb   : > { %v2136_v43 = vadd.f32 %v2135_v41, %v2134_v39 }
 0x8cc   : > { %10365 = vst [vmem:[#allocation39_spill] sm:$0xff] %v9325_v46  ;;  %v9328_v49 = vadd.f32 %v8007_v48, %v2110_v42  ;;  %v2141_v58 = vsel %vm767_vm0, %v9325_v46, 0.0 }
 0x8cd   : > { %v2138_v50 = vadd.f32 %v2137_v44, %v2136_v43 }
 0x8ce   : > { %10366 = vst [vmem:[#allocation40_spill] sm:$0xff] %v9328_v49  ;;  %v2139_v56 = vsel %vm767_vm0, %v9328_v49, 0.0 }
 0x8cf   : > { %v2140_v57 = vadd.f32 %v2139_v56, %v2138_v50 }
 0x8d1   : > { %v2142_v60 = vadd.f32 %v2141_v58, %v2140_v57 }
 0x8d3   : > { %v2143_v61 = vrot.slane %v2142_v60, 4 }
 0x8d5   : > { %v2144_v62 = vadd.f32 %v2143_v61, %v2142_v60  ;;  %v781_v60 = vld [vmem:[%s10367_s23 + $0x8] sm:$0xff]  ;;  %v8446_v61 = vmov 0  }
 0x8d6   : > { %7921 = vset.pattern.permute.xlu1 %v8446_v61  ;;  %7920 = vset.pattern.permute.xlu0 %v8446_v61 }
 0x8d7   : > { %v2145_v63 = vrot.slane %v2144_v62, 2  ;;  %2548 = vperm.xlu1 %7921, %v781_v60  }
 0x8d9   : > { %v2146_v5 = vadd.f32 %v2145_v63, %v2144_v62  ;;  %v788_v62 = vld [vmem:[%s10368_s1] sm:$0xff] }
 0x8da   : > { %v780_v63 = vld [vmem:[%s10367_s23] sm:$0xff] }
 0x8db   : > { %v2147_v6 = vrot.slane %v2146_v5, 1  ;;  %2543 = vperm.xlu0 %7920, %v780_v63   ;;  %2882 = vperm.xlu1 %7921, %v788_v62  }
 0x8dd   : > { %v2148_v7 = vadd.f32 %v2147_v6, %v2146_v5  ;;  %v785_v5 = vld [vmem:[%s10367_s23 + $0x28] sm:$0xff] }
 0x8de   : > { %v789_v6 = vld [vmem:[%s10368_s1 + $0x8] sm:$0xff] }
 0x8df   : > { %7147 = vmatmul.mubr.msk.f32.vlgmr.msra.gmra.mxu1 %vm767_vm0, %v2148_v7  ;;  %2568 = vperm.xlu0 %7920, %v785_v5   ;;  %v793_v7 = vld [vmem:[%s10368_s1 + $0x28] sm:$0xff] }
 0x8e0   : > { %7150 = vmatpush3.msra.mxu1 %v8008_v10  ;;  %7157 = vmatprep.mubr.msk.f32.mxu1 %vm8445_vm1, %v10260_v0 }
 0x8e1   : > { %7151 = vmatprep.subr.mxu1 %v10260_v0  ;;  %2887 = vperm.xlu1 %7921, %v789_v6  }
 0x8e2   : > { %7152 = vmatpush3.msra.mxu1 %v8009_v11 }
 0x8e3   : > { %7153 = vmatprep.subr.mxu1 %v10260_v0  ;;  %2907 = vperm.xlu0 %7920, %v793_v7   ;;  %v6265_v7 = vld [vmem:[#allocation11] ss:$0 sm:$0xff] }
 0x8e4   : > { %7154 = vmatpush3.msra.mxu1 %v8010_v12 }
 0x8e5   : > { %7155 = vmatprep.subr.mxu1 %v10260_v0 }
 0x8e6   : > { %7156 = vmatpush3.msra.mxu1 %v8011_v13 }
 0x8e7   : > { %7179 = vmatprep.subr.mxu1 %v10260_v0 }
 0x99f   : > { %v2218_v17 = vpop.f32.mrf.mxu1 }
 0x9a0   : > { %v2222_v18 = vmul.f32 0.0078125, %v2218_v17  ;;  %v790_v17 = vld [vmem:[%s10368_s1 + $0x10] sm:$0xff] }
 0x9a1   : > { %v7148_v19 = vpop.f32.mrf.mxu1 }
 0x9a2   : > { %7158 = vmatmul.mubr.msk.f32.vlgmr.msra.gmra.mxu1 %vm913_vm2, %v2222_v18  ;;  %v791_v18 = vld [vmem:[%s10368_s1 + $0x18] sm:$0xff]  ;;  %v784_v19 = vld [vmem:[%s10367_s23 + $0x20] sm:$0xff] }
 0x9a3   : > { %7180 = vmatpush3.msra.mxu1 %v8008_v10  ;;  %7187 = vmatprep.mubr.msk.f32.mxu1 %vm8445_vm1, %v10260_v0  ;;  %v782_v10 = vld [vmem:[%s10367_s23 + $0x10] sm:$0xff] }
 0x9a4   : > { %7181 = vmatprep.subr.mxu1 %v10260_v0  ;;  %2553 = vperm.xlu1 %7921, %v782_v10  }
 0x9a5   : > { %7182 = vmatpush3.msra.mxu1 %v8009_v11  ;;  %v787_v11 = vld [vmem:[%s10367_s23 + $0x38] sm:$0xff] }
 0x9a6   : > { %7183 = vmatprep.subr.mxu1 %v10260_v0  ;;  %2578 = vperm.xlu0 %7920, %v787_v11  }
 0x9a7   : > { %7184 = vmatpush3.msra.mxu1 %v8010_v12  ;;  %v783_v12 = vld [vmem:[%s10367_s23 + $0x18] sm:$0xff] }
 0x9a8   : > { %7185 = vmatprep.subr.mxu1 %v10260_v0  ;;  %2558 = vperm.xlu1 %7921, %v783_v12  }
 0x9a9   : > { %7186 = vmatpush3.msra.mxu1 %v8011_v13  ;;  %v795_v13 = vld [vmem:[%s10368_s1 + $0x38] sm:$0xff] }
 0x9aa   : > { %2917 = vperm.xlu0 %7920, %v795_v13  }
 0x9ac   : > { %2892 = vperm.xlu1 %7921, %v790_v17  }
 0x9b0   : > { %2897 = vperm.xlu1 %7921, %v791_v18  }
 0x9b4   : > { %2563 = vperm.xlu1 %7921, %v784_v19  }
 0xa62   : > { %v2292_v21 = vpop.f32.mrf.mxu1 }
 0xa63   : > { %v2299_v22 = vrot.slane %v2292_v21, %v8957_v47  ;;  %v792_v21 = vld [vmem:[%s10368_s1 + $0x20] sm:$0xff] }
 0xa64   : > { %v7159_v23 = vpop.f32.mrf.mxu1  ;;  %2902 = vperm.xlu1 %7921, %v792_v21  }
 0xa65   : > { %v9349_v25 = vsub.f32 %v9298_v26, %v2299_v22  ;;  %v9352_v51 = vsub.f32 %v9295_v55, %v2299_v22  ;;  %v9355_v52 = vsub.f32 %v9308_v1, %v2299_v22  ;;  %v9358_v53 = vsub.f32 %v9305_v8, %v2299_v22  ;;  %v794_v23 = vld [vmem:[%s10368_s1 + $0x30] sm:$0xff] }
 0xa66   : > { %v9361_v54 = vsub.f32 %v9318_v15, %v2299_v22  ;;  %v9370_v29 = vsub.f32 %v9315_v14, %v2299_v22  ;;  %v9377_v34 = vsub.f32 %v9328_v49, %v2299_v22  ;;  %v9383_v16 = vsub.f32 %v9325_v46, %v2299_v22  ;;  %v786_v22 = vld [vmem:[%s10367_s23 + $0x30] sm:$0xff] }
 0xa67   : > { %v2308_v59 = vmul.f32 %v9349_v25, %v9349_v25  ;;  %v2309_v4 = vmul.f32 %v9352_v51, %v9352_v51  ;;  %v2310_v27 = vmul.f32 %v9355_v52, %v9355_v52  ;;  %v2311_v30 = vmul.f32 %v9358_v53, %v9358_v53 }
 0xa68   : > { %v2312_v2 = vmul.f32 %v9361_v54, %v9361_v54  ;;  %v2313_v20 = vmul.f32 %v9370_v29, %v9370_v29  ;;  %v2314_v24 = vmul.f32 %v9377_v34, %v9377_v34  ;;  %v2315_v38 = vmul.f32 %v9383_v16, %v9383_v16  ;;  %2573 = vperm.xlu1 %7921, %v786_v22   ;;  %v6266_v22 = vld [vmem:[#allocation12] ss:$0 sm:$0xff] }
 0xa69   : > { %v2316_v31 = vsel %vm767_vm0, %v2308_v59, 0.0  ;;  %v2317_v32 = vsel %vm767_vm0, %v2309_v4, 0.0  ;;  %v2319_v3 = vsel %vm767_vm0, %v2310_v27, 0.0  ;;  %v2321_v35 = vsel %vm767_vm0, %v2311_v30, 0.0  ;;  %v2613_v30 = vld [vmem:[#allocation14 + $0x78] sm:$0xff] }
 0xa6a   : > { %v2318_v33 = vadd.f32 %v2317_v32, %v2316_v31  ;;  %v2323_v37 = vsel %vm767_vm0, %v2312_v2, 0.0  ;;  %v2325_v39 = vsel %vm767_vm0, %v2313_v20, 0.0  ;;  %v2327_v41 = vsel %vm767_vm0, %v2314_v24, 0.0  ;;  %7190 = vmatprep.subr.mxu0 %v2613_v30  ;;  %v2612_v31 = vld [vmem:[#allocation14 + $0x70] sm:$0xff]  ;;  %v2596_v32 = vld [vmem:[#allocation14 + $0x38] sm:$0xff] }
 0xa6b   : > { %v2329_v43 = vsel %vm767_vm0, %v2315_v38, 0.0  ;;  %7218 = vmatprep.subr.mxu1 %v2596_v32  ;;  %v2595_v2 = vld [vmem:[#allocation14 + $0x30] sm:$0xff]  ;;  %v2609_v20 = vld [vmem:[#allocation14 + $0x58] sm:$0xff]  ;;  %v2606_v38 = vld [vmem:[#allocation14 + $0x40] sm:$0xff] }
 0xa6c   : > { %v2320_v9 = vadd.f32 %v2319_v3, %v2318_v33  ;;  %2912 = vperm.xlu1 %7921, %v794_v23   ;;  %v2611_v33 = vld [vmem:[#allocation14 + $0x68] sm:$0xff]  ;;  %v2610_v3 = vld [vmem:[#allocation14 + $0x60] sm:$0xff]  ;;  %v2592_v24 = vld [vmem:[#allocation14 + $0x18] sm:$0xff] }
 0xa6e   : > { %v2322_v36 = vadd.f32 %v2321_v35, %v2320_v9  ;;  %v2594_v9 = vld [vmem:[#allocation14 + $0x28] sm:$0xff]  ;;  %v2593_v35 = vld [vmem:[#allocation14 + $0x20] sm:$0xff] }
 0xa70   : > { %v2324_v28 = vadd.f32 %v2323_v37, %v2322_v36  ;;  %v2608_v36 = vld [vmem:[#allocation14 + $0x50] sm:$0xff]  ;;  %v2607_v37 = vld [vmem:[#allocation14 + $0x48] sm:$0xff] }
 0xa72   : > { %v2326_v40 = vadd.f32 %v2325_v39, %v2324_v28  ;;  %v2591_v28 = vld [vmem:[#allocation14 + $0x10] sm:$0xff]  ;;  %v2590_v39 = vld [vmem:[#allocation14 + $0x8] sm:$0xff] }
 0xa74   : > { %v2328_v42 = vadd.f32 %v2327_v41, %v2326_v40  ;;  %v9446_v40 = vld [vmem:[#allocation14 + $0xb8] sm:$0xff] }
 0xa75   : > { %v2597_v41 = vld [vmem:[#allocation2 + $0x8] sm:$0xff] }
 0xa76   : > { %v2330_v44 = vadd.f32 %v2329_v43, %v2328_v42  ;;  %v9448_v42 = vpop.permute.xlu0 %2543  ;;  %v2589_v43 = vld [vmem:[#allocation14] sm:$0xff] }
 0xa77   : > { %10369 = vst [vmem:[#allocation41_spill] sm:$0xff] %v9448_v42 }
 0xa78   : > { %v2331_v45 = vrot.slane %v2330_v44, 4 }
 0xa7a   : > { %v2332_v48 = vadd.f32 %v2331_v45, %v2330_v44  ;;  %v2533_v44 = vld [vmem:[#allocation2 + $0x7] sm:$0xff] }
 0xa7b   : > { %v2581_v45 = vmul.f32 %v9448_v42, %v2533_v44  ;;  %v2933_v44 = vld [vmem:[#allocation14 + $0xa0] sm:$0xff] }
 0xa7c   : > { %v2333_v50 = vrot.slane %v2332_v48, 2 }
 0xa7e   : > { %v2334_v56 = vadd.f32 %v2333_v50, %v2332_v48  ;;  %v9454_v48 = vld [vmem:[#allocation14 + $0xf8] sm:$0xff]  ;;  %v9457_v50 = vpop.permute.xlu1 %2548 }
 0xa7f   : > { %10370 = vst [vmem:[#allocation42_spill] sm:$0xff] %v9457_v50 }
 0xa80   : > { %v2335_v57 = vrot.slane %v2334_v56, 1 }
 0xa82   : > { %v2336_v58 = vadd.f32 %v2335_v57, %v2334_v56  ;;  %v9459_v56 = vpop.permute.xlu1 %2882 }
 0xa83   : > { %10371 = vst [vmem:[#allocation43_spill] sm:$0xff] %v9459_v56 }
 0xa84   : > { %7177 = vmatmul.mubr.msk.f32.vlgmr.msra.gmra.mxu0 %vm767_vm0, %v2336_v58 }
 0xa85   : > { %7191 = vmatpush3.msra.mxu0 %v2613_v30  ;;  %7206 = vmatprep.mubr.msk.f32.mxu0 %vm767_vm0, %v2597_v41  ;;  %v3097_v41 = vld [vmem:[#allocation14 + $0xf0] sm:$0xff] }
 0xa86   : > { %7192 = vmatprep.subr.mxu0 %v2612_v31  ;;  %v9461_v61 = vpop.permute.xlu1 %2887 }
 0xa87   : > { %7193 = vmatpush3.msra.mxu0 %v2612_v31  ;;  %10372 = vst [vmem:[#allocation44_spill] sm:$0xff] %v9461_v61 }
 0xa88   : > { %7194 = vmatprep.subr.mxu0 %v2611_v33 }
 0xa89   : > { %7195 = vmatpush3.msra.mxu0 %v2611_v33 }
 0xa8a   : > { %7196 = vmatprep.subr.mxu0 %v2610_v3  ;;  %v9463_v62 = vpop.permute.xlu1 %2553 }
 0xa8b   : > { %7197 = vmatpush3.msra.mxu0 %v2610_v3  ;;  %10373 = vst [vmem:[#allocation45_spill] sm:$0xff] %v9463_v62 }
 0xa8c   : > { %7198 = vmatprep.subr.mxu0 %v2609_v20 }
 0xa8d   : > { %7199 = vmatpush3.msra.mxu0 %v2609_v20 }
 0xa8e   : > { %7200 = vmatprep.subr.mxu0 %v2608_v36  ;;  %v9465_v63 = vpop.permute.xlu1 %2558 }
 0xa8f   : > { %7201 = vmatpush3.msra.mxu0 %v2608_v36  ;;  %10374 = vst [vmem:[#allocation46_spill] sm:$0xff] %v9465_v63 }
 0xa90   : > { %7202 = vmatprep.subr.mxu0 %v2607_v37 }
 0xa91   : > { %7203 = vmatpush3.msra.mxu0 %v2607_v37 }
 0xa92   : > { %7204 = vmatprep.subr.mxu0 %v2606_v38  ;;  %v9476_v23 = vpop.permute.xlu1 %2892 }
 0xa93   : > { %7205 = vmatpush3.msra.mxu0 %v2606_v38  ;;  %10375 = vst [vmem:[#allocation47_spill] sm:$0xff] %v9476_v23 }
 0xa94   : > { %7246 = vmatprep.subr.mxu0 %v9446_v40 }
 0xb44   : > { %v2406_v59 = vpop.f32.mrf.mxu0 }
 0xb45   : > { %v2410_v4 = vmul.f32 0.0078125, %v2406_v59 }
 0xb46   : > { %v7178_v27 = vpop.f32.mrf.mxu0 }
 0xb47   : > { %7188 = vmatmul.mubr.msk.f32.vlgmr.msra.gmra.mxu1 %vm913_vm2, %v2410_v4 }
 0xb48   : > { %7219 = vmatpush3.msra.mxu1 %v2596_v32  ;;  %7234 = vmatprep.mubr.msk.f32.mxu1 %vm767_vm0, %v2581_v45 }
 0xb49   : > { %7220 = vmatprep.subr.mxu1 %v2595_v2 }
 0xb4a   : > { %7221 = vmatpush3.msra.mxu1 %v2595_v2 }
 0xb4b   : > { %7222 = vmatprep.subr.mxu1 %v2594_v9 }
 0xb4c   : > { %7223 = vmatpush3.msra.mxu1 %v2594_v9  ;;  %v2935_v9 = vld [vmem:[#allocation14 + $0xb0] sm:$0xff] }
 0xb4d   : > { %7224 = vmatprep.subr.mxu1 %v2593_v35 }
 0xb4e   : > { %7225 = vmatpush3.msra.mxu1 %v2593_v35 }
 0xb4f   : > { %7226 = vmatprep.subr.mxu1 %v2592_v24 }
 0xb50   : > { %7227 = vmatpush3.msra.mxu1 %v2592_v24 }
 0xb51   : > { %7228 = vmatprep.subr.mxu1 %v2591_v28 }
 0xb52   : > { %7229 = vmatpush3.msra.mxu1 %v2591_v28 }
 0xb53   : > { %7230 = vmatprep.subr.mxu1 %v2590_v39 }
 0xb54   : > { %7231 = vmatpush3.msra.mxu1 %v2590_v39  ;;  %v2934_v39 = vld [vmem:[#allocation14 + $0xa8] sm:$0xff] }
 0xb55   : > { %7232 = vmatprep.subr.mxu1 %v2589_v43 }
 0xb56   : > { %7233 = vmatpush3.msra.mxu1 %v2589_v43 }
 0xb57   : > { %7274 = vmatprep.subr.mxu1 %v9454_v48 }
 0xc07   : > { %v2480_v57 = vpop.f32.mrf.mxu1 }
 0xc08   : > { %v2481_v58 = vadd.f32 1e-06, %v2480_v57  ;;  %v9516_v57 = vpop.permute.xlu0 %2568 }
 0xc09   : > { %v7189_v60 = vpop.f32.mrf.mxu1  ;;  %10378 = vst [vmem:[#allocation50_spill] sm:$0xff] %v9516_v57 }
 0xc0a   : > { %7956 = vrsqrt.f32 %v2481_v58 }
 0xc17   : > { %v7957_v5 = vpop.eup %7956 }
 0xc18   : > { %v2488_v6 = vrot.slane %v7957_v5, %v8957_v47  ;;  %v3096_v5 = vld [vmem:[#allocation14 + $0xe8] sm:$0xff] }
 0xc1a   : > { %v2489_v10 = vmul.f32 %v2488_v6, %v9349_v25  ;;  %v2490_v11 = vmul.f32 %v2488_v6, %v9352_v51  ;;  %v2491_v12 = vmul.f32 %v2488_v6, %v9355_v52  ;;  %v2492_v13 = vmul.f32 %v2488_v6, %v9358_v53 }
 0xc1b   : > { %v2493_v17 = vmul.f32 %v2488_v6, %v9361_v54  ;;  %v2494_v18 = vmul.f32 %v2488_v6, %v9370_v29  ;;  %v2495_v19 = vmul.f32 %v2488_v6, %v9377_v34  ;;  %v2496_v21 = vmul.f32 %v2488_v6, %v9383_v16  ;;  %v9486_v16 = vpop.permute.xlu1 %2897 }
 0xc1c   : > { %v2503_v59 = vmul.f32 %v6265_v7, %v2489_v10  ;;  %v2504_v4 = vmul.f32 %v6265_v7, %v2490_v11  ;;  %v2505_v25 = vmul.f32 %v6265_v7, %v2491_v12  ;;  %v2506_v27 = vmul.f32 %v6265_v7, %v2492_v13  ;;  %10376 = vst [vmem:[#allocation48_spill] sm:$0xff] %v9486_v16  ;;  %v3095_v10 = vld [vmem:[#allocation14 + $0xe0] sm:$0xff]  ;;  %v2931_v13 = vld [vmem:[#allocation14 + $0x90] sm:$0xff] }
 0xc1d   : > { %v2510_v51 = vmul.f32 %v6265_v7, %v2496_v21  ;;  %v2507_v30 = vmul.f32 %v6265_v7, %v2493_v17  ;;  %v2508_v52 = vmul.f32 %v6265_v7, %v2494_v18  ;;  %v2509_v31 = vmul.f32 %v6265_v7, %v2495_v19  ;;  %v2932_v7 = vld [vmem:[#allocation14 + $0x98] sm:$0xff]  ;;  %v9538_v18 = vpop.permute.xlu0 %2907 }
 0xc1e   : > { %v2517_v53 = vadd.f32 %v6266_v22, %v2503_v59  ;;  %v2518_v32 = vadd.f32 %v6266_v22, %v2504_v4  ;;  %v2519_v54 = vadd.f32 %v6266_v22, %v2505_v25  ;;  %v2520_v33 = vadd.f32 %v6266_v22, %v2506_v27  ;;  %10380 = vst [vmem:[#allocation52_spill] sm:$0xff] %v9538_v18  ;;  %v3094_v59 = vld [vmem:[#allocation14 + $0xd8] sm:$0xff]  ;;  %v2930_v25 = vld [vmem:[#allocation14 + $0x88] sm:$0xff] }
 0xc1f   : > { %v2521_v29 = vadd.f32 %v6266_v22, %v2507_v30  ;;  %v2522_v2 = vadd.f32 %v6266_v22, %v2508_v52  ;;  %v2523_v34 = vadd.f32 %v6266_v22, %v2509_v31  ;;  %v2524_v3 = vadd.f32 %v6266_v22, %v2510_v51  ;;  %v9494_v24 = vpop.permute.xlu1 %2563  ;;  %v3093_v51 = vld [vmem:[#allocation14 + $0xd0] sm:$0xff]  ;;  %v2929_v31 = vld [vmem:[#allocation14 + $0x80] sm:$0xff] }
 0xc20   : > { %2525 = vst.msk [vmem:[#allocation2 + $0x10] sm:$0xff] %vm767_vm0, %v2517_v53  ;;  %2526 = vst.msk [vmem:[#allocation2 + $0x18] sm:$0xff] %vm767_vm0, %v2518_v32 }
 0xc21   : > { %2527 = vst.msk [vmem:[#allocation2 + $0x20] sm:$0xff] %vm767_vm0, %v2519_v54  ;;  %2528 = vst.msk [vmem:[#allocation2 + $0x28] sm:$0xff] %vm767_vm0, %v2520_v33  ;;  %v9559_v32 = vpop.permute.xlu0 %2578  ;;  %v3092_v33 = vld [vmem:[#allocation14 + $0xc8] sm:$0xff] }
 0xc22   : > { %2529 = vst.msk [vmem:[#allocation2 + $0x30] sm:$0xff] %vm767_vm0, %v2521_v29  ;;  %2530 = vst.msk [vmem:[#allocation2 + $0x38] sm:$0xff] %vm767_vm0, %v2522_v2 }
 0xc23   : > { %2531 = vst.msk [vmem:[#allocation2 + $0x40] sm:$0xff] %vm767_vm0, %v2523_v34  ;;  %2532 = vst.msk [vmem:[#allocation2 + $0x48] sm:$0xff] %vm767_vm0, %v2524_v3  ;;  %v9522_v60 = vpop.permute.xlu1 %2902  ;;  %v3252_v34 = vld [vmem:[#allocation14 + $0x138] sm:$0xff] }
 0xc24   : > { %10377 = vst [vmem:[#allocation49_spill] sm:$0xff] %v9494_v24  ;;  %10379 = vst [vmem:[#allocation51_spill] sm:$0xff] %v9522_v60 }
 0xc25   : > { %10382 = vst [vmem:[#allocation54_spill] sm:$0xff] %v9559_v32 }
 0xc27   : > { %v9488_v20 = vld [vmem:[#allocation2 + $0x10] sm:$0xff]  ;;  %v9490_v35 = vld [vmem:[#allocation2 + $0x18] sm:$0xff]  ;;  %v9544_v21 = vpop.permute.xlu1 %2573 }
 0xc28   : > { %v9492_v36 = vld [vmem:[#allocation2 + $0xf] sm:$0xff]  ;;  %7207 = vmatmul.mubr.msk.f32.vlgmr.msra.gmra.mxu0 %vm767_vm0, %v9488_v20  ;;  %v9500_v28 = vld [vmem:[#allocation2 + $0x17] sm:$0xff]  ;;  %v9509_v43 = vld [vmem:[#allocation2 + $0x1f] sm:$0xff]  ;;  %10381 = vst [vmem:[#allocation53_spill] sm:$0xff] %v9544_v21 }
 0xc29   : > { %v2582_v37 = vmul.f32 %v9457_v50, %v9492_v36  ;;  %7247 = vmatpush3.msra.mxu0 %v9446_v40  ;;  %7209 = vmatprep.mubr.msk.f32.mxu0 %vm767_vm0, %v9490_v35  ;;  %v2583_v38 = vmul.f32 %v9463_v62, %v9500_v28  ;;  %v9512_v40 = vld [vmem:[#allocation2 + $0x20] sm:$0xff]  ;;  %v9520_v58 = vld [vmem:[#allocation2 + $0x28] sm:$0xff]  ;;  %v9534_v12 = vld [vmem:[#allocation2 + $0x30] sm:$0xff]  ;;  %v3082_v2 = vmul.f32 %v9448_v42, %v9492_v36 }
 0xc2a   : > { %7248 = vmatprep.subr.mxu0 %v2935_v9  ;;  %v9514_v45 = vld [vmem:[#allocation2 + $0x27] sm:$0xff]  ;;  %v9532_v11 = vld [vmem:[#allocation2 + $0x2f] sm:$0xff]  ;;  %v9536_v17 = vld [vmem:[#allocation2 + $0x37] sm:$0xff]  ;;  %v3083_v36 = vmul.f32 %v9457_v50, %v9500_v28 }
 0xc2b   : > { %7235 = vmatmul.mubr.msk.f32.vlgmr.msra.gmra.mxu1 %vm767_vm0, %v2582_v37  ;;  %7249 = vmatpush3.msra.mxu0 %v2935_v9  ;;  %v2585_v6 = vmul.f32 %v9494_v24, %v9514_v45  ;;  %v9542_v19 = vld [vmem:[#allocation2 + $0x38] sm:$0xff]  ;;  %v2586_v22 = vmul.f32 %v9516_v57, %v9532_v11  ;;  %v2587_v4 = vmul.f32 %v9544_v21, %v9536_v17  ;;  %v2872_v27 = vld [vmem:[#allocation2 + $0x9] sm:$0xff]  ;;  %v9556_v52 = vld [vmem:[#allocation2 + $0x40] sm:$0xff] }
 0xc2c   : > { %7237 = vmatprep.mubr.msk.f32.mxu1 %vm767_vm0, %v2583_v38  ;;  %7250 = vmatprep.subr.mxu0 %v2934_v39  ;;  %v9554_v30 = vld [vmem:[#allocation2 + $0x3f] sm:$0xff]  ;;  %v2920_v53 = vmul.f32 %v9459_v56, %v2872_v27  ;;  %v9566_v29 = vld [vmem:[#allocation2 + $0x11] sm:$0xff]  ;;  %v3086_v27 = vmul.f32 %v9494_v24, %v9532_v11 }
 0xc2d   : > { %7275 = vmatpush3.msra.mxu1 %v9454_v48  ;;  %7210 = vmatmul.mubr.msk.f32.gmra.mxu0 %vm767_vm0, %v9512_v40  ;;  %v2584_v48 = vmul.f32 %v9465_v63, %v9509_v43  ;;  %v2588_v54 = vmul.f32 %v9559_v32, %v9554_v30  ;;  %v9570_v3 = vld [vmem:[#allocation2 + $0x19] sm:$0xff]  ;;  %v3091_v9 = vld [vmem:[#allocation14 + $0xc0] sm:$0xff]  ;;  %v2921_v37 = vmul.f32 %v9461_v61, %v9566_v29 }
 0xc2e   : > { %7276 = vmatprep.subr.mxu1 %v3097_v41  ;;  %7251 = vmatpush3.msra.mxu0 %v2934_v39  ;;  %v2922_v38 = vmul.f32 %v9476_v23, %v9570_v3  ;;  %v3251_v39 = vld [vmem:[#allocation14 + $0x130] sm:$0xff] }
 0xc2f   : > { %7212 = vmatprep.mubr.msk.f32.mxu0 %vm767_vm0, %v9520_v58  ;;  %7252 = vmatprep.subr.mxu0 %v2933_v44 }
 0xc30   : > { %7277 = vmatpush3.msra.mxu1 %v3097_v41  ;;  %7253 = vmatpush3.msra.mxu0 %v2933_v44  ;;  %v3414_v41 = vld [vmem:[#allocation14 + $0x178] sm:$0xff] }
 0xc31   : > { %7238 = vmatmul.mubr.msk.f32.gmra.mxu1 %vm767_vm0, %v2584_v48  ;;  %7278 = vmatprep.subr.mxu1 %v3096_v5  ;;  %v9582_v44 = vld [vmem:[#allocation2 + $0x21] sm:$0xff]  ;;  %v3084_v48 = vmul.f32 %v9463_v62, %v9509_v43 }
 0xc32   : > { %7240 = vmatprep.mubr.msk.f32.mxu1 %vm767_vm0, %v2585_v6  ;;  %7254 = vmatprep.subr.mxu0 %v2932_v7  ;;  %v9586_v6 = vld [vmem:[#allocation2 + $0x29] sm:$0xff] }
 0xc33   : > { %7279 = vmatpush3.msra.mxu1 %v3096_v5  ;;  %7213 = vmatmul.mubr.msk.f32.gmra.mxu0 %vm767_vm0, %v9534_v12  ;;  %v3250_v5 = vld [vmem:[#allocation14 + $0x128] sm:$0xff] }
 0xc34   : > { %7280 = vmatprep.subr.mxu1 %v3095_v10  ;;  %7255 = vmatpush3.msra.mxu0 %v2932_v7  ;;  %v3413_v7 = vld [vmem:[#allocation14 + $0x170] sm:$0xff] }
 0xc35   : > { %7215 = vmatprep.mubr.msk.f32.mxu0 %vm767_vm0, %v9542_v19  ;;  %7256 = vmatprep.subr.mxu0 %v2931_v13 }
 0xc36   : > { %7281 = vmatpush3.msra.mxu1 %v3095_v10  ;;  %7257 = vmatpush3.msra.mxu0 %v2931_v13  ;;  %v2923_v10 = vmul.f32 %v9486_v16, %v9582_v44  ;;  %v2924_v13 = vmul.f32 %v9522_v60, %v9586_v6 }
 0xc37   : > { %7241 = vmatmul.mubr.msk.f32.gmra.mxu1 %vm767_vm0, %v2586_v22  ;;  %7282 = vmatprep.subr.mxu1 %v3094_v59  ;;  %v3249_v22 = vld [vmem:[#allocation14 + $0x120] sm:$0xff] }
 0xc38   : > { %7243 = vmatprep.mubr.msk.f32.mxu1 %vm767_vm0, %v2587_v4  ;;  %7258 = vmatprep.subr.mxu0 %v2930_v25  ;;  %v3412_v4 = vld [vmem:[#allocation14 + $0x168] sm:$0xff] }
 0xc39   : > { %7283 = vmatpush3.msra.mxu1 %v3094_v59  ;;  %7216 = vmatmul.mubr.msk.f32.gmra.mxu0 %vm767_vm0, %v9556_v52  ;;  %v3085_v59 = vmul.f32 %v9465_v63, %v9514_v45 }
 0xc3a   : > { %7284 = vmatprep.subr.mxu1 %v3093_v51  ;;  %7259 = vmatpush3.msra.mxu0 %v2930_v25  ;;  %v9598_v25 = vld [vmem:[#allocation2 + $0x31] sm:$0xff] }
 0xc3b   : > { %7262 = vmatprep.mubr.msk.f32.mxu0 %vm767_vm0, %v2920_v53  ;;  %7260 = vmatprep.subr.mxu0 %v2929_v31  ;;  %v3411_v53 = vld [vmem:[#allocation14 + $0x160] sm:$0xff] }
 0xc3c   : > { %7285 = vmatpush3.msra.mxu1 %v3093_v51  ;;  %7261 = vmatpush3.msra.mxu0 %v2929_v31  ;;  %v3248_v51 = vld [vmem:[#allocation14 + $0x118] sm:$0xff]  ;;  %v9602_v31 = vld [vmem:[#allocation2 + $0x39] sm:$0xff] }
 0xc3d   : > { %7244 = vmatmul.mubr.msk.f32.gmra.mxu1 %vm767_vm0, %v2588_v54  ;;  %7286 = vmatprep.subr.mxu1 %v3092_v33  ;;  %v9605_v54 = vpop.permute.xlu1 %2912 }
 0xc3e   : > { %7290 = vmatprep.mubr.msk.f32.mxu1 %vm767_vm0, %v3082_v2  ;;  %7287 = vmatpush3.msra.mxu1 %v3092_v33  ;;  %10383 = vst [vmem:[#allocation55_spill] sm:$0xff] %v9605_v54  ;;  %v2925_v33 = vmul.f32 %v9538_v18, %v9598_v25  ;;  %v2926_v2 = vmul.f32 %v9605_v54, %v9602_v31 }
 0xc3f   : > { %7302 = vmatprep.subr.mxu0 %v3252_v34  ;;  %7263 = vmatmul.mubr.msk.f32.vlgmr.msra.gmra.mxu0 %vm767_vm0, %v2921_v37  ;;  %v3087_v37 = vmul.f32 %v9516_v57, %v9536_v17 }
 0xc40   : > { %7288 = vmatprep.subr.mxu1 %v3091_v9  ;;  %7303 = vmatpush3.msra.mxu0 %v3252_v34  ;;  %v3247_v34 = vld [vmem:[#allocation14 + $0x110] sm:$0xff] }
 0xc41   : > { %7265 = vmatprep.mubr.msk.f32.mxu0 %vm767_vm0, %v2922_v38  ;;  %7289 = vmatpush3.msra.mxu1 %v3091_v9  ;;  %v9613_v9 = vpop.permute.xlu0 %2917  ;;  %v3410_v38 = vld [vmem:[#allocation14 + $0x158] sm:$0xff] }
 0xc42   : > { %7304 = vmatprep.subr.mxu0 %v3251_v39  ;;  %7291 = vmatmul.mubr.msk.f32.vlgmr.msra.gmra.mxu1 %vm767_vm0, %v3083_v36  ;;  %10384 = vst [vmem:[#allocation56_spill] sm:$0xff] %v9613_v9  ;;  %v3088_v36 = vmul.f32 %v9544_v21, %v9554_v30 }
 0xc43   : > { %7305 = vmatpush3.msra.mxu0 %v3251_v39  ;;  %7330 = vmatprep.subr.mxu1 %v3414_v41  ;;  %v9618_v39 = vld [vmem:[#allocation2 + $0x41] sm:$0xff] }
 0xc44   : > { %7293 = vmatprep.mubr.msk.f32.mxu1 %vm767_vm0, %v3084_v48  ;;  %7306 = vmatprep.subr.mxu0 %v3250_v5  ;;  %v3409_v48 = vld [vmem:[#allocation14 + $0x150] sm:$0xff] }
 0xc45   : > { %7331 = vmatpush3.msra.mxu1 %v3414_v41  ;;  %7266 = vmatmul.mubr.msk.f32.gmra.mxu0 %vm767_vm0, %v2923_v10  ;;  %v3246_v41 = vld [vmem:[#allocation14 + $0x108] sm:$0xff]  ;;  %v3245_v10 = vld [vmem:[#allocation14 + $0x100] sm:$0xff] }
 0xc46   : > { %7332 = vmatprep.subr.mxu1 %v3413_v7  ;;  %7307 = vmatpush3.msra.mxu0 %v3250_v5  ;;  %v2927_v5 = vmul.f32 %v9613_v9, %v9618_v39 }
 0xc47   : > { %7268 = vmatprep.mubr.msk.f32.mxu0 %vm767_vm0, %v2924_v13  ;;  %7308 = vmatprep.subr.mxu0 %v3249_v22 }
 0xc48   : > { %7333 = vmatpush3.msra.mxu1 %v3413_v7  ;;  %7309 = vmatpush3.msra.mxu0 %v3249_v22  ;;  %v9626_v7 = vld [vmem:[#allocation2 + $0x47] sm:$0xff]  ;;  %v3408_v22 = vld [vmem:[#allocation14 + $0x148] sm:$0xff] }
 0xc49   : > { %7294 = vmatmul.mubr.msk.f32.gmra.mxu1 %vm767_vm0, %v3085_v59  ;;  %7334 = vmatprep.subr.mxu1 %v3412_v4  ;;  %v3089_v13 = vmul.f32 %v9626_v7, %v9559_v32  ;;  %v3398_v59 = vmul.f32 %v9459_v56, %v9566_v29  ;;  %v3399_v29 = vmul.f32 %v9461_v61, %v9570_v3 }
 0xc4a   : > { %7296 = vmatprep.mubr.msk.f32.mxu1 %vm767_vm0, %v3086_v27  ;;  %7310 = vmatprep.subr.mxu0 %v3248_v51  ;;  %v3407_v27 = vld [vmem:[#allocation14 + $0x140] sm:$0xff] }
 0xc4b   : > { %7335 = vmatpush3.msra.mxu1 %v3412_v4  ;;  %7269 = vmatmul.mubr.msk.f32.gmra.mxu0 %vm767_vm0, %v2925_v33  ;;  %v3576_v4 = vld [vmem:[#allocation14 + $0x1b8] sm:$0xff]  ;;  %v3574_v33 = vld [vmem:[#allocation14 + $0x1a8] sm:$0xff] }
 0xc4c   : > { %7336 = vmatprep.subr.mxu1 %v3411_v53  ;;  %7311 = vmatpush3.msra.mxu0 %v3248_v51  ;;  %v3730_v51 = vld [vmem:[#allocation14 + $0x1f8] sm:$0xff] }
 0xc4d   : > { %7271 = vmatprep.mubr.msk.f32.mxu0 %vm767_vm0, %v2926_v2  ;;  %7312 = vmatprep.subr.mxu0 %v3247_v34  ;;  %v3729_v2 = vld [vmem:[#allocation14 + $0x1f0] sm:$0xff] }
 0xc4e   : > { %7337 = vmatpush3.msra.mxu1 %v3411_v53  ;;  %7313 = vmatpush3.msra.mxu0 %v3247_v34  ;;  %v3400_v53 = vmul.f32 %v9476_v23, %v9582_v44  ;;  %v3573_v34 = vld [vmem:[#allocation14 + $0x1a0] sm:$0xff] }
 0xc4f   : > { %7297 = vmatmul.mubr.msk.f32.gmra.mxu1 %vm767_vm0, %v3087_v37  ;;  %7338 = vmatprep.subr.mxu1 %v3410_v38  ;;  %v3401_v37 = vmul.f32 %v9486_v16, %v9586_v6 }
 0xc50   : > { %7299 = vmatprep.mubr.msk.f32.mxu1 %vm767_vm0, %v3088_v36  ;;  %7314 = vmatprep.subr.mxu0 %v3246_v41  ;;  %v3402_v36 = vmul.f32 %v9522_v60, %v9598_v25 }
 0xc51   : > { %7339 = vmatpush3.msra.mxu1 %v3410_v38  ;;  %7272 = vmatmul.mubr.msk.f32.gmra.mxu0 %vm767_vm0, %v2927_v5  ;;  %v3728_v38 = vld [vmem:[#allocation14 + $0x1e8] sm:$0xff]  ;;  %v3571_v5 = vld [vmem:[#allocation14 + $0x190] sm:$0xff] }
 0xc52   : > { %7340 = vmatprep.subr.mxu1 %v3409_v48  ;;  %7315 = vmatpush3.msra.mxu0 %v3246_v41  ;;  %v3572_v41 = vld [vmem:[#allocation14 + $0x198] sm:$0xff] }
 0xc53   : > { %7318 = vmatprep.mubr.msk.f32.mxu0 %vm767_vm0, %v9488_v20  ;;  %7316 = vmatprep.subr.mxu0 %v3245_v10  ;;  %v3575_v20 = vld [vmem:[#allocation14 + $0x1b0] sm:$0xff] }
 0xc54   : > { %7341 = vmatpush3.msra.mxu1 %v3409_v48  ;;  %7317 = vmatpush3.msra.mxu0 %v3245_v10  ;;  %v3727_v48 = vld [vmem:[#allocation14 + $0x1e0] sm:$0xff]  ;;  %v3403_v10 = vmul.f32 %v9538_v18, %v9602_v31 }
 0xc55   : > { %7300 = vmatmul.mubr.msk.f32.gmra.mxu1 %vm767_vm0, %v3089_v13  ;;  %7342 = vmatprep.subr.mxu1 %v3408_v22  ;;  %v3726_v13 = vld [vmem:[#allocation14 + $0x1d8] sm:$0xff] }
 0xc56   : > { %7346 = vmatprep.mubr.msk.f32.mxu1 %vm767_vm0, %v3398_v59  ;;  %7343 = vmatpush3.msra.mxu1 %v3408_v22  ;;  %v3404_v22 = vmul.f32 %v9605_v54, %v9618_v39  ;;  %v3570_v59 = vld [vmem:[#allocation14 + $0x188] sm:$0xff] }
 0xc57   : > { %7358 = vmatprep.subr.mxu0 %v3576_v4  ;;  %7319 = vmatmul.mubr.msk.f32.vlgmr.msra.gmra.mxu0 %vm767_vm0, %v9490_v35 }
 0xc58   : > { %7344 = vmatprep.subr.mxu1 %v3407_v27  ;;  %7359 = vmatpush3.msra.mxu0 %v3576_v4  ;;  %v3725_v4 = vld [vmem:[#allocation14 + $0x1d0] sm:$0xff] }
 0xc59   : > { %7321 = vmatprep.mubr.msk.f32.mxu0 %vm767_vm0, %v9512_v40  ;;  %7345 = vmatpush3.msra.mxu1 %v3407_v27  ;;  %v9667_v27 = vld [vmem:[#allocation2 + $0x49] sm:$0xff] }
 0xc5a   : > { %7360 = vmatprep.subr.mxu0 %v3575_v20  ;;  %7347 = vmatmul.mubr.msk.f32.vlgmr.msra.gmra.mxu1 %vm767_vm0, %v3399_v29  ;;  %v3569_v29 = vld [vmem:[#allocation14 + $0x180] sm:$0xff] }
 0xc5b   : > { %7361 = vmatpush3.msra.mxu0 %v3575_v20  ;;  %7386 = vmatprep.subr.mxu1 %v3730_v51  ;;  %v3243_v20 = vld [vmem:[#allocation2 + $0x48] sm:$0xff] }
 0xc5c   : > { %7349 = vmatprep.mubr.msk.f32.mxu1 %vm767_vm0, %v3400_v53  ;;  %7362 = vmatprep.subr.mxu0 %v3574_v33  ;;  %v3405_v53 = vmul.f32 %v9667_v27, %v9613_v9 }
 0xc5d   : > { %7387 = vmatpush3.msra.mxu1 %v3730_v51  ;;  %7322 = vmatmul.mubr.msk.f32.gmra.mxu0 %vm767_vm0, %v9520_v58  ;;  %v3560_v51 = vmul.f32 %v9448_v42, %v9500_v28  ;;  %v3561_v28 = vmul.f32 %v9457_v50, %v9509_v43  ;;  %v3564_v43 = vmul.f32 %v9494_v24, %v9536_v17  ;;  %v3887_v17 = vld [vmem:[#allocation14 + $0x210] sm:$0xff] }
 0xc5e   : > { %7388 = vmatprep.subr.mxu1 %v3729_v2  ;;  %7363 = vmatpush3.msra.mxu0 %v3574_v33  ;;  %v3724_v33 = vld [vmem:[#allocation14 + $0x1c8] sm:$0xff] }
 0xc5f   : > { %7324 = vmatprep.mubr.msk.f32.mxu0 %vm767_vm0, %v9534_v12  ;;  %7364 = vmatprep.subr.mxu0 %v3573_v34 }
 0xc60   : > { %7389 = vmatpush3.msra.mxu1 %v3729_v2  ;;  %7365 = vmatpush3.msra.mxu0 %v3573_v34  ;;  %v3892_v2 = vld [vmem:[#allocation14 + $0x238] sm:$0xff]  ;;  %v3723_v34 = vld [vmem:[#allocation14 + $0x1c0] sm:$0xff] }
 0xc61   : > { %7350 = vmatmul.mubr.msk.f32.gmra.mxu1 %vm767_vm0, %v3401_v37  ;;  %7390 = vmatprep.subr.mxu1 %v3728_v38  ;;  %v3562_v37 = vmul.f32 %v9463_v62, %v9514_v45  ;;  %v3889_v45 = vld [vmem:[#allocation14 + $0x220] sm:$0xff] }
 0xc62   : > { %7352 = vmatprep.mubr.msk.f32.mxu1 %vm767_vm0, %v3402_v36  ;;  %7366 = vmatprep.subr.mxu0 %v3572_v41  ;;  %v3890_v36 = vld [vmem:[#allocation14 + $0x228] sm:$0xff] }
 0xc63   : > { %7391 = vmatpush3.msra.mxu1 %v3728_v38  ;;  %7325 = vmatmul.mubr.msk.f32.gmra.mxu0 %vm767_vm0, %v9542_v19  ;;  %v3891_v38 = vld [vmem:[#allocation14 + $0x230] sm:$0xff] }
 0xc64   : > { %7392 = vmatprep.subr.mxu1 %v3727_v48  ;;  %7367 = vmatpush3.msra.mxu0 %v3572_v41  ;;  %v3559_v41 = vld [vmem:[#allocation2 + $0x4f] sm:$0xff] }
 0xc65   : > { %7327 = vmatprep.mubr.msk.f32.mxu0 %vm767_vm0, %v9556_v52  ;;  %7368 = vmatprep.subr.mxu0 %v3571_v5 }
 0xc66   : > { %7393 = vmatpush3.msra.mxu1 %v3727_v48  ;;  %7369 = vmatpush3.msra.mxu0 %v3571_v5  ;;  %v3886_v48 = vld [vmem:[#allocation14 + $0x208] sm:$0xff]  ;;  %v3878_v5 = vmul.f32 %v9476_v23, %v9586_v6  ;;  %v3880_v6 = vmul.f32 %v9522_v60, %v9602_v31  ;;  %v3881_v31 = vmul.f32 %v9538_v18, %v9618_v39 }
 0xc67   : > { %7353 = vmatmul.mubr.msk.f32.gmra.mxu1 %vm767_vm0, %v3403_v10  ;;  %7394 = vmatprep.subr.mxu1 %v3726_v13  ;;  %v8013_v10 = vld [vmem:[%s10354_s12 + $0x30] sm:$0xff] }
 0xc68   : > { %7355 = vmatprep.mubr.msk.f32.mxu1 %vm767_vm0, %v3404_v22  ;;  %7370 = vmatprep.subr.mxu0 %v3570_v59  ;;  %v5714_v22 = vld [vmem:[#allocation2 + $0x51] sm:$0xff] }
 0xc69   : > { %7395 = vmatpush3.msra.mxu1 %v3726_v13  ;;  %7328 = vmatmul.mubr.msk.f32.gmra.mxu0 %vm767_vm0, %v3243_v20  ;;  %v8014_v13 = vld [vmem:[%s10354_s12 + $0x28] sm:$0xff]  ;;  %v8017_v39 = vld [vmem:[%s10354_s12 + $0x10] sm:$0xff] }
 0xc6a   : > { %7396 = vmatprep.subr.mxu1 %v3725_v4  ;;  %7371 = vmatpush3.msra.mxu0 %v3570_v59  ;;  %v3882_v59 = vmul.f32 %v9667_v27, %v9605_v54  ;;  %v9760_v27 = vmul.f32 %v5714_v22, %v9613_v9 }
 0xc6b   : > { %7374 = vmatprep.mubr.msk.f32.mxu0 %vm767_vm0, %v3560_v51  ;;  %7372 = vmatprep.subr.mxu0 %v3569_v29 }
 0xc6c   : > { %7397 = vmatpush3.msra.mxu1 %v3725_v4  ;;  %7373 = vmatpush3.msra.mxu0 %v3569_v29  ;;  %v8016_v4 = vld [vmem:[%s10354_s12 + $0x18] sm:$0xff]  ;;  %10385 = vst [vmem:[#allocation57_spill] sm:$0xff] %v9760_v27  ;;  %v8019_v29 = vld [vmem:[%s10354_s12] sm:$0xff] }
 0xc6d   : > { %7356 = vmatmul.mubr.msk.f32.gmra.mxu1 %vm767_vm0, %v3405_v53  ;;  %7398 = vmatprep.subr.mxu1 %v3724_v33 }
 0xc6e   : > { %7402 = vmatprep.mubr.msk.f32.mxu1 %vm767_vm0, %v9490_v35  ;;  %7399 = vmatpush3.msra.mxu1 %v3724_v33  ;;  %v3563_v35 = vmul.f32 %v9465_v63, %v9532_v11  ;;  %v3566_v11 = vmul.f32 %v9626_v7, %v9544_v21  ;;  %v3721_v7 = vld [vmem:[#allocation2 + $0x50] sm:$0xff] }
 0xc6f   : > { %7414 = vmatprep.subr.mxu0 %v3892_v2  ;;  %7375 = vmatmul.mubr.msk.f32.vlgmr.msra.gmra.mxu0 %vm767_vm0, %v3561_v28 }
 0xc70   : > { %7400 = vmatprep.subr.mxu1 %v3723_v34  ;;  %7415 = vmatpush3.msra.mxu0 %v3892_v2 }
 0xc71   : > { %7377 = vmatprep.mubr.msk.f32.mxu0 %vm767_vm0, %v3562_v37  ;;  %7401 = vmatpush3.msra.mxu1 %v3723_v34 }
 0xc72   : > { %7416 = vmatprep.subr.mxu0 %v3891_v38  ;;  %7403 = vmatmul.mubr.msk.f32.vlgmr.msra.gmra.mxu1 %vm767_vm0, %v9512_v40  ;;  %v3888_v40 = vld [vmem:[#allocation14 + $0x218] sm:$0xff] }
 0xc73   : > { %7417 = vmatpush3.msra.mxu0 %v3891_v38  ;;  %7405 = vmatprep.mubr.msk.f32.mxu1 %vm767_vm0, %v9520_v58  ;;  %v3565_v58 = vmul.f32 %v9516_v57, %v9554_v30  ;;  %v3876_v30 = vmul.f32 %v9459_v56, %v9570_v3  ;;  %v8012_v3 = vld [vmem:[%s10354_s12 + $0x38] sm:$0xff] }
 0xc74   : > { %7418 = vmatprep.subr.mxu0 %v3890_v36  ;;  %7378 = vmatmul.mubr.msk.f32.gmra.mxu0 %vm767_vm0, %v3563_v35 }
 0xc75   : > { %7442 = vmatprep.subr.mxu1 %v10260_v0  ;;  %7419 = vmatpush3.msra.mxu0 %v3890_v36 }
 0xc76   : > { %7380 = vmatprep.mubr.msk.f32.mxu0 %vm767_vm0, %v3564_v43  ;;  %7420 = vmatprep.subr.mxu0 %v3889_v45 }
 0xc77   : > { %7406 = vmatmul.mubr.msk.f32.gmra.mxu1 %vm767_vm0, %v9534_v12  ;;  %7421 = vmatpush3.msra.mxu0 %v3889_v45  ;;  %v3567_v12 = vmul.f32 %v3559_v41, %v9559_v32 }
 0xc78   : > { %7408 = vmatprep.mubr.msk.f32.mxu1 %vm767_vm0, %v9542_v19  ;;  %7422 = vmatprep.subr.mxu0 %v3888_v40  ;;  %v3885_v19 = vld [vmem:[#allocation14 + $0x200] sm:$0xff] }
 0xc79   : > { %7381 = vmatmul.mubr.msk.f32.gmra.mxu0 %vm767_vm0, %v3565_v58  ;;  %7443 = vmatpush3.msra.mxu1 %v8012_v3 }
 0xc7a   : > { %7423 = vmatpush3.msra.mxu0 %v3888_v40  ;;  %7383 = vmatprep.mubr.msk.f32.mxu0 %vm767_vm0, %v3566_v11 }
 0xc7b   : > { %7424 = vmatprep.subr.mxu0 %v3887_v17  ;;  %7409 = vmatmul.mubr.msk.f32.gmra.mxu1 %vm767_vm0, %v9556_v52  ;;  %v3877_v52 = vmul.f32 %v9461_v61, %v9582_v44  ;;  %v3879_v44 = vmul.f32 %v9486_v16, %v9598_v25  ;;  %v8015_v25 = vld [vmem:[%s10354_s12 + $0x20] sm:$0xff] }
 0xc7c   : > { %7425 = vmatpush3.msra.mxu0 %v3887_v17  ;;  %7411 = vmatprep.mubr.msk.f32.mxu1 %vm767_vm0, %v3243_v20  ;;  %v8018_v20 = vld [vmem:[%s10354_s12 + $0x8] sm:$0xff] }
 0xc7d   : > { %7426 = vmatprep.subr.mxu0 %v3886_v48  ;;  %7384 = vmatmul.mubr.msk.f32.gmra.mxu0 %vm767_vm0, %v3567_v12 }
 0xc7e   : > { %7427 = vmatpush3.msra.mxu0 %v3886_v48  ;;  %7430 = vmatprep.mubr.msk.f32.mxu0 %vm767_vm0, %v3876_v30 }
 0xc7f   : > { %7428 = vmatprep.subr.mxu0 %v3885_v19  ;;  %7412 = vmatmul.mubr.msk.f32.gmra.mxu1 %vm767_vm0, %v3721_v7 }
 0xc80   : > { %7429 = vmatpush3.msra.mxu0 %v3885_v19  ;;  %7444 = vmatprep.subr.mxu1 %v10260_v0 }
 0xc81   : > { %7431 = vmatmul.mubr.msk.f32.vlgmr.msra.gmra.mxu0 %vm767_vm0, %v3877_v52  ;;  %7445 = vmatpush3.msra.mxu1 %v8013_v10 }
 0xc82   : > { %7433 = vmatprep.mubr.msk.f32.mxu0 %vm767_vm0, %v3878_v5  ;;  %7446 = vmatprep.subr.mxu1 %v10260_v0 }
 0xc83   : > { %7458 = vmatprep.mubr.msk.f32.mxu1 %vm8445_vm1, %v10260_v0  ;;  %7447 = vmatpush3.msra.mxu1 %v8014_v13 }
 0xc84   : > { %7472 = vmatprep.subr.mxu0 %v10260_v0  ;;  %7448 = vmatprep.subr.mxu1 %v10260_v0 }
 0xc85   : > { %7434 = vmatmul.mubr.msk.f32.gmra.mxu0 %vm767_vm0, %v3879_v44  ;;  %7449 = vmatpush3.msra.mxu1 %v8015_v25 }
 0xc86   : > { %7436 = vmatprep.mubr.msk.f32.mxu0 %vm767_vm0, %v3880_v6  ;;  %7450 = vmatprep.subr.mxu1 %v10260_v0 }
 0xc87   : > { %7473 = vmatpush3.msra.mxu0 %v8012_v3  ;;  %7451 = vmatpush3.msra.mxu1 %v8016_v4 }
 0xc88   : > { %7474 = vmatprep.subr.mxu0 %v10260_v0  ;;  %7452 = vmatprep.subr.mxu1 %v10260_v0 }
 0xc89   : > { %7437 = vmatmul.mubr.msk.f32.gmra.mxu0 %vm767_vm0, %v3881_v31  ;;  %7453 = vmatpush3.msra.mxu1 %v8017_v39 }
 0xc8a   : > { %7439 = vmatprep.mubr.msk.f32.mxu0 %vm767_vm0, %v3882_v59  ;;  %7454 = vmatprep.subr.mxu1 %v10260_v0 }
 0xc8b   : > { %7475 = vmatpush3.msra.mxu0 %v8013_v10  ;;  %7455 = vmatpush3.msra.mxu1 %v8018_v20 }
 0xc8c   : > { %7476 = vmatprep.subr.mxu0 %v10260_v0  ;;  %7456 = vmatprep.subr.mxu1 %v10260_v0 }
 0xc8d   : > { %7440 = vmatmul.mubr.msk.f32.gmra.mxu0 %vm767_vm0, %v9760_v27  ;;  %7457 = vmatpush3.msra.mxu1 %v8019_v29 }
 0xc8e   : > { %7477 = vmatpush3.msra.mxu0 %v8014_v13  ;;  %7461 = vmatprep.subr.mxu1 %v10260_v0 }
 0xc8f   : > { %7478 = vmatprep.subr.mxu0 %v10260_v0  ;;  %7488 = vmatprep.mubr.msk.f32.mxu0 %vm8445_vm1, %v10260_v0 }
 0xc90   : > { %7479 = vmatpush3.msra.mxu0 %v8015_v25 }
 0xc91   : > { %7480 = vmatprep.subr.mxu0 %v10260_v0 }
 0xc92   : > { %7481 = vmatpush3.msra.mxu0 %v8016_v4 }
 0xc93   : > { %7482 = vmatprep.subr.mxu0 %v10260_v0 }
 0xc94   : > { %7483 = vmatpush3.msra.mxu0 %v8017_v39 }
 0xc95   : > { %7484 = vmatprep.subr.mxu0 %v10260_v0 }
 0xc96   : > { %7485 = vmatpush3.msra.mxu0 %v8018_v20 }
 0xc97   : > { %7486 = vmatprep.subr.mxu0 %v10260_v0 }
 0xc98   : > { %7487 = vmatpush3.msra.mxu0 %v8019_v29 }
 0xce8   : > { %v7208_v51 = vpop.f32.mrf.mxu0 }
 0xcea   : > { %v2704_v53 = vpop.f32.mrf.mxu0 }
 0xceb   : > { %v7236_v33 = vpop.f32.mrf.mxu1 }
 0xcec   : > { %v2839_v9 = vadd.f32 %v7236_v33, %v7208_v51 }
 0xced   : > { %v2833_v2 = vpop.f32.mrf.mxu1  ;;  %v7211_v34 = vpop.f32.mrf.mxu0 }
 0xcee   : > { %v2834_v18 = vadd.f32 %v2833_v2, %v2704_v53 }
 0xcef   : > { %v2714_v28 = vpop.f32.mrf.mxu0 }
 0xcf1   : > { %v7239_v37 = vpop.f32.mrf.mxu1 }
 0xcf2   : > { %v2849_v23 = vadd.f32 %v7239_v37, %v7211_v34 }
 0xcf3   : > { %v2843_v38 = vpop.f32.mrf.mxu1  ;;  %v7214_v36 = vpop.f32.mrf.mxu0 }
 0xcf4   : > { %v2844_v21 = vadd.f32 %v2843_v38, %v2714_v28 }
 0xcf5   : > { %v2724_v35 = vpop.f32.mrf.mxu0 }
 0xcf7   : > { %v7242_v43 = vpop.f32.mrf.mxu1 }
 0xcf8   : > { %v2859_v50 = vadd.f32 %v7242_v43, %v7214_v36 }
 0xcf9   : > { %v2853_v45 = vpop.f32.mrf.mxu1  ;;  %v7217_v40 = vpop.f32.mrf.mxu0 }
 0xcfb   : > { %v9781_v58 = vpop.f32.mrf.mxu0 }
 0xcfd   : > { %v7245_v11 = vpop.f32.mrf.mxu1 }
 0xcfe   : > { %v2869_v2 = vadd.f32 %v7245_v11, %v7217_v40 }
 0xcff   : > { %v9783_v17 = vpop.f32.mrf.mxu1  ;;  %v7264_v41 = vpop.f32.mrf.mxu0 }
 0xd00   : > { %v3067_v60 = vadd.f32 %v7264_v41, %v2839_v9 }
 0xd01   : > { %v3027_v48 = vpop.f32.mrf.mxu0 }
 0xd02   : > { %v7292_v12 = vpop.f32.mrf.mxu1  ;;  %v3066_v61 = vadd.f32 %v3027_v48, %v2834_v18 }
 0xd03   : > { %v3229_v57 = vadd.f32 %v7292_v12, %v3067_v60 }
 0xd04   : > { %v3189_v19 = vpop.f32.mrf.mxu1 }
 0xd05   : > { %v7267_v30 = vpop.f32.mrf.mxu0  ;;  %v3228_v42 = vadd.f32 %v3189_v19, %v3066_v61 }
 0xd06   : > { %v3069_v24 = vadd.f32 %v7267_v30, %v2849_v23  ;;  %v2864_v23 = vadd.f32 %v9783_v17, %v9781_v58 }
 0xd07   : > { %v3037_v7 = vpop.f32.mrf.mxu0 }
 0xd08   : > { %v3068_v47 = vadd.f32 %v3037_v7, %v2844_v21 }
 0xd09   : > { %v7295_v52 = vpop.f32.mrf.mxu1 }
 0xd0b   : > { %v3199_v5 = vpop.f32.mrf.mxu1  ;;  %v7270_v3 = vpop.f32.mrf.mxu0 }
 0xd0c   : > { %v3071_v53 = vadd.f32 %v7270_v3, %v2859_v50  ;;  %v3230_v37 = vadd.f32 %v3199_v5, %v3068_v47 }
 0xd0d   : > { %v3047_v10 = vpop.f32.mrf.mxu0 }
 0xd0f   : > { %v7298_v44 = vpop.f32.mrf.mxu1 }
 0xd10   : > { %v3233_v21 = vadd.f32 %v7298_v44, %v3071_v53 }
 0xd11   : > { %v3209_v6 = vpop.f32.mrf.mxu1  ;;  %v7273_v13 = vpop.f32.mrf.mxu0 }
 0xd12   : > { %v3073_v38 = vadd.f32 %v7273_v13, %v2869_v2 }
 0xd13   : > { %v3057_v25 = vpop.f32.mrf.mxu0 }
 0xd15   : > { %v7301_v31 = vpop.f32.mrf.mxu1 }
 0xd16   : > { %v3235_v47 = vadd.f32 %v7301_v31, %v3073_v38 }
 0xd17   : > { %v9785_v22 = vpop.f32.mrf.mxu1  ;;  %v7320_v59 = vpop.f32.mrf.mxu0 }
 0xd19   : > { %v3343_v4 = vpop.f32.mrf.mxu0 }
 0xd1a   : > { %v7348_v39 = vpop.f32.mrf.mxu1  ;;  %v3382_v9 = vadd.f32 %v3343_v4, %v3228_v42 }
 0xd1c   : > { %v3505_v20 = vpop.f32.mrf.mxu1 }
 0xd1d   : > { %v7323_v29 = vpop.f32.mrf.mxu0 }
 0xd1f   : > { %v3353_v0 = vpop.f32.mrf.mxu0 }
 0xd20   : > { %v3384_v36 = vadd.f32 %v3353_v0, %v3230_v37 }
 0xd21   : > { %v7351_v49 = vpop.f32.mrf.mxu1 }
 0xd23   : > { %v3515_v46 = vpop.f32.mrf.mxu1  ;;  %v7326_v15 = vpop.f32.mrf.mxu0 }
 0xd24   : > { %v3546_v11 = vadd.f32 %v3515_v46, %v3384_v36 }
 0xd25   : > { %v3363_v14 = vpop.f32.mrf.mxu0 }
 0xd27   : > { %v7354_v1 = vpop.f32.mrf.mxu1 }
 0xd29   : > { %v9787_v8 = vpop.f32.mrf.mxu1  ;;  %v7329_v26 = vpop.f32.mrf.mxu0 }
 0xd2a   : > { %10386 = vst [vmem:[#allocation58_spill] sm:$0xff] %v9787_v8  ;;  %v3383_v8 = vadd.f32 %v7320_v59, %v3229_v57  ;;  %v3544_v57 = vadd.f32 %v3505_v20, %v3382_v9  ;;  %v3389_v17 = vadd.f32 %v7329_v26, %v3235_v47 }
 0xd2b   : > { %v3373_v55 = vpop.f32.mrf.mxu0 }
 0xd2c   : > { %v3545_v41 = vadd.f32 %v7348_v39, %v3383_v8 }
 0xd2d   : > { %v9789_v27 = vpop.f32.mrf.mxu1 }
 0xd2e   : > { %10387 = vst [vmem:[#allocation59_spill] sm:$0xff] %v9789_v27  ;;  %v2854_v27 = vadd.f32 %v2853_v45, %v2724_v35  ;;  %v3387_v45 = vadd.f32 %v7326_v15, %v3233_v21 }
 0xd2f   : > { %v9791_v54 = vpop.f32.mrf.mxu1  ;;  %v7376_v16 = vpop.f32.mrf.mxu0 }
 0xd30   : > { %10388 = vst [vmem:[#allocation60_spill] sm:$0xff] %v9791_v54  ;;  %v3231_v54 = vadd.f32 %v7295_v52, %v3069_v24  ;;  %v3070_v34 = vadd.f32 %v3047_v10, %v2854_v27  ;;  %v3707_v35 = vadd.f32 %v7376_v16, %v3545_v41  ;;  %v3072_v24 = vadd.f32 %v3057_v25, %v2864_v23 }
 0xd31   : > { %v3667_v32 = vpop.f32.mrf.mxu0  ;;  %v3549_v30 = vadd.f32 %v7354_v1, %v3387_v45  ;;  %v10389_v5 = vld [vmem:[#allocation58_spill] sm:$0xff] }
 0xd32   : > { %v7404_v56 = vpop.f32.mrf.mxu1  ;;  %v3385_v28 = vadd.f32 %v7323_v29, %v3231_v54  ;;  %v3232_v43 = vadd.f32 %v3209_v6, %v3070_v34  ;;  %v3706_v27 = vadd.f32 %v3667_v32, %v3544_v57  ;;  %v3234_v58 = vadd.f32 %v9785_v22, %v3072_v24  ;;  %v6339_v32 = vld [vmem:[#allocation15] ss:$0 sm:$0xff] }
 0xd33   : > { %v3861_v48 = vadd.f32 %v7404_v56, %v3707_v35 }
 0xd34   : > { %v7379_v63 = vpop.f32.mrf.mxu0  ;;  %v3821_v62 = vpop.f32.mrf.mxu1  ;;  %v3547_v42 = vadd.f32 %v7351_v49, %v3385_v28  ;;  %v3386_v8 = vadd.f32 %v3363_v14, %v3232_v43  ;;  %v3388_v15 = vadd.f32 %v3373_v55, %v3234_v58 }
 0xd35   : > { %v3860_v0 = vadd.f32 %v3821_v62, %v3706_v27  ;;  %v10390_v46 = vld [vmem:[#allocation59_spill] sm:$0xff] }
 0xd36   : > { %v3677_v51 = vpop.f32.mrf.mxu0  ;;  %v3709_v12 = vadd.f32 %v7379_v63, %v3547_v42  ;;  %v3548_v49 = vadd.f32 %v10389_v5, %v3386_v8  ;;  %v3551_v56 = vadd.f32 %v10390_v46, %v3389_v17  ;;  %v10392_v5 = vmov 0.0   ;;  %v10393_v46 = vld [vmem:[#allocation32_spill] sm:$0xff] }
 0xd37   : > { %v7407_v33 = vpop.f32.mrf.mxu1  ;;  %v3708_v16 = vadd.f32 %v3677_v51, %v3546_v11  ;;  %v10391_v31 = vld [vmem:[#allocation60_spill] sm:$0xff] }
 0xd38   : > { %v3863_v10 = vadd.f32 %v7407_v33, %v3709_v12  ;;  %v3550_v22 = vadd.f32 %v10391_v31, %v3388_v15  ;;  %v8022_v15 = vld [vmem:[#allocation6 + $0x8] sm:$0xff] }
 0xd39   : > { %v7382_v18 = vpop.f32.mrf.mxu0  ;;  %v3831_v60 = vpop.f32.mrf.mxu1 }
 0xd3a   : > { %v3711_v14 = vadd.f32 %v7382_v18, %v3549_v30  ;;  %v3862_v13 = vadd.f32 %v3831_v60, %v3708_v16 }
 0xd3b   : > { %v3687_v61 = vpop.f32.mrf.mxu0  ;;  %v7410_v40 = vpop.f32.mrf.mxu1 }
 0xd3c   : > { %v3710_v63 = vadd.f32 %v3687_v61, %v3548_v49  ;;  %v3865_v55 = vadd.f32 %v7410_v40, %v3711_v14  ;;  %v8021_v49 = vld [vmem:[#allocation6 + $0x10] sm:$0xff] }
 0xd3d   : > { %v7385_v50 = vpop.f32.mrf.mxu0  ;;  %v3841_v7 = vpop.f32.mrf.mxu1 }
 0xd3e   : > { %v3713_v4 = vadd.f32 %v7385_v50, %v3551_v56  ;;  %v3864_v29 = vadd.f32 %v3841_v7, %v3710_v63 }
 0xd3f   : > { %v3697_v54 = vpop.f32.mrf.mxu0  ;;  %v7413_v26 = vpop.f32.mrf.mxu1 }
 0xd40   : > { %v3712_v51 = vadd.f32 %v3697_v54, %v3550_v22  ;;  %v3867_v28 = vadd.f32 %v7413_v26, %v3713_v4 }
 0xd41   : > { %v7432_v19 = vpop.f32.mrf.mxu0  ;;  %v3851_v53 = vpop.f32.mrf.mxu1 }
 0xd42   : > { %v4023_v52 = vadd.f32 %v7432_v19, %v3861_v48  ;;  %v3866_v38 = vadd.f32 %v3851_v53, %v3712_v51 }
 0xd43   : > { %v3983_v3 = vpop.f32.mrf.mxu0 }
 0xd44   : > { %v4022_v44 = vadd.f32 %v3983_v3, %v3860_v0  ;;  %v9798_v25 = vadd.f32 %v6339_v32, %v4023_v52  ;;  %v8020_v52 = vld [vmem:[#allocation6 + $0x18] sm:$0xff] }
 0xd45   : > { %v7435_v6 = vpop.f32.mrf.mxu0 }
 0xd46   : > { %v9800_v1 = vadd.f32 %v6339_v32, %v4022_v44  ;;  %v4025_v62 = vadd.f32 %v7435_v6, %v3863_v10  ;;  %v4048_v9 = vsel %vm767_vm0, %v9798_v25, 0.0 }
 0xd47   : > { %v3993_v59 = vpop.f32.mrf.mxu0 }
 0xd48   : > { %v4047_v39 = vsel %vm767_vm0, %v9800_v1, 0.0  ;;  %v4024_v20 = vadd.f32 %v3993_v59, %v3862_v13  ;;  %v9807_v2 = vadd.f32 %v6339_v32, %v4025_v62 }
 0xd49   : > { %v7438_v33 = vpop.f32.mrf.mxu0  ;;  %v4049_v37 = vadd.f32 %v4048_v9, %v4047_v39 }
 0xd4a   : > { %v9809_v34 = vadd.f32 %v6339_v32, %v4024_v20  ;;  %v4027_v18 = vadd.f32 %v7438_v33, %v3865_v55  ;;  %v4052_v57 = vsel %vm767_vm0, %v9807_v2, 0.0 }
 0xd4b   : > { %v4003_v41 = vpop.f32.mrf.mxu0 }
 0xd4c   : > { %v4050_v60 = vsel %vm767_vm0, %v9809_v34, 0.0  ;;  %v4026_v23 = vadd.f32 %v4003_v41, %v3864_v29  ;;  %v4042_v36 = vadd.f32 %v6339_v32, %v4027_v18 }
 0xd4d   : > { %v4051_v61 = vadd.f32 %v4050_v60, %v4049_v37  ;;  %v7441_v21 = vpop.f32.mrf.mxu0 }
 0xd4e   : > { %v4041_v35 = vadd.f32 %v6339_v32, %v4026_v23  ;;  %v4029_v43 = vadd.f32 %v7441_v21, %v3867_v28  ;;  %v4056_v40 = vsel %vm767_vm0, %v4042_v36, 0.0 }
 0xd4f   : > { %v4053_v24 = vadd.f32 %v4052_v57, %v4051_v61  ;;  %v4013_v50 = vpop.f32.mrf.mxu0 }
 0xd50   : > { %v4054_v42 = vsel %vm767_vm0, %v4041_v35, 0.0  ;;  %v4028_v45 = vadd.f32 %v4013_v50, %v3866_v38  ;;  %v4044_v47 = vadd.f32 %v6339_v32, %v4029_v43 }
 0xd51   : > { %v4055_v27 = vadd.f32 %v4054_v42, %v4053_v24 }
 0xd52   : > { %v4043_v8 = vadd.f32 %v6339_v32, %v4028_v45  ;;  %v4060_v12 = vsel %vm767_vm0, %v4044_v47, 0.0  ;;  %v8023_v32 = vld [vmem:[#allocation6] sm:$0xff] }
 0xd53   : > { %v4057_v54 = vadd.f32 %v4056_v40, %v4055_v27  ;;  %v4452_v27 = vld [vmem:[#allocation2 + $0x7] sm:$0xff] }
 0xd54   : > { %v4058_v11 = vsel %vm767_vm0, %v4043_v8, 0.0 }
 0xd55   : > { %v4059_v48 = vadd.f32 %v4058_v11, %v4057_v54  ;;  %v10394_v54 = vld [vmem:[#allocation41_spill] sm:$0xff] }
 0xd56   : > { %v4460_v11 = vmul.f32 %v4452_v27, %v10394_v54 }
 0xd57   : > { %v4061_v58 = vadd.f32 %v4060_v12, %v4059_v48  ;;  %v4492_v48 = vld [vmem:[#allocation20 + $0x78] sm:$0xff]  ;;  %v4491_v12 = vld [vmem:[#allocation20 + $0x70] sm:$0xff] }
 0xd58   : > { %7502 = vmatprep.subr.mxu0 %v4492_v48 }
 0xd59   : > { %v4062_v17 = vrot.slane %v4061_v58, 4 }
 0xd5b   : > { %v4063_v19 = vadd.f32 %v4062_v17, %v4061_v58  ;;  %v4475_v58 = vld [vmem:[#allocation20 + $0x38] sm:$0xff]  ;;  %v4490_v17 = vld [vmem:[#allocation20 + $0x68] sm:$0xff] }
 0xd5d   : > { %v4064_v30 = vrot.slane %v4063_v19, 2 }
 0xd5f   : > { %v4065_v0 = vadd.f32 %v4064_v30, %v4063_v19  ;;  %v4474_v19 = vld [vmem:[#allocation20 + $0x30] sm:$0xff]  ;;  %v4489_v30 = vld [vmem:[#allocation20 + $0x60] sm:$0xff] }
 0xd61   : > { %v4066_v16 = vrot.slane %v4065_v0, 1 }
 0xd63   : > { %v4067_v7 = vadd.f32 %v4066_v16, %v4065_v0  ;;  %v4473_v0 = vld [vmem:[#allocation20 + $0x28] sm:$0xff]  ;;  %v4488_v16 = vld [vmem:[#allocation20 + $0x58] sm:$0xff] }
 0xd65   : > { %7459 = vmatmul.mubr.msk.f32.vlgmr.msra.gmra.mxu1 %vm767_vm0, %v4067_v7  ;;  %v4472_v7 = vld [vmem:[#allocation20 + $0x20] sm:$0xff] }
 0xd66   : > { %7462 = vmatpush3.msra.mxu1 %v8020_v52  ;;  %7469 = vmatprep.mubr.msk.f32.mxu1 %vm8445_vm1, %v10392_v5 }
 0xd67   : > { %7463 = vmatprep.subr.mxu1 %v10392_v5 }
 0xd68   : > { %7464 = vmatpush3.msra.mxu1 %v8021_v49 }
 0xd69   : > { %7465 = vmatprep.subr.mxu1 %v10392_v5 }
 0xd6a   : > { %7466 = vmatpush3.msra.mxu1 %v8022_v15 }
 0xd6b   : > { %7467 = vmatprep.subr.mxu1 %v10392_v5 }
 0xd6c   : > { %7468 = vmatpush3.msra.mxu1 %v8023_v32 }
 0xd6d   : > { %7491 = vmatprep.subr.mxu1 %v10392_v5 }
 0xe25   : > { %v4137_v3 = vpop.f32.mrf.mxu1 }
 0xe26   : > { %v4141_v10 = vmul.f32 0.0078125, %v4137_v3  ;;  %v4469_v3 = vld [vmem:[#allocation20 + $0x8] sm:$0xff] }
 0xe27   : > { %v7460_v14 = vpop.f32.mrf.mxu1 }
 0xe28   : > { %7470 = vmatmul.mubr.msk.f32.vlgmr.msra.gmra.mxu1 %vm913_vm2, %v4141_v10  ;;  %v4476_v10 = vld [vmem:[#allocation2 + $0x8] sm:$0xff] }
 0xe29   : > { %7492 = vmatpush3.msra.mxu1 %v8020_v52  ;;  %7499 = vmatprep.mubr.msk.f32.mxu1 %vm8445_vm1, %v10392_v5  ;;  %v4487_v52 = vld [vmem:[#allocation20 + $0x50] sm:$0xff]  ;;  %v4775_v14 = vld [vmem:[#allocation20 + $0xb8] sm:$0xff] }
 0xe2a   : > { %7493 = vmatprep.subr.mxu1 %v10392_v5 }
 0xe2b   : > { %7494 = vmatpush3.msra.mxu1 %v8021_v49  ;;  %v4486_v49 = vld [vmem:[#allocation20 + $0x48] sm:$0xff] }
 0xe2c   : > { %7495 = vmatprep.subr.mxu1 %v10392_v5 }
 0xe2d   : > { %7496 = vmatpush3.msra.mxu1 %v8022_v15  ;;  %v4470_v15 = vld [vmem:[#allocation20 + $0x10] sm:$0xff] }
 0xe2e   : > { %7497 = vmatprep.subr.mxu1 %v10392_v5  ;;  %v4471_v5 = vld [vmem:[#allocation20 + $0x18] sm:$0xff] }
 0xe2f   : > { %7498 = vmatpush3.msra.mxu1 %v8023_v32  ;;  %v4485_v32 = vld [vmem:[#allocation20 + $0x40] sm:$0xff] }
 0xe30   : > { %7530 = vmatprep.subr.mxu1 %v4475_v58 }
 0xee8   : > { %v4211_v44 = vpop.f32.mrf.mxu1 }
 0xee9   : > { %v4218_v56 = vrot.slane %v4211_v44, %v10393_v46  ;;  %v4468_v44 = vld [vmem:[#allocation20] sm:$0xff] }
 0xeea   : > { %v7471_v63 = vpop.f32.mrf.mxu1 }
 0xeeb   : > { %v9834_v6 = vsub.f32 %v9800_v1, %v4218_v56  ;;  %v9837_v13 = vsub.f32 %v9798_v25, %v4218_v56  ;;  %v9840_v26 = vsub.f32 %v9809_v34, %v4218_v56  ;;  %v9843_v62 = vsub.f32 %v9807_v2, %v4218_v56 }
 0xeec   : > { %v9845_v31 = vsub.f32 %v4041_v35, %v4218_v56  ;;  %v9853_v55 = vsub.f32 %v4042_v36, %v4218_v56  ;;  %v9859_v29 = vsub.f32 %v4043_v8, %v4218_v56  ;;  %v9864_v9 = vsub.f32 %v4044_v47, %v4218_v56  ;;  %v4937_v56 = vld [vmem:[#allocation20 + $0xf8] sm:$0xff] }
 0xeed   : > { %v4227_v22 = vmul.f32 %v9834_v6, %v9834_v6  ;;  %v4228_v59 = vmul.f32 %v9837_v13, %v9837_v13  ;;  %v4229_v1 = vmul.f32 %v9840_v26, %v9840_v26  ;;  %v4230_v25 = vmul.f32 %v9843_v62, %v9843_v62 }
 0xeee   : > { %v4231_v51 = vmul.f32 %v9845_v31, %v9845_v31  ;;  %v4232_v2 = vmul.f32 %v9853_v55, %v9853_v55  ;;  %v4233_v37 = vmul.f32 %v9859_v29, %v9859_v29  ;;  %v4234_v60 = vmul.f32 %v9864_v9, %v9864_v9 }
 0xeef   : > { %v4235_v4 = vsel %vm767_vm0, %v4227_v22, 0.0  ;;  %v4236_v39 = vsel %vm767_vm0, %v4228_v59, 0.0  ;;  %v4238_v33 = vsel %vm767_vm0, %v4229_v1, 0.0  ;;  %v4240_v34 = vsel %vm767_vm0, %v4230_v25, 0.0 }
 0xef0   : > { %v4237_v20 = vadd.f32 %v4236_v39, %v4235_v4  ;;  %v4242_v41 = vsel %vm767_vm0, %v4231_v51, 0.0  ;;  %v4244_v23 = vsel %vm767_vm0, %v4232_v2, 0.0  ;;  %v4246_v61 = vsel %vm767_vm0, %v4233_v37, 0.0  ;;  %v6344_v4 = vld [vmem:[#allocation17] ss:$0 sm:$0xff] }
 0xef1   : > { %v4248_v57 = vsel %vm767_vm0, %v4234_v60, 0.0 }
 0xef2   : > { %v4239_v53 = vadd.f32 %v4238_v33, %v4237_v20 }
 0xef4   : > { %v4241_v18 = vadd.f32 %v4240_v34, %v4239_v53  ;;  %v6345_v53 = vld [vmem:[#allocation18] ss:$0 sm:$0xff] }
 0xef6   : > { %v4243_v28 = vadd.f32 %v4242_v41, %v4241_v18 }
 0xef8   : > { %v4245_v38 = vadd.f32 %v4244_v23, %v4243_v28 }
 0xefa   : > { %v4247_v21 = vadd.f32 %v4246_v61, %v4245_v38 }
 0xefc   : > { %v4249_v36 = vadd.f32 %v4248_v57, %v4247_v21 }
 0xefe   : > { %v4250_v35 = vrot.slane %v4249_v36, 4 }
 0xf00   : > { %v4251_v43 = vadd.f32 %v4250_v35, %v4249_v36 }
 0xf02   : > { %v4252_v24 = vrot.slane %v4251_v43, 2 }
 0xf04   : > { %v4253_v50 = vadd.f32 %v4252_v24, %v4251_v43  ;;  %v10395_v24 = vld [vmem:[#allocation42_spill] sm:$0xff] }
 0xf06   : > { %v4254_v42 = vrot.slane %v4253_v50, 1 }
 0xf08   : > { %v4255_v45 = vadd.f32 %v4254_v42, %v4253_v50 }
 0xf0a   : > { %7489 = vmatmul.mubr.msk.f32.vlgmr.msra.gmra.mxu0 %vm767_vm0, %v4255_v45  ;;  %v10396_v45 = vld [vmem:[#allocation45_spill] sm:$0xff] }
 0xf0b   : > { %7503 = vmatpush3.msra.mxu0 %v4492_v48  ;;  %7518 = vmatprep.mubr.msk.f32.mxu0 %vm767_vm0, %v4476_v10  ;;  %v4772_v48 = vld [vmem:[#allocation20 + $0xa0] sm:$0xff]  ;;  %v10399_v10 = vld [vmem:[#allocation50_spill] sm:$0xff] }
 0xf0c   : > { %7504 = vmatprep.subr.mxu0 %v4491_v12 }
 0xf0d   : > { %7505 = vmatpush3.msra.mxu0 %v4491_v12 }
 0xf0e   : > { %7506 = vmatprep.subr.mxu0 %v4490_v17 }
 0xf0f   : > { %7507 = vmatpush3.msra.mxu0 %v4490_v17  ;;  %v10397_v17 = vld [vmem:[#allocation46_spill] sm:$0xff] }
 0xf10   : > { %7508 = vmatprep.subr.mxu0 %v4489_v30 }
 0xf11   : > { %7509 = vmatpush3.msra.mxu0 %v4489_v30  ;;  %v4935_v30 = vld [vmem:[#allocation20 + $0xe8] sm:$0xff] }
 0xf12   : > { %7510 = vmatprep.subr.mxu0 %v4488_v16 }
 0xf13   : > { %7511 = vmatpush3.msra.mxu0 %v4488_v16 }
 0xf14   : > { %7512 = vmatprep.subr.mxu0 %v4487_v52 }
 0xf15   : > { %7513 = vmatpush3.msra.mxu0 %v4487_v52  ;;  %v4934_v52 = vld [vmem:[#allocation20 + $0xe0] sm:$0xff] }
 0xf16   : > { %7514 = vmatprep.subr.mxu0 %v4486_v49 }
 0xf17   : > { %7515 = vmatpush3.msra.mxu0 %v4486_v49 }
 0xf18   : > { %7516 = vmatprep.subr.mxu0 %v4485_v32 }
 0xf19   : > { %7517 = vmatpush3.msra.mxu0 %v4485_v32 }
 0xf1a   : > { %7558 = vmatprep.subr.mxu0 %v4775_v14 }
 0xfca   : > { %v4325_v40 = vpop.f32.mrf.mxu0 }
 0xfcb   : > { %v4329_v47 = vmul.f32 0.0078125, %v4325_v40  ;;  %v4773_v40 = vld [vmem:[#allocation20 + $0xa8] sm:$0xff] }
 0xfcc   : > { %v7490_v8 = vpop.f32.mrf.mxu0 }
 0xfcd   : > { %7500 = vmatmul.mubr.msk.f32.vlgmr.msra.gmra.mxu1 %vm913_vm2, %v4329_v47  ;;  %v4936_v47 = vld [vmem:[#allocation20 + $0xf0] sm:$0xff] }
 0xfce   : > { %7546 = vmatprep.mubr.msk.f32.mxu1 %vm767_vm0, %v4460_v11  ;;  %7531 = vmatpush3.msra.mxu1 %v4475_v58 }
 0xfcf   : > { %7532 = vmatprep.subr.mxu1 %v4474_v19 }
 0xfd0   : > { %7533 = vmatpush3.msra.mxu1 %v4474_v19 }
 0xfd1   : > { %7534 = vmatprep.subr.mxu1 %v4473_v0 }
 0xfd2   : > { %7535 = vmatpush3.msra.mxu1 %v4473_v0  ;;  %v10398_v0 = vld [vmem:[#allocation49_spill] sm:$0xff] }
 0xfd3   : > { %7536 = vmatprep.subr.mxu1 %v4472_v7 }
 0xfd4   : > { %7537 = vmatpush3.msra.mxu1 %v4472_v7  ;;  %v4771_v7 = vld [vmem:[#allocation20 + $0x98] sm:$0xff] }
 0xfd5   : > { %7538 = vmatprep.subr.mxu1 %v4471_v5 }
 0xfd6   : > { %7539 = vmatpush3.msra.mxu1 %v4471_v5 }
 0xfd7   : > { %7540 = vmatprep.subr.mxu1 %v4470_v15 }
 0xfd8   : > { %7541 = vmatpush3.msra.mxu1 %v4470_v15  ;;  %v4770_v15 = vld [vmem:[#allocation20 + $0x90] sm:$0xff] }
 0xfd9   : > { %7542 = vmatprep.subr.mxu1 %v4469_v3 }
 0xfda   : > { %7543 = vmatpush3.msra.mxu1 %v4469_v3 }
 0xfdb   : > { %7544 = vmatprep.subr.mxu1 %v4468_v44 }
 0xfdc   : > { %7545 = vmatpush3.msra.mxu1 %v4468_v44  ;;  %v4933_v44 = vld [vmem:[#allocation20 + $0xd8] sm:$0xff] }
 0xfdd   : > { %7586 = vmatprep.subr.mxu1 %v4937_v56 }
0x108d   : > { %v4399_v63 = vpop.f32.mrf.mxu1 }
0x108e   : > { %v4400_v22 = vadd.f32 1e-06, %v4399_v63 }
0x108f   : > { %v7501_v59 = vpop.f32.mrf.mxu1 }
0x1090   : > { %7958 = vrsqrt.f32 %v4400_v22  ;;  %v4769_v22 = vld [vmem:[#allocation20 + $0x88] sm:$0xff] }
0x109d   : > { %v7959_v1 = vpop.eup %7958 }
0x109e   : > { %v4407_v25 = vrot.slane %v7959_v1, %v10393_v46  ;;  %v4932_v1 = vld [vmem:[#allocation20 + $0xd0] sm:$0xff] }
0x10a0   : > { %v4408_v39 = vmul.f32 %v4407_v25, %v9834_v6  ;;  %v4409_v20 = vmul.f32 %v4407_v25, %v9837_v13  ;;  %v4410_v51 = vmul.f32 %v4407_v25, %v9840_v26  ;;  %v4411_v33 = vmul.f32 %v4407_v25, %v9843_v62 }
0x10a1   : > { %v4412_v2 = vmul.f32 %v4407_v25, %v9845_v31  ;;  %v4413_v34 = vmul.f32 %v4407_v25, %v9853_v55  ;;  %v4414_v18 = vmul.f32 %v4407_v25, %v9859_v29  ;;  %v4415_v37 = vmul.f32 %v4407_v25, %v9864_v9  ;;  %v4774_v29 = vld [vmem:[#allocation20 + $0xb0] sm:$0xff] }
0x10a2   : > { %v4422_v41 = vmul.f32 %v6344_v4, %v4408_v39  ;;  %v4423_v46 = vmul.f32 %v6344_v4, %v4409_v20  ;;  %v4424_v28 = vmul.f32 %v6344_v4, %v4410_v51  ;;  %v4425_v60 = vmul.f32 %v6344_v4, %v4411_v33  ;;  %v4768_v39 = vld [vmem:[#allocation20 + $0x80] sm:$0xff]  ;;  %v10402_v33 = vld [vmem:[#allocation54_spill] sm:$0xff] }
0x10a3   : > { %v4426_v6 = vmul.f32 %v6344_v4, %v4412_v2  ;;  %v4427_v23 = vmul.f32 %v6344_v4, %v4413_v34  ;;  %v4428_v13 = vmul.f32 %v6344_v4, %v4414_v18  ;;  %v4429_v38 = vmul.f32 %v6344_v4, %v4415_v37  ;;  %v10401_v20 = vld [vmem:[#allocation43_spill] sm:$0xff]  ;;  %v4931_v2 = vld [vmem:[#allocation20 + $0xc8] sm:$0xff] }
0x10a4   : > { %v4436_v26 = vadd.f32 %v6345_v53, %v4422_v41  ;;  %v4437_v61 = vadd.f32 %v6345_v53, %v4423_v46  ;;  %v4438_v62 = vadd.f32 %v6345_v53, %v4424_v28  ;;  %v4439_v21 = vadd.f32 %v6345_v53, %v4425_v60  ;;  %v5091_v37 = vld [vmem:[#allocation20 + $0x138] sm:$0xff]  ;;  %v4930_v46 = vld [vmem:[#allocation20 + $0xc0] sm:$0xff] }
0x10a5   : > { %v4440_v57 = vadd.f32 %v6345_v53, %v4426_v6  ;;  %v4441_v31 = vadd.f32 %v6345_v53, %v4427_v23  ;;  %v4442_v36 = vadd.f32 %v6345_v53, %v4428_v13  ;;  %v4443_v55 = vadd.f32 %v6345_v53, %v4429_v38  ;;  %v10403_v28 = vld [vmem:[#allocation44_spill] sm:$0xff]  ;;  %v10404_v6 = vld [vmem:[#allocation47_spill] sm:$0xff]  ;;  %v5090_v13 = vld [vmem:[#allocation20 + $0x130] sm:$0xff] }
0x10a6   : > { %4444 = vst.msk [vmem:[#allocation2 + $0x10] sm:$0xff] %vm767_vm0, %v4436_v26  ;;  %4445 = vst.msk [vmem:[#allocation2 + $0x18] sm:$0xff] %vm767_vm0, %v4437_v61  ;;  %v5253_v26 = vld [vmem:[#allocation20 + $0x178] sm:$0xff] }
0x10a7   : > { %4446 = vst.msk [vmem:[#allocation2 + $0x20] sm:$0xff] %vm767_vm0, %v4438_v62  ;;  %4447 = vst.msk [vmem:[#allocation2 + $0x28] sm:$0xff] %vm767_vm0, %v4439_v21  ;;  %v5089_v21 = vld [vmem:[#allocation20 + $0x128] sm:$0xff] }
0x10a8   : > { %4448 = vst.msk [vmem:[#allocation2 + $0x30] sm:$0xff] %vm767_vm0, %v4440_v57  ;;  %4449 = vst.msk [vmem:[#allocation2 + $0x38] sm:$0xff] %vm767_vm0, %v4441_v31  ;;  %v5252_v31 = vld [vmem:[#allocation20 + $0x170] sm:$0xff] }
0x10a9   : > { %4450 = vst.msk [vmem:[#allocation2 + $0x40] sm:$0xff] %vm767_vm0, %v4442_v36  ;;  %4451 = vst.msk [vmem:[#allocation2 + $0x48] sm:$0xff] %vm767_vm0, %v4443_v55  ;;  %v10405_v36 = vld [vmem:[#allocation48_spill] sm:$0xff] }
0x10ad   : > { %v9899_v9 = vld [vmem:[#allocation2 + $0x10] sm:$0xff]  ;;  %v9901_v35 = vld [vmem:[#allocation2 + $0x18] sm:$0xff] }
0x10ae   : > { %v9903_v43 = vld [vmem:[#allocation2 + $0xf] sm:$0xff]  ;;  %7519 = vmatmul.mubr.msk.f32.vlgmr.msra.gmra.mxu0 %vm767_vm0, %v9899_v9  ;;  %v9909_v42 = vld [vmem:[#allocation2 + $0x17] sm:$0xff]  ;;  %v9917_v8 = vld [vmem:[#allocation2 + $0x1f] sm:$0xff] }
0x10af   : > { %v4461_v50 = vmul.f32 %v9903_v43, %v10395_v24  ;;  %7559 = vmatpush3.msra.mxu0 %v4775_v14  ;;  %7521 = vmatprep.mubr.msk.f32.mxu0 %vm767_vm0, %v9901_v35  ;;  %v4462_v27 = vmul.f32 %v9909_v42, %v10396_v45  ;;  %v9919_v11 = vld [vmem:[#allocation2 + $0x20] sm:$0xff]  ;;  %v9925_v58 = vld [vmem:[#allocation2 + $0x28] sm:$0xff]  ;;  %v4463_v19 = vmul.f32 %v9917_v8, %v10397_v17  ;;  %v9937_v49 = vld [vmem:[#allocation2 + $0x30] sm:$0xff] }
0x10b0   : > { %7560 = vmatprep.subr.mxu0 %v4774_v29  ;;  %v9921_v12 = vld [vmem:[#allocation2 + $0x27] sm:$0xff]  ;;  %v9935_v5 = vld [vmem:[#allocation2 + $0x2f] sm:$0xff]  ;;  %v9939_v32 = vld [vmem:[#allocation2 + $0x37] sm:$0xff]  ;;  %v4921_v18 = vmul.f32 %v9903_v43, %v10394_v54  ;;  %v4922_v38 = vmul.f32 %v9909_v42, %v10395_v24  ;;  %v4923_v62 = vmul.f32 %v9917_v8, %v10396_v45 }
0x10b1   : > { %7547 = vmatmul.mubr.msk.f32.vlgmr.msra.gmra.mxu1 %vm767_vm0, %v4461_v50  ;;  %7561 = vmatpush3.msra.mxu0 %v4774_v29  ;;  %v4464_v16 = vmul.f32 %v9921_v12, %v10398_v0  ;;  %v9943_v3 = vld [vmem:[#allocation2 + $0x38] sm:$0xff]  ;;  %v4465_v14 = vmul.f32 %v9935_v5, %v10399_v10  ;;  %v4751_v59 = vld [vmem:[#allocation2 + $0x9] sm:$0xff]  ;;  %v9955_v4 = vld [vmem:[#allocation2 + $0x40] sm:$0xff] }
0x10b2   : > { %7549 = vmatprep.mubr.msk.f32.mxu1 %vm767_vm0, %v4462_v27  ;;  %7562 = vmatprep.subr.mxu0 %v4773_v40  ;;  %v9953_v25 = vld [vmem:[#allocation2 + $0x3f] sm:$0xff]  ;;  %v4759_v51 = vmul.f32 %v4751_v59, %v10401_v20  ;;  %v9963_v34 = vld [vmem:[#allocation2 + $0x11] sm:$0xff]  ;;  %v9983_v57 = vld [vmem:[#allocation2 + $0x29] sm:$0xff]  ;;  %v4924_v27 = vmul.f32 %v9921_v12, %v10397_v17 }
0x10b3   : > { %7587 = vmatpush3.msra.mxu1 %v4937_v56  ;;  %7522 = vmatmul.mubr.msk.f32.gmra.mxu0 %vm767_vm0, %v9919_v11  ;;  %v10400_v56 = vld [vmem:[#allocation53_spill] sm:$0xff]  ;;  %v4467_v53 = vmul.f32 %v9953_v25, %v10402_v33  ;;  %v4760_v60 = vmul.f32 %v9963_v34, %v10403_v28  ;;  %v10406_v29 = vld [vmem:[#allocation51_spill] sm:$0xff] }
0x10b4   : > { %7588 = vmatprep.subr.mxu1 %v4936_v47  ;;  %7563 = vmatpush3.msra.mxu0 %v4773_v40  ;;  %v4466_v63 = vmul.f32 %v9939_v32, %v10400_v56  ;;  %v9967_v41 = vld [vmem:[#allocation2 + $0x19] sm:$0xff]  ;;  %v9979_v61 = vld [vmem:[#allocation2 + $0x21] sm:$0xff]  ;;  %v4763_v43 = vmul.f32 %v9983_v57, %v10406_v29  ;;  %v5088_v50 = vld [vmem:[#allocation20 + $0x120] sm:$0xff] }
0x10b5   : > { %7524 = vmatprep.mubr.msk.f32.mxu0 %vm767_vm0, %v9925_v58  ;;  %7564 = vmatprep.subr.mxu0 %v4772_v48  ;;  %v4761_v23 = vmul.f32 %v9967_v41, %v10404_v6  ;;  %v4762_v55 = vmul.f32 %v9979_v61, %v10405_v36  ;;  %v5251_v40 = vld [vmem:[#allocation20 + $0x168] sm:$0xff]  ;;  %v10011_v59 = vld [vmem:[#allocation2 + $0x41] sm:$0xff] }
0x10b6   : > { %7589 = vmatpush3.msra.mxu1 %v4936_v47  ;;  %7565 = vmatpush3.msra.mxu0 %v4772_v48  ;;  %v9995_v47 = vld [vmem:[#allocation2 + $0x31] sm:$0xff]  ;;  %v4925_v48 = vmul.f32 %v9935_v5, %v10398_v0 }
0x10b7   : > { %7550 = vmatmul.mubr.msk.f32.gmra.mxu1 %vm767_vm0, %v4463_v19  ;;  %7590 = vmatprep.subr.mxu1 %v4935_v30  ;;  %v5087_v19 = vld [vmem:[#allocation20 + $0x118] sm:$0xff] }
0x10b8   : > { %7552 = vmatprep.mubr.msk.f32.mxu1 %vm767_vm0, %v4464_v16  ;;  %7566 = vmatprep.subr.mxu0 %v4771_v7  ;;  %v5250_v16 = vld [vmem:[#allocation20 + $0x160] sm:$0xff] }
0x10b9   : > { %7591 = vmatpush3.msra.mxu1 %v4935_v30  ;;  %7525 = vmatmul.mubr.msk.f32.gmra.mxu0 %vm767_vm0, %v9937_v49  ;;  %v9999_v30 = vld [vmem:[#allocation2 + $0x39] sm:$0xff] }
0x10ba   : > { %7592 = vmatprep.subr.mxu1 %v4934_v52  ;;  %7567 = vmatpush3.msra.mxu0 %v4771_v7  ;;  %v10407_v7 = vld [vmem:[#allocation52_spill] sm:$0xff] }
0x10bb   : > { %7527 = vmatprep.mubr.msk.f32.mxu0 %vm767_vm0, %v9943_v3  ;;  %7568 = vmatprep.subr.mxu0 %v4770_v15 }
0x10bc   : > { %7593 = vmatpush3.msra.mxu1 %v4934_v52  ;;  %7569 = vmatpush3.msra.mxu0 %v4770_v15  ;;  %v4764_v52 = vmul.f32 %v9995_v47, %v10407_v7  ;;  %v10408_v15 = vld [vmem:[#allocation55_spill] sm:$0xff] }
0x10bd   : > { %7553 = vmatmul.mubr.msk.f32.gmra.mxu1 %vm767_vm0, %v4465_v14  ;;  %7594 = vmatprep.subr.mxu1 %v4933_v44  ;;  %v4765_v14 = vmul.f32 %v9999_v30, %v10408_v15 }
0x10be   : > { %7555 = vmatprep.mubr.msk.f32.mxu1 %vm767_vm0, %v4466_v63  ;;  %7570 = vmatprep.subr.mxu0 %v4769_v22  ;;  %v4926_v63 = vmul.f32 %v9939_v32, %v10399_v10 }
0x10bf   : > { %7595 = vmatpush3.msra.mxu1 %v4933_v44  ;;  %7528 = vmatmul.mubr.msk.f32.gmra.mxu0 %vm767_vm0, %v9955_v4  ;;  %v5086_v44 = vld [vmem:[#allocation20 + $0x110] sm:$0xff] }
0x10c0   : > { %7596 = vmatprep.subr.mxu1 %v4932_v1  ;;  %7571 = vmatpush3.msra.mxu0 %v4769_v22  ;;  %v5249_v22 = vld [vmem:[#allocation20 + $0x158] sm:$0xff] }
0x10c1   : > { %7574 = vmatprep.mubr.msk.f32.mxu0 %vm767_vm0, %v4759_v51  ;;  %7572 = vmatprep.subr.mxu0 %v4768_v39  ;;  %v5248_v51 = vld [vmem:[#allocation20 + $0x150] sm:$0xff] }
0x10c2   : > { %7597 = vmatpush3.msra.mxu1 %v4932_v1  ;;  %7573 = vmatpush3.msra.mxu0 %v4768_v39  ;;  %v4927_v1 = vmul.f32 %v9953_v25, %v10400_v56  ;;  %v5085_v39 = vld [vmem:[#allocation20 + $0x108] sm:$0xff] }
0x10c3   : > { %7556 = vmatmul.mubr.msk.f32.gmra.mxu1 %vm767_vm0, %v4467_v53  ;;  %7598 = vmatprep.subr.mxu1 %v4931_v2  ;;  %v10409_v53 = vld [vmem:[#allocation56_spill] sm:$0xff] }
0x10c4   : > { %7602 = vmatprep.mubr.msk.f32.mxu1 %vm767_vm0, %v4921_v18  ;;  %7599 = vmatpush3.msra.mxu1 %v4931_v2  ;;  %v4766_v2 = vmul.f32 %v10011_v59, %v10409_v53  ;;  %v10019_v18 = vld [vmem:[#allocation2 + $0x47] sm:$0xff] }
0x10c5   : > { %7614 = vmatprep.subr.mxu0 %v5091_v37  ;;  %7575 = vmatmul.mubr.msk.f32.vlgmr.msra.gmra.mxu0 %vm767_vm0, %v4760_v60  ;;  %v5247_v60 = vld [vmem:[#allocation20 + $0x148] sm:$0xff] }
0x10c6   : > { %7600 = vmatprep.subr.mxu1 %v4930_v46  ;;  %7615 = vmatpush3.msra.mxu0 %v5091_v37  ;;  %v5084_v37 = vld [vmem:[#allocation20 + $0x100] sm:$0xff] }
0x10c7   : > { %7577 = vmatprep.mubr.msk.f32.mxu0 %vm767_vm0, %v4761_v23  ;;  %7601 = vmatpush3.msra.mxu1 %v4930_v46  ;;  %v4928_v46 = vmul.f32 %v10019_v18, %v10402_v33  ;;  %v5237_v23 = vmul.f32 %v9963_v34, %v10401_v20  ;;  %v5238_v34 = vmul.f32 %v9967_v41, %v10403_v28 }
0x10c8   : > { %7616 = vmatprep.subr.mxu0 %v5090_v13  ;;  %7603 = vmatmul.mubr.msk.f32.vlgmr.msra.gmra.mxu1 %vm767_vm0, %v4922_v38  ;;  %v5246_v38 = vld [vmem:[#allocation20 + $0x140] sm:$0xff] }
0x10c9   : > { %7617 = vmatpush3.msra.mxu0 %v5090_v13  ;;  %7642 = vmatprep.subr.mxu1 %v5253_v26  ;;  %v5415_v13 = vld [vmem:[#allocation20 + $0x1b8] sm:$0xff] }
0x10ca   : > { %7605 = vmatprep.mubr.msk.f32.mxu1 %vm767_vm0, %v4923_v62  ;;  %7618 = vmatprep.subr.mxu0 %v5089_v21  ;;  %v5239_v62 = vmul.f32 %v9979_v61, %v10404_v6 }
0x10cb   : > { %7643 = vmatpush3.msra.mxu1 %v5253_v26  ;;  %7578 = vmatmul.mubr.msk.f32.gmra.mxu0 %vm767_vm0, %v4762_v55  ;;  %v5569_v26 = vld [vmem:[#allocation20 + $0x1f8] sm:$0xff]  ;;  %v5412_v55 = vld [vmem:[#allocation20 + $0x1a0] sm:$0xff] }
0x10cc   : > { %7644 = vmatprep.subr.mxu1 %v5252_v31  ;;  %7619 = vmatpush3.msra.mxu0 %v5089_v21  ;;  %v5413_v21 = vld [vmem:[#allocation20 + $0x1a8] sm:$0xff] }
0x10cd   : > { %7580 = vmatprep.mubr.msk.f32.mxu0 %vm767_vm0, %v4763_v43  ;;  %7620 = vmatprep.subr.mxu0 %v5088_v50  ;;  %v5240_v43 = vmul.f32 %v9983_v57, %v10405_v36 }
0x10ce   : > { %7645 = vmatpush3.msra.mxu1 %v5252_v31  ;;  %7621 = vmatpush3.msra.mxu0 %v5088_v50  ;;  %v5568_v31 = vld [vmem:[#allocation20 + $0x1f0] sm:$0xff]  ;;  %v5567_v50 = vld [vmem:[#allocation20 + $0x1e8] sm:$0xff] }
0x10cf   : > { %7606 = vmatmul.mubr.msk.f32.gmra.mxu1 %vm767_vm0, %v4924_v27  ;;  %7646 = vmatprep.subr.mxu1 %v5251_v40  ;;  %v5241_v27 = vmul.f32 %v9995_v47, %v10406_v29 }
0x10d0   : > { %7608 = vmatprep.mubr.msk.f32.mxu1 %vm767_vm0, %v4925_v48  ;;  %7622 = vmatprep.subr.mxu0 %v5087_v19  ;;  %v5566_v48 = vld [vmem:[#allocation20 + $0x1e0] sm:$0xff] }
0x10d1   : > { %7647 = vmatpush3.msra.mxu1 %v5251_v40  ;;  %7581 = vmatmul.mubr.msk.f32.gmra.mxu0 %vm767_vm0, %v4764_v52  ;;  %v5411_v40 = vld [vmem:[#allocation20 + $0x198] sm:$0xff] }
0x10d2   : > { %7648 = vmatprep.subr.mxu1 %v5250_v16  ;;  %7623 = vmatpush3.msra.mxu0 %v5087_v19  ;;  %v5410_v19 = vld [vmem:[#allocation20 + $0x190] sm:$0xff]  ;;  %v5565_v52 = vld [vmem:[#allocation20 + $0x1d8] sm:$0xff] }
0x10d3   : > { %7583 = vmatprep.mubr.msk.f32.mxu0 %vm767_vm0, %v4765_v14  ;;  %7624 = vmatprep.subr.mxu0 %v5086_v44  ;;  %v5243_v14 = vmul.f32 %v10011_v59, %v10408_v15 }
0x10d4   : > { %7649 = vmatpush3.msra.mxu1 %v5250_v16  ;;  %7625 = vmatpush3.msra.mxu0 %v5086_v44  ;;  %v5242_v16 = vmul.f32 %v9999_v30, %v10407_v7  ;;  %v5409_v44 = vld [vmem:[#allocation20 + $0x188] sm:$0xff] }
0x10d5   : > { %7609 = vmatmul.mubr.msk.f32.gmra.mxu1 %vm767_vm0, %v4926_v63  ;;  %7650 = vmatprep.subr.mxu1 %v5249_v22  ;;  %v5564_v63 = vld [vmem:[#allocation20 + $0x1d0] sm:$0xff] }
0x10d6   : > { %7611 = vmatprep.mubr.msk.f32.mxu1 %vm767_vm0, %v4927_v1  ;;  %7626 = vmatprep.subr.mxu0 %v5085_v39  ;;  %v5082_v1 = vld [vmem:[#allocation2 + $0x48] sm:$0xff] }
0x10d7   : > { %7651 = vmatpush3.msra.mxu1 %v5249_v22  ;;  %7584 = vmatmul.mubr.msk.f32.gmra.mxu0 %vm767_vm0, %v4766_v2  ;;  %v10060_v22 = vld [vmem:[#allocation2 + $0x49] sm:$0xff] }
0x10d8   : > { %7652 = vmatprep.subr.mxu1 %v5248_v51  ;;  %7627 = vmatpush3.msra.mxu0 %v5085_v39  ;;  %v5408_v39 = vld [vmem:[#allocation20 + $0x180] sm:$0xff]  ;;  %v5244_v2 = vmul.f32 %v10060_v22, %v10409_v53  ;;  %v5730_v53 = vld [vmem:[#allocation20 + $0x230] sm:$0xff] }
0x10d9   : > { %7630 = vmatprep.mubr.msk.f32.mxu0 %vm767_vm0, %v9899_v9  ;;  %7628 = vmatprep.subr.mxu0 %v5084_v37  ;;  %v5414_v9 = vld [vmem:[#allocation20 + $0x1b0] sm:$0xff] }
0x10da   : > { %7653 = vmatpush3.msra.mxu1 %v5248_v51  ;;  %7629 = vmatpush3.msra.mxu0 %v5084_v37  ;;  %v5399_v51 = vmul.f32 %v9909_v42, %v10394_v54  ;;  %v5563_v37 = vld [vmem:[#allocation20 + $0x1c8] sm:$0xff]  ;;  %v5400_v54 = vmul.f32 %v9917_v8, %v10395_v24  ;;  %v5401_v42 = vmul.f32 %v9921_v12, %v10396_v45  ;;  %v5728_v45 = vld [vmem:[#allocation20 + $0x220] sm:$0xff]  ;;  %v5727_v8 = vld [vmem:[#allocation20 + $0x218] sm:$0xff] }
0x10db   : > { %7612 = vmatmul.mubr.msk.f32.gmra.mxu1 %vm767_vm0, %v4928_v46  ;;  %7654 = vmatprep.subr.mxu1 %v5247_v60  ;;  %v5731_v46 = vld [vmem:[#allocation20 + $0x238] sm:$0xff]  ;;  %v5403_v24 = vmul.f32 %v9939_v32, %v10398_v0  ;;  %v5405_v12 = vmul.f32 %v10019_v18, %v10400_v56  ;;  %v5725_v0 = vld [vmem:[#allocation20 + $0x208] sm:$0xff]  ;;  %v5715_v32 = vmul.f32 %v9967_v41, %v10401_v20 }
0x10dc   : > { %7658 = vmatprep.mubr.msk.f32.mxu1 %vm767_vm0, %v5237_v23  ;;  %7655 = vmatpush3.msra.mxu1 %v5247_v60  ;;  %v5562_v60 = vld [vmem:[#allocation20 + $0x1c0] sm:$0xff]  ;;  %v5729_v23 = vld [vmem:[#allocation20 + $0x228] sm:$0xff]  ;;  %v5717_v56 = vmul.f32 %v9983_v57, %v10404_v6  ;;  %v5720_v20 = vmul.f32 %v10011_v59, %v10407_v7 }
0x10dd   : > { %7670 = vmatprep.subr.mxu0 %v5415_v13  ;;  %7631 = vmatmul.mubr.msk.f32.vlgmr.msra.gmra.mxu0 %vm767_vm0, %v9901_v35  ;;  %v10410_v41 = vld [vmem:[#allocation57_spill] sm:$0xff] }
0x10de   : > { %7656 = vmatprep.subr.mxu1 %v5246_v38  ;;  %7671 = vmatpush3.msra.mxu0 %v5415_v13 }
0x10df   : > { %7633 = vmatprep.mubr.msk.f32.mxu0 %vm767_vm0, %v9919_v11  ;;  %7657 = vmatpush3.msra.mxu1 %v5246_v38 }
0x10e0   : > { %7672 = vmatprep.subr.mxu0 %v5414_v9  ;;  %7659 = vmatmul.mubr.msk.f32.vlgmr.msra.gmra.mxu1 %vm767_vm0, %v5238_v34 }
0x10e1   : > { %7673 = vmatpush3.msra.mxu0 %v5414_v9  ;;  %7698 = vmatprep.subr.mxu1 %v5569_v26 }
0x10e2   : > { %7661 = vmatprep.mubr.msk.f32.mxu1 %vm767_vm0, %v5239_v62  ;;  %7674 = vmatprep.subr.mxu0 %v5413_v21 }
0x10e3   : > { %7699 = vmatpush3.msra.mxu1 %v5569_v26  ;;  %7634 = vmatmul.mubr.msk.f32.gmra.mxu0 %vm767_vm0, %v9925_v58 }
0x10e4   : > { %7700 = vmatprep.subr.mxu1 %v5568_v31  ;;  %7675 = vmatpush3.msra.mxu0 %v5413_v21 }
0x10e5   : > { %7636 = vmatprep.mubr.msk.f32.mxu0 %vm767_vm0, %v9937_v49  ;;  %7676 = vmatprep.subr.mxu0 %v5412_v55 }
0x10e6   : > { %7701 = vmatpush3.msra.mxu1 %v5568_v31  ;;  %7677 = vmatpush3.msra.mxu0 %v5412_v55 }
0x10e7   : > { %7662 = vmatmul.mubr.msk.f32.gmra.mxu1 %vm767_vm0, %v5240_v43  ;;  %7702 = vmatprep.subr.mxu1 %v5567_v50 }
0x10e8   : > { %7664 = vmatprep.mubr.msk.f32.mxu1 %vm767_vm0, %v5241_v27  ;;  %7678 = vmatprep.subr.mxu0 %v5411_v40 }
0x10e9   : > { %7703 = vmatpush3.msra.mxu1 %v5567_v50  ;;  %7637 = vmatmul.mubr.msk.f32.gmra.mxu0 %vm767_vm0, %v9943_v3 }
0x10ea   : > { %7704 = vmatprep.subr.mxu1 %v5566_v48  ;;  %7679 = vmatpush3.msra.mxu0 %v5411_v40 }
0x10eb   : > { %7639 = vmatprep.mubr.msk.f32.mxu0 %vm767_vm0, %v9955_v4  ;;  %7680 = vmatprep.subr.mxu0 %v5410_v19 }
0x10ec   : > { %7705 = vmatpush3.msra.mxu1 %v5566_v48  ;;  %7681 = vmatpush3.msra.mxu0 %v5410_v19 }
0x10ed   : > { %7665 = vmatmul.mubr.msk.f32.gmra.mxu1 %vm767_vm0, %v5242_v16  ;;  %7706 = vmatprep.subr.mxu1 %v5565_v52 }
0x10ee   : > { %7667 = vmatprep.mubr.msk.f32.mxu1 %vm767_vm0, %v5243_v14  ;;  %7682 = vmatprep.subr.mxu0 %v5409_v44 }
0x10ef   : > { %7707 = vmatpush3.msra.mxu1 %v5565_v52  ;;  %7640 = vmatmul.mubr.msk.f32.gmra.mxu0 %vm767_vm0, %v5082_v1 }
0x10f0   : > { %7708 = vmatprep.subr.mxu1 %v5564_v63  ;;  %7683 = vmatpush3.msra.mxu0 %v5409_v44 }
0x10f1   : > { %7686 = vmatprep.mubr.msk.f32.mxu0 %vm767_vm0, %v5399_v51  ;;  %7684 = vmatprep.subr.mxu0 %v5408_v39 }
0x10f2   : > { %7709 = vmatpush3.msra.mxu1 %v5564_v63  ;;  %7685 = vmatpush3.msra.mxu0 %v5408_v39 }
0x10f3   : > { %7668 = vmatmul.mubr.msk.f32.gmra.mxu1 %vm767_vm0, %v5244_v2  ;;  %7710 = vmatprep.subr.mxu1 %v5563_v37 }
0x10f4   : > { %7714 = vmatprep.mubr.msk.f32.mxu1 %vm767_vm0, %v9901_v35  ;;  %7711 = vmatpush3.msra.mxu1 %v5563_v37  ;;  %v5402_v35 = vmul.f32 %v9935_v5, %v10397_v17  ;;  %v5398_v17 = vld [vmem:[#allocation2 + $0x4f] sm:$0xff] }
0x10f5   : > { %7726 = vmatprep.subr.mxu0 %v5731_v46  ;;  %7687 = vmatmul.mubr.msk.f32.vlgmr.msra.gmra.mxu0 %vm767_vm0, %v5400_v54  ;;  %v5406_v5 = vmul.f32 %v5398_v17, %v10402_v33  ;;  %v5721_v33 = vmul.f32 %v10060_v22, %v10408_v15 }
0x10f6   : > { %7712 = vmatprep.subr.mxu1 %v5562_v60  ;;  %7727 = vmatpush3.msra.mxu0 %v5731_v46 }
0x10f7   : > { %7689 = vmatprep.mubr.msk.f32.mxu0 %vm767_vm0, %v5401_v42  ;;  %7713 = vmatpush3.msra.mxu1 %v5562_v60 }
0x10f8   : > { %7728 = vmatprep.subr.mxu0 %v5730_v53  ;;  %7715 = vmatmul.mubr.msk.f32.vlgmr.msra.gmra.mxu1 %vm767_vm0, %v9919_v11  ;;  %v5404_v11 = vmul.f32 %v9953_v25, %v10399_v10  ;;  %v5716_v10 = vmul.f32 %v9979_v61, %v10403_v28  ;;  %v5718_v25 = vmul.f32 %v9995_v47, %v10405_v36 }
0x10f9   : > { %7729 = vmatpush3.msra.mxu0 %v5730_v53  ;;  %7717 = vmatprep.mubr.msk.f32.mxu1 %vm767_vm0, %v9925_v58  ;;  %v5726_v58 = vld [vmem:[#allocation20 + $0x210] sm:$0xff] }
0x10fa   : > { %7730 = vmatprep.subr.mxu0 %v5729_v23  ;;  %7690 = vmatmul.mubr.msk.f32.gmra.mxu0 %vm767_vm0, %v5402_v35 }
0x10fb   : > { %7731 = vmatpush3.msra.mxu0 %v5729_v23  ;;  %7692 = vmatprep.mubr.msk.f32.mxu0 %vm767_vm0, %v5403_v24 }
0x10fc   : > { %7732 = vmatprep.subr.mxu0 %v5728_v45  ;;  %7718 = vmatmul.mubr.msk.f32.gmra.mxu1 %vm767_vm0, %v9937_v49  ;;  %v5724_v49 = vld [vmem:[#allocation20 + $0x200] sm:$0xff] }
0x10fd   : > { %7733 = vmatpush3.msra.mxu0 %v5728_v45  ;;  %7720 = vmatprep.mubr.msk.f32.mxu1 %vm767_vm0, %v9943_v3  ;;  %v5560_v3 = vld [vmem:[#allocation2 + $0x50] sm:$0xff] }
0x10fe   : > { %7734 = vmatprep.subr.mxu0 %v5727_v8  ;;  %7693 = vmatmul.mubr.msk.f32.gmra.mxu0 %vm767_vm0, %v5404_v11 }
0x10ff   : > { %7735 = vmatpush3.msra.mxu0 %v5727_v8  ;;  %7695 = vmatprep.mubr.msk.f32.mxu0 %vm767_vm0, %v5405_v12 }
0x1100   : > { %7736 = vmatprep.subr.mxu0 %v5726_v58  ;;  %7721 = vmatmul.mubr.msk.f32.gmra.mxu1 %vm767_vm0, %v9955_v4  ;;  %v5719_v4 = vmul.f32 %v9999_v30, %v10406_v29 }
0x1101   : > { %7737 = vmatpush3.msra.mxu0 %v5726_v58  ;;  %7723 = vmatprep.mubr.msk.f32.mxu1 %vm767_vm0, %v5082_v1 }
0x1102   : > { %7738 = vmatprep.subr.mxu0 %v5725_v0  ;;  %7696 = vmatmul.mubr.msk.f32.gmra.mxu0 %vm767_vm0, %v5406_v5 }
0x1103   : > { %7739 = vmatpush3.msra.mxu0 %v5725_v0  ;;  %7742 = vmatprep.mubr.msk.f32.mxu0 %vm767_vm0, %v5715_v32 }
0x1104   : > { %7740 = vmatprep.subr.mxu0 %v5724_v49  ;;  %7724 = vmatmul.mubr.msk.f32.gmra.mxu1 %vm767_vm0, %v5560_v3 }
0x1105   : > { %7741 = vmatpush3.msra.mxu0 %v5724_v49 }
0x1106   : > { %7743 = vmatmul.mubr.msk.f32.vlgmr.msra.gmra.mxu0 %vm767_vm0, %v5716_v10 }
0x1107   : > { %7745 = vmatprep.mubr.msk.f32.mxu0 %vm767_vm0, %v5717_v56 }
0x110a   : > { %7746 = vmatmul.mubr.msk.f32.gmra.mxu0 %vm767_vm0, %v5718_v25 }
0x110b   : > { %7748 = vmatprep.mubr.msk.f32.mxu0 %vm767_vm0, %v5719_v4 }
0x110e   : > { %7749 = vmatmul.mubr.msk.f32.gmra.mxu0 %vm767_vm0, %v5720_v20 }
0x110f   : > { %7751 = vmatprep.mubr.msk.f32.mxu0 %vm767_vm0, %v5721_v33 }
0x1112   : > { %7752 = vmatmul.mubr.msk.f32.gmra.mxu0 %vm767_vm0, %v10410_v41 }
0x116e   : > { %v7520_v28 = vpop.f32.mrf.mxu0 }
0x1170   : > { %v4583_v6 = vpop.f32.mrf.mxu0 }
0x1171   : > { %v7548_v61 = vpop.f32.mrf.mxu1 }
0x1172   : > { %v4718_v8 = vadd.f32 %v7548_v61, %v7520_v28 }
0x1173   : > { %v4712_v57 = vpop.f32.mrf.mxu1  ;;  %v7523_v36 = vpop.f32.mrf.mxu0 }
0x1174   : > { %v4713_v12 = vadd.f32 %v4712_v57, %v4583_v6 }
0x1175   : > { %v4593_v29 = vpop.f32.mrf.mxu0 }
0x1177   : > { %v7551_v47 = vpop.f32.mrf.mxu1 }
0x1178   : > { %v4728_v0 = vadd.f32 %v7551_v47, %v7523_v36 }
0x1179   : > { %v4722_v30 = vpop.f32.mrf.mxu1  ;;  %v7526_v18 = vpop.f32.mrf.mxu0 }
0x117a   : > { %v4723_v3 = vadd.f32 %v4722_v30, %v4593_v29 }
0x117b   : > { %v4603_v7 = vpop.f32.mrf.mxu0 }
0x117d   : > { %v7554_v59 = vpop.f32.mrf.mxu1 }
0x117e   : > { %v4738_v25 = vadd.f32 %v7554_v59, %v7526_v18 }
0x117f   : > { %v4732_v13 = vpop.f32.mrf.mxu1  ;;  %v7529_v15 = vpop.f32.mrf.mxu0 }
0x1181   : > { %v10126_v38 = vpop.f32.mrf.mxu0 }
0x1183   : > { %v7557_v9 = vpop.f32.mrf.mxu1 }
0x1185   : > { %v10128_v34 = vpop.f32.mrf.mxu1  ;;  %v7576_v26 = vpop.f32.mrf.mxu0 }
0x1186   : > { %v4906_v58 = vadd.f32 %v7576_v26, %v4718_v8  ;;  %v4748_v26 = vadd.f32 %v7557_v9, %v7529_v15  ;;  %v4743_v18 = vadd.f32 %v10128_v34, %v10126_v38 }
0x1187   : > { %v4866_v62 = vpop.f32.mrf.mxu0 }
0x1188   : > { %v7604_v21 = vpop.f32.mrf.mxu1  ;;  %v4905_v5 = vadd.f32 %v4866_v62, %v4713_v12 }
0x1189   : > { %v5068_v10 = vadd.f32 %v7604_v21, %v4906_v58 }
0x118a   : > { %v5028_v31 = vpop.f32.mrf.mxu1 }
0x118b   : > { %v7579_v55 = vpop.f32.mrf.mxu0  ;;  %v5067_v33 = vadd.f32 %v5028_v31, %v4905_v5 }
0x118c   : > { %v4908_v56 = vadd.f32 %v7579_v55, %v4728_v0 }
0x118d   : > { %v4876_v43 = vpop.f32.mrf.mxu0 }
0x118e   : > { %v4907_v41 = vadd.f32 %v4876_v43, %v4723_v3 }
0x118f   : > { %v7607_v50 = vpop.f32.mrf.mxu1 }
0x1190   : > { %v5070_v6 = vadd.f32 %v7607_v50, %v4908_v56 }
0x1191   : > { %v5038_v27 = vpop.f32.mrf.mxu1  ;;  %v7582_v40 = vpop.f32.mrf.mxu0 }
0x1192   : > { %v4910_v28 = vadd.f32 %v7582_v40, %v4738_v25  ;;  %v5069_v62 = vadd.f32 %v5038_v27, %v4907_v41 }
0x1193   : > { %v4886_v48 = vpop.f32.mrf.mxu0 }
0x1195   : > { %v7610_v19 = vpop.f32.mrf.mxu1 }
0x1196   : > { %v5072_v59 = vadd.f32 %v7610_v19, %v4910_v28 }
0x1197   : > { %v5048_v16 = vpop.f32.mrf.mxu1  ;;  %v7585_v52 = vpop.f32.mrf.mxu0 }
0x1198   : > { %v4912_v21 = vadd.f32 %v7585_v52, %v4748_v26 }
0x1199   : > { %v4896_v14 = vpop.f32.mrf.mxu0 }
0x119a   : > { %v4911_v40 = vadd.f32 %v4896_v14, %v4743_v18 }
0x119b   : > { %v7613_v44 = vpop.f32.mrf.mxu1 }
0x119c   : > { %v5074_v27 = vadd.f32 %v7613_v44, %v4912_v21 }
0x119d   : > { %v10130_v63 = vpop.f32.mrf.mxu1  ;;  %v7632_v22 = vpop.f32.mrf.mxu0 }
0x119e   : > { %v5073_v38 = vadd.f32 %v10130_v63, %v4911_v40 }
0x119f   : > { %v5182_v1 = vpop.f32.mrf.mxu0 }
0x11a0   : > { %v7660_v39 = vpop.f32.mrf.mxu1  ;;  %v5221_v57 = vadd.f32 %v5182_v1, %v5067_v33 }
0x11a2   : > { %v5344_v51 = vpop.f32.mrf.mxu1 }
0x11a3   : > { %v7635_v2 = vpop.f32.mrf.mxu0  ;;  %v5383_v55 = vadd.f32 %v5344_v51, %v5221_v57  ;;  %v6418_v51 = vld [vmem:[#allocation21] ss:$0 sm:$0xff] }
0x11a4   : > { %v5224_v29 = vadd.f32 %v7635_v2, %v5070_v6 }
0x11a5   : > { %v5192_v37 = vpop.f32.mrf.mxu0 }
0x11a7   : > { %v7663_v46 = vpop.f32.mrf.mxu1 }
0x11a8   : > { %v5386_v15 = vadd.f32 %v7663_v46, %v5224_v29 }
0x11a9   : > { %v5354_v60 = vpop.f32.mrf.mxu1  ;;  %v7638_v54 = vpop.f32.mrf.mxu0 }
0x11aa   : > { %v5226_v50 = vadd.f32 %v7638_v54, %v5072_v59 }
0x11ab   : > { %v5202_v42 = vpop.f32.mrf.mxu0 }
0x11ad   : > { %v7666_v53 = vpop.f32.mrf.mxu1 }
0x11ae   : > { %v5388_v34 = vadd.f32 %v7666_v53, %v5226_v50 }
0x11af   : > { %v10132_v23 = vpop.f32.mrf.mxu1  ;;  %v7641_v35 = vpop.f32.mrf.mxu0 }
0x11b0   : > { %v5228_v19 = vadd.f32 %v7641_v35, %v5074_v27 }
0x11b1   : > { %v10134_v24 = vpop.f32.mrf.mxu0 }
0x11b2   : > { %10411 = vst [vmem:[#allocation58_spill] sm:$0xff] %v10134_v24  ;;  %v5222_v24 = vadd.f32 %v7632_v22, %v5068_v10 }
0x11b3   : > { %v10136_v45 = vpop.f32.mrf.mxu1 }
0x11b4   : > { %10412 = vst [vmem:[#allocation59_spill] sm:$0xff] %v10136_v45  ;;  %v4733_v45 = vadd.f32 %v4732_v13, %v4603_v7  ;;  %v5384_v8 = vadd.f32 %v7660_v39, %v5222_v24  ;;  %v5223_v7 = vadd.f32 %v5192_v37, %v5069_v62 }
0x11b5   : > { %v10138_v11 = vpop.f32.mrf.mxu1  ;;  %v7688_v17 = vpop.f32.mrf.mxu0 }
0x11b6   : > { %10413 = vst [vmem:[#allocation60_spill] sm:$0xff] %v10138_v11  ;;  %v4909_v36 = vadd.f32 %v4886_v48, %v4733_v45  ;;  %v5546_v13 = vadd.f32 %v7688_v17, %v5384_v8  ;;  %v5385_v2 = vadd.f32 %v5354_v60, %v5223_v7 }
0x11b7   : > { %v5506_v49 = vpop.f32.mrf.mxu0 }
0x11b8   : > { %v7716_v32 = vpop.f32.mrf.mxu1  ;;  %v5071_v43 = vadd.f32 %v5048_v16, %v4909_v36  ;;  %v5545_v9 = vadd.f32 %v5506_v49, %v5383_v55 }
0x11b9   : > { %v5700_v24 = vadd.f32 %v7716_v32, %v5546_v13  ;;  %v10414_v12 = vld [vmem:[#allocation58_spill] sm:$0xff] }
0x11ba   : > { %v7691_v4 = vpop.f32.mrf.mxu0  ;;  %v5660_v20 = vpop.f32.mrf.mxu1  ;;  %v5225_v1 = vadd.f32 %v5202_v42, %v5071_v43  ;;  %v5227_v58 = vadd.f32 %v10414_v12, %v5073_v38 }
0x11bb   : > { %v5548_v45 = vadd.f32 %v7691_v4, %v5386_v15  ;;  %v5699_v37 = vadd.f32 %v5660_v20, %v5545_v9  ;;  %v10415_v5 = vld [vmem:[#allocation59_spill] sm:$0xff] }
0x11bc   : > { %v5516_v61 = vpop.f32.mrf.mxu0  ;;  %v7719_v11 = vpop.f32.mrf.mxu1  ;;  %v5387_v46 = vadd.f32 %v10132_v23, %v5225_v1  ;;  %v5390_v63 = vadd.f32 %v10415_v5, %v5228_v19 }
0x11bd   : > { %v5547_v16 = vadd.f32 %v5516_v61, %v5385_v2  ;;  %v5702_v17 = vadd.f32 %v7719_v11, %v5548_v45  ;;  %v10416_v23 = vld [vmem:[#allocation60_spill] sm:$0xff] }
0x11be   : > { %v7694_v47 = vpop.f32.mrf.mxu0  ;;  %v5670_v30 = vpop.f32.mrf.mxu1  ;;  %v5389_v25 = vadd.f32 %v10416_v23, %v5227_v58 }
0x11bf   : > { %v5550_v44 = vadd.f32 %v7694_v47, %v5388_v34  ;;  %v5701_v49 = vadd.f32 %v5670_v30, %v5547_v16 }
0x11c0   : > { %v5526_v31 = vpop.f32.mrf.mxu0  ;;  %v7722_v48 = vpop.f32.mrf.mxu1 }
0x11c1   : > { %v5549_v53 = vadd.f32 %v5526_v31, %v5387_v46  ;;  %v5704_v4 = vadd.f32 %v7722_v48, %v5550_v44 }
0x11c2   : > { %v7697_v22 = vpop.f32.mrf.mxu0  ;;  %v5680_v14 = vpop.f32.mrf.mxu1 }
0x11c3   : > { %v5552_v20 = vadd.f32 %v7697_v22, %v5390_v63  ;;  %v5703_v61 = vadd.f32 %v5680_v14, %v5549_v53  ;;  %v10418_v63 = vld [vmem:[#allocation34_spill] sm:$0xff] }
0x11c4   : > { %v5536_v39 = vpop.f32.mrf.mxu0  ;;  %v7725_v32 = vpop.f32.mrf.mxu1 }
0x11c5   : > { %v5551_v6 = vadd.f32 %v5536_v39, %v5389_v25  ;;  %v5706_v8 = vadd.f32 %v7725_v32, %v5552_v20  ;;  %v10421_v20 = vld [vmem:[#allocation37_spill] sm:$0xff] }
0x11c6   : > { %v7744_v52 = vpop.f32.mrf.mxu0  ;;  %v5690_v26 = vpop.f32.mrf.mxu1 }
0x11c7   : > { %v5862_v54 = vadd.f32 %v7744_v52, %v5700_v24  ;;  %v5705_v21 = vadd.f32 %v5690_v26, %v5551_v6  ;;  %v10423_v26 = vld [vmem:[#allocation39_spill] sm:$0xff] }
0x11c8   : > { %v5822_v42 = vpop.f32.mrf.mxu0 }
0x11c9   : > { %v10145_v60 = vadd.f32 %v6418_v51, %v5862_v54  ;;  %v5861_v0 = vadd.f32 %v5822_v42, %v5699_v37  ;;  %v10417_v42 = vld [vmem:[#allocation33_spill] sm:$0xff] }
0x11ca   : > { %v7747_v35 = vpop.f32.mrf.mxu0 }
0x11cb   : > { %v6420_v3 = vmul.f32 -1.442695, %v10145_v60  ;;  %v10149_v10 = vadd.f32 %v6418_v51, %v5861_v0  ;;  %v5864_v56 = vadd.f32 %v7747_v35, %v5702_v17 }
0x11cc   : > { %v5832_v33 = vpop.f32.mrf.mxu0 }
0x11cd   : > { %7960 = vpow2.f32 %v6420_v3  ;;  %v6419_v11 = vmul.f32 -1.442695, %v10149_v10  ;;  %v10153_v41 = vadd.f32 %v6418_v51, %v5864_v56  ;;  %v5863_v28 = vadd.f32 %v5832_v33, %v5701_v49 }
0x11ce   : > { %v7750_v57 = vpop.f32.mrf.mxu0 }
0x11cf   : > { %7962 = vpow2.f32 %v6419_v11  ;;  %v6422_v36 = vmul.f32 -1.442695, %v10153_v41  ;;  %v5878_v47 = vadd.f32 %v6418_v51, %v5863_v28  ;;  %v5866_v62 = vadd.f32 %v7750_v57, %v5704_v4  ;;  %v10422_v28 = vld [vmem:[#allocation38_spill] sm:$0xff] }
0x11d0   : > { %v5842_v29 = vpop.f32.mrf.mxu0 }
0x11d1   : > { %7964 = vpow2.f32 %v6422_v36  ;;  %v6421_v30 = vmul.f32 -1.442695, %v5878_v47  ;;  %v5881_v18 = vadd.f32 %v6418_v51, %v5866_v62  ;;  %v5865_v59 = vadd.f32 %v5842_v29, %v5703_v61  ;;  %v10425_v62 = vld [vmem:[#allocation40_spill] sm:$0xff] }
0x11d2   : > { %v7753_v31 = vpop.f32.mrf.mxu0 }
0x11d3   : > { %7966 = vpow2.f32 %v6421_v30  ;;  %v6424_v55 = vmul.f32 -1.442695, %v5881_v18  ;;  %v5880_v7 = vadd.f32 %v6418_v51, %v5865_v59  ;;  %v5868_v13 = vadd.f32 %v7753_v31, %v5706_v8 }
0x11d4   : > { %v5852_v43 = vpop.f32.mrf.mxu0 }
0x11d5   : > { %7968 = vpow2.f32 %v6424_v55  ;;  %v6423_v40 = vmul.f32 -1.442695, %v5880_v7  ;;  %v5883_v50 = vadd.f32 %v6418_v51, %v5868_v13  ;;  %v5867_v22 = vadd.f32 %v5852_v43, %v5705_v21 }
0x11d7   : > { %7970 = vpow2.f32 %v6423_v40  ;;  %v6426_v15 = vmul.f32 -1.442695, %v5883_v50  ;;  %v5882_v9 = vadd.f32 %v6418_v51, %v5867_v22 }
0x11d9   : > { %7972 = vpow2.f32 %v6426_v15  ;;  %v6425_v48 = vmul.f32 -1.442695, %v5882_v9 }
0x11da   : > { %v7961_v27 = vpop.eup %7960 }
0x11db   : > { %v5909_v1 = vadd.f32 1.0, %v7961_v27  ;;  %7974 = vpow2.f32 %v6425_v48 }
0x11dc   : > { %v7963_v39 = vpop.eup %7962 }
0x11dd   : > { %7976 = vrcp.f32 %v5909_v1  ;;  %v5908_v2 = vadd.f32 1.0, %v7963_v39 }
0x11de   : > { %v7965_v24 = vpop.eup %7964 }
0x11df   : > { %7978 = vrcp.f32 %v5908_v2  ;;  %v5911_v45 = vadd.f32 1.0, %v7965_v24 }
0x11e0   : > { %v7967_v38 = vpop.eup %7966 }
0x11e1   : > { %7980 = vrcp.f32 %v5911_v45  ;;  %v5910_v34 = vadd.f32 1.0, %v7967_v38 }
0x11e2   : > { %v7969_v19 = vpop.eup %7968 }
0x11e3   : > { %7982 = vrcp.f32 %v5910_v34  ;;  %v5913_v52 = vadd.f32 1.0, %v7969_v19 }
0x11e4   : > { %v7971_v37 = vpop.eup %7970 }
0x11e5   : > { %7984 = vrcp.f32 %v5913_v52  ;;  %v5912_v51 = vadd.f32 1.0, %v7971_v37 }
0x11e6   : > { %v7973_v16 = vpop.eup %7972 }
0x11e7   : > { %7986 = vrcp.f32 %v5912_v51  ;;  %v5915_v14 = vadd.f32 1.0, %v7973_v16 }
0x11e8   : > { %v7975_v54 = vpop.eup %7974 }
0x11e9   : > { %7988 = vrcp.f32 %v5915_v14  ;;  %v5914_v46 = vadd.f32 1.0, %v7975_v54 }
0x11ea   : > { %v7977_v12 = vpop.eup %7976 }
0x11eb   : > { %v5933_v58 = vmul.f32 %v7977_v12, %v10145_v60  ;;  %7990 = vrcp.f32 %v5914_v46  ;;  %v10419_v60 = vld [vmem:[#allocation35_spill] sm:$0xff] }
0x11ec   : > { %v7979_v44 = vpop.eup %7978 }
0x11ed   : > { %v5941_v17 = vadd.f32 %v5933_v58, %v10417_v42  ;;  %v5932_v0 = vmul.f32 %v7979_v44, %v10149_v10  ;;  %v10420_v10 = vld [vmem:[#allocation36_spill] sm:$0xff] }
0x11ee   : > { %v7981_v5 = vpop.eup %7980 }
0x11ef   : > { %5949 = vst.msk [vmem:[%s766_s27 + $0x8] sm:$0xff] %vm767_vm0, %v5941_v17  ;;  %v5940_v53 = vadd.f32 %v5932_v0, %v10418_v63  ;;  %v5935_v35 = vmul.f32 %v7981_v5, %v10153_v41 }
0x11f0   : > { %v7983_v49 = vpop.eup %7982 }
0x11f1   : > { %5948 = vst.msk [vmem:[%s766_s27] sm:$0xff] %vm767_vm0, %v5940_v53  ;;  %v5943_v32 = vadd.f32 %v5935_v35, %v10419_v60  ;;  %v5934_v3 = vmul.f32 %v7983_v49, %v5878_v47 }
0x11f2   : > { %v7985_v56 = vpop.eup %7984 }
0x11f3   : > { %5951 = vst.msk [vmem:[%s766_s27 + $0x18] sm:$0xff] %vm767_vm0, %v5943_v32  ;;  %v5942_v23 = vadd.f32 %v5934_v3, %v10420_v10  ;;  %v5937_v25 = vmul.f32 %v7985_v56, %v5881_v18 }
0x11f4   : > { %v7987_v4 = vpop.eup %7986 }
0x11f5   : > { %5950 = vst.msk [vmem:[%s766_s27 + $0x10] sm:$0xff] %vm767_vm0, %v5942_v23  ;;  %v5945_v33 = vadd.f32 %v5937_v25, %v10421_v20  ;;  %v5936_v11 = vmul.f32 %v7987_v4, %v5880_v7 }
0x11f6   : > { %v7989_v41 = vpop.eup %7988 }
0x11f7   : > { %5953 = vst.msk [vmem:[%s766_s27 + $0x28] sm:$0xff] %vm767_vm0, %v5945_v33  ;;  %v5944_v61 = vadd.f32 %v5936_v11, %v10422_v28  ;;  %v5939_v6 = vmul.f32 %v7989_v41, %v5883_v50 }
0x11f8   : > { %v7991_v57 = vpop.eup %7990 }
0x11f9   : > { %5952 = vst.msk [vmem:[%s766_s27 + $0x20] sm:$0xff] %vm767_vm0, %v5944_v61  ;;  %v5947_v36 = vadd.f32 %v5939_v6, %v10423_v26  ;;  %v5938_v47 = vmul.f32 %v7991_v57, %v5882_v9 }
0x11fb   : > { %5955 = vst.msk [vmem:[%s766_s27 + $0x38] sm:$0xff] %vm767_vm0, %v5947_v36  ;;  %v5946_v8 = vadd.f32 %v5938_v47, %v10425_v62 }
0x11fd   : > { %5954 = vst.msk [vmem:[%s766_s27 + $0x30] sm:$0xff] %vm767_vm0, %v5946_v8 }
0x11fe   : > { %8351 = shalt.err (!%p8348_p12)
}
0x11ff   : > { %s8352_s5 = scalar_lea.hbm %s10178_s15, 1024  ;;  %s8356_s19 = scalar_lea.hbm %s10424_s24, 2048 }
0x1200   : > { %p8353_p3 = scmp.ne.s32.totalorder %s10178_s15, %s8352_s5  ;;  %p8357_p5 = scmp.lt.s32.totalorder %s10178_s15, %s10424_s24 }
0x1201   : > { %p8358_p1 = scmp.lt.s32.totalorder %s8356_s19, %s8352_s5 }
0x1202   : > { %p8354_p0 = pnand %p8353_p3, %p10426_p13 }
0x1203   : > { %p8359_p9 = por %p8358_p1, %p8357_p5 }
0x1204   : > { %p8355_p2 = pneg %p8354_p0 }
0x1206   : > { %p8360_p7 = pnand %p8359_p9, %p8355_p2 }
0x1208   : > { %8363 = shalt.err (!%p8360_p7)
}
0x1209   : > { %s8448_s8 = smov 128   ;;  %s8449_s11 = smov 8  }
0x120a   : > { %7800 = dma.vmem_to_hbm [thread:$0]  (%p10426_p13), %s10180_s10, 1024, %s10178_s15, %s5957_s2, %s8448_s8, %s8448_s8, %s8449_s11  }
0x120b PF: > { %s5985_s4 = sand.u32 1, %s8414_s0   ;;  %p10427_p6 = scmp.ne.s32.totalorder %s10337_s26, 0 }
0x120c   : > { %p10428_p8 = scmp.ge.s32.totalorder %s8426_s21, 2  ;;  %s5986_s5 = scalar_lea.sflag [#allocation5], %s5985_s4 }
0x120e   : > { %p7841_p4 = pnand %p10428_p8, %p10427_p6 }
0x1210   : > { %p7842_p10 = pneg %p7841_p4 }
0x1212   : > { %8409 = dma.done.wait (%p7842_p10), %s5986_s5, 1024  }
0x1213   : > { %8411 = vsyncadd (%p7842_p10), %s5986_s5, 4294966272  ;;  %p38_p11 = scmp.ge.s32.totalorder %s8691_s3, 4   ;;  %s10429_s0 = smov %s8418_s30 }
0x1214   : > { %s10430_s30 = smov %s8422_s20  ;;  %s10431_s20 = smov %s8703_s6 }
0x1215   : > { %s10432_s21 = smov %s8691_s3  ;;  %40 = sbr.rel (!%p38_p11) target bundleno = 28 (0x1c), region = 205 }
0x121a   :  { %5991 = vsyncpa [#allocation4], 1 }
0x121b   :  { %5993 = vsyncpa [#allocation4 + $0x1], 1 }
0x121c   :  { %5994 = vsyncpa [#allocation7], 1 }
0x121d   :  { %5995 = vsyncpa [#allocation10], 1 }
0x121e   :  { %5996 = vsyncpa [#allocation13], 1 }
0x121f   :  { %5997 = vsyncpa [#allocation16], 1 }
0x1220   :  { %5998 = vsyncpa [#allocation19], 1 }
0x1221   :  { %5999 = vsyncpa [#allocation22], 1 }
0x1222   :  { %6000 = vsyncpa [#allocation5], 1 }
0x1223   :  { %6002 = vsyncpa [#allocation5 + $0x1], 1 }

</bundles_post_ra>
